<compile_context>
chip_gen: v6e
topology: v6e:2x2x1
jax: 0.10.0
libtpu: 0.0.40
codegen_flags: <defaults>
</compile_context>

<pallas_src>
import functools

import jax
import jax.numpy as jnp
from jax.experimental import pallas as pl
from jax.experimental.pallas import tpu as pltpu

LANE = 128  # TPU lane width; channel axis is zero-padded to this


# ----------------------------------------------------------------------------
# Fused kernel
# ----------------------------------------------------------------------------
def _residual_block_kernel(x_ref, w1_ref, g1_ref, be1_ref, w2_ref, g2_ref, be2_ref,
                           o_ref, pad_ref, col_ref, *, N, H, W, C, eps):
    """One grid step computes the whole residual block (C == 128, lane-padded).

    x_ref:   (N, H, W, C)      input activations (NHWC, f32, channels padded)
    w*_ref:  (9*C, C)          conv weights, rows ordered (kh, kw, cin)
    g*/be*:  (1, C)            BN gamma / beta (padded channels -> 0)
    o_ref:   (N, H, W, C)      output
    pad_ref: (N, H+2, W+2, C)  VMEM scratch: zero-haloed activations (reused)
    col_ref: (N*H*W, 9*C)      VMEM scratch: im2col patch matrix (reused)
    """
    M = N * H * W
    inv_m = 1.0 / M

    # Zero only the 1-pixel halo; the interior is overwritten before each conv.
    zrow = jnp.zeros((N, 1, W + 2, C), jnp.float32)
    pad_ref[:, 0:1, :, :] = zrow
    pad_ref[:, H + 1:H + 2, :, :] = zrow
    zcol = jnp.zeros((N, H + 2, 1, C), jnp.float32)
    pad_ref[:, :, 0:1, :] = zcol
    pad_ref[:, :, W + 1:W + 2, :] = zcol

    ones_row = jnp.ones((1, M), jnp.float32)  # hoisted; reused by both BN stats

    def conv3x3(w_ref):
        # im2col: each of the 9 tap writes is a full 128-lane, tile-aligned store.
        for kh in range(3):
            for kw in range(3):
                j = kh * 3 + kw
                win = pad_ref[:, kh:kh + H, kw:kw + W, :]        # (N, H, W, C)
                col_ref[:, j * C:(j + 1) * C] = win.reshape(M, C)
        # Single (M, 9C) x (9C, C) MXU matmul per conv.
        # TODO(synk): cast col/w to bf16 (keep f32 accumulation) at real sizes.
        return jnp.dot(col_ref[...], w_ref[...],
                       preferred_element_type=jnp.float32)        # (M, C)

    def bn_scale_shift(y, g_ref, b_ref):
        # One-pass training-mode BN stats via MXU row-sums (XLU stays free).
        s = jnp.dot(ones_row, y, preferred_element_type=jnp.float32)        # (1, C)
        s2 = jnp.dot(ones_row, y * y, preferred_element_type=jnp.float32)   # (1, C)
        mean = s * inv_m
        var = s2 * inv_m - mean * mean                                      # E[y^2]-E[y]^2
        scale = g_ref[...] * jax.lax.rsqrt(var + eps)
        shift = b_ref[...] - mean * scale
        return scale, shift

    x = x_ref[...]                                                # (N, H, W, C)

    # ---- conv1 -> BN1 -> ReLU ----
    pad_ref[:, 1:H + 1, 1:W + 1, :] = x
    y1 = conv3x3(w1_ref)                                          # (M, C)
    sc1, sh1 = bn_scale_shift(y1, g1_ref, be1_ref)
    z1 = jnp.maximum(y1 * sc1 + sh1, 0.0)

    # ---- conv2 -> BN2 -> + identity shortcut -> ReLU ----
    pad_ref[:, 1:H + 1, 1:W + 1, :] = z1.reshape(N, H, W, C)
    y2 = conv3x3(w2_ref)                                          # (M, C)
    sc2, sh2 = bn_scale_shift(y2, g2_ref, be2_ref)
    out = jnp.maximum(y2 * sc2 + sh2 + x.reshape(M, C), 0.0)

    o_ref[...] = out.reshape(N, H, W, C)


# ----------------------------------------------------------------------------
# Wrapper
# ----------------------------------------------------------------------------
@jax.jit
def residual_basic_block(x_nchw, params):
    w1, b1, g1, be1, w2, b2, g2, be2 = params
    del b1, b2  # exactly cancelled by training-mode BN mean subtraction

    x = jnp.transpose(x_nchw, (0, 2, 3, 1)).astype(jnp.float32)   # NCHW -> NHWC
    N, H, W, Cin = x.shape
    Cout = w1.shape[-1]
    assert Cin == Cout, "identity shortcut requires in_channels == out_channels"

    Cp = LANE
    pc = Cp - Cin

    # Lane-dense HBM boundary: zero-pad channels to 128 so every BlockSpec and
    # every vector store inside the kernel is an unmasked full-128-lane row.
    # Real channels are sliced back out only at the HBM boundary below.
    xp = jnp.pad(x, ((0, 0), (0, 0), (0, 0), (0, pc)))
    w1p = jnp.pad(w1, ((0, 0), (0, 0), (0, pc), (0, pc))).reshape(9 * Cp, Cp)
    w2p = jnp.pad(w2, ((0, 0), (0, 0), (0, pc), (0, pc))).reshape(9 * Cp, Cp)
    g1p = jnp.pad(g1.reshape(1, Cin), ((0, 0), (0, pc)))
    be1p = jnp.pad(be1.reshape(1, Cin), ((0, 0), (0, pc)))
    g2p = jnp.pad(g2.reshape(1, Cout), ((0, 0), (0, pc)))
    be2p = jnp.pad(be2.reshape(1, Cout), ((0, 0), (0, pc)))

    kern = functools.partial(_residual_block_kernel,
                             N=N, H=H, W=W, C=Cp, eps=1e-5)
    outp = pl.pallas_call(
        kern,
        out_shape=jax.ShapeDtypeStruct((N, H, W, Cp), jnp.float32),
        grid=(1,),
        in_specs=[
            pl.BlockSpec((N, H, W, Cp), lambda i: (0, 0, 0, 0)),
            pl.BlockSpec((9 * Cp, Cp), lambda i: (0, 0)),
            pl.BlockSpec((1, Cp), lambda i: (0, 0)),
            pl.BlockSpec((1, Cp), lambda i: (0, 0)),
            pl.BlockSpec((9 * Cp, Cp), lambda i: (0, 0)),
            pl.BlockSpec((1, Cp), lambda i: (0, 0)),
            pl.BlockSpec((1, Cp), lambda i: (0, 0)),
        ],
        out_specs=pl.BlockSpec((N, H, W, Cp), lambda i: (0, 0, 0, 0)),
        scratch_shapes=[
            pltpu.VMEM((N, H + 2, W + 2, Cp), jnp.float32),   # zero-haloed acts
            pltpu.VMEM((N * H * W, 9 * Cp), jnp.float32),     # im2col matrix
        ],
        compiler_params=pltpu.CompilerParams(
            dimension_semantics=("arbitrary",),
            vmem_limit_bytes=32 * 1024 * 1024),
    )(xp, w1p, g1p, be1p, w2p, g2p, be2p)

    out = outp[..., :Cout]                                        # drop lane pad
    return jnp.transpose(out, (0, 3, 1, 2))                       # NHWC -> NCHW


# ----------------------------------------------------------------------------
# Pure-JAX reference (correctness check; includes the conv biases)
# ----------------------------------------------------------------------------
def _reference(x_nchw, params, eps=1e-5):
    w1, b1, g1, be1, w2, b2, g2, be2 = params
    x = jnp.transpose(x_nchw, (0, 2, 3, 1)).astype(jnp.float32)

    def conv(a, w, b):
        y = jax.lax.conv_general_dilated(
            a, w, (1, 1), ((1, 1), (1, 1)),
            dimension_numbers=("NHWC", "HWIO", "NHWC"),
            precision=jax.lax.Precision.HIGHEST)
        return y + b.reshape(1, 1, 1, -1)

    def bn(y, g, be):
        m = jnp.mean(y, axis=(0, 1, 2), keepdims=True)
        v = jnp.mean((y - m) ** 2, axis=(0, 1, 2), keepdims=True)
        return (y - m) / jnp.sqrt(v + eps) * g.reshape(1, 1, 1, -1) + be.reshape(1, 1, 1, -1)

    h = jax.nn.relu(bn(conv(x, w1, b1), g1, be1))
    h = bn(conv(h, w2, b2), g2, be2)
    out = jax.nn.relu(h + x)
    return jnp.transpose(out, (0, 3, 1, 2))


# ----------------------------------------------------------------------------
def make_params(key, cin, cout):
    """Deterministic parameter init (Kaiming-uniform-ish conv, BN weight=1/bias=0)."""
    k1, k2, k3, k4 = jax.random.split(key, 4)
    bound1 = 1.0 / jnp.sqrt(cin * 9.0)
    bound2 = 1.0 / jnp.sqrt(cout * 9.0)
    w1 = jax.random.uniform(k1, (3, 3, cin, cout), jnp.float32, -bound1, bound1)   # HWIO
    b1 = jax.random.uniform(k2, (1, cout), jnp.float32, -bound1, bound1)
    w2 = jax.random.uniform(k3, (3, 3, cout, cout), jnp.float32, -bound2, bound2)
    b2 = jax.random.uniform(k4, (1, cout), jnp.float32, -bound2, bound2)
    g1 = jnp.ones((1, cout), jnp.float32)
    be1 = jnp.zeros((1, cout), jnp.float32)
    g2 = jnp.ones((1, cout), jnp.float32)
    be2 = jnp.zeros((1, cout), jnp.float32)
    return (w1, b1, g1, be1, w2, b2, g2, be2)


if __name__ == "__main__":
    key = jax.random.PRNGKey(0)
    kx, kp = jax.random.split(key)

    N, C, H, W = 2, 16, 8, 8                      # in_channels = out_channels = 16
    x = jax.random.normal(kx, (N, C, H, W), jnp.float32)   # NCHW, like PyTorch
    params = make_params(kp, C, C)

    out = residual_basic_block(x, params)
    out = jax.block_until_ready(out)
    assert out.shape == (N, C, H, W), out.shape

    ref = _reference(x, params)
    err = float(jnp.max(jnp.abs(out - ref)))
    assert jnp.allclose(out, ref, atol=2e-3, rtol=2e-3), err

    print("KERNEL_OK")
</pallas_src>

<mosaic_0001>
module attributes {stable_mosaic.version = 11 : i64} {
  func.func @_residual_block_kernel(%arg0: i32, %arg1: memref<2x8x8x128xf32, #tpu.memory_space<vmem>>, %arg2: memref<1152x128xf32, #tpu.memory_space<vmem>>, %arg3: memref<1x128xf32, #tpu.memory_space<vmem>>, %arg4: memref<1x128xf32, #tpu.memory_space<vmem>>, %arg5: memref<1152x128xf32, #tpu.memory_space<vmem>>, %arg6: memref<1x128xf32, #tpu.memory_space<vmem>>, %arg7: memref<1x128xf32, #tpu.memory_space<vmem>>, %arg8: memref<2x8x8x128xf32, #tpu.memory_space<vmem>>, %arg9: memref<2x10x10x128xf32, #tpu.memory_space<vmem>>, %arg10: memref<128x1152xf32, #tpu.memory_space<vmem>>) attributes {dimension_semantics = [#tpu.dimension_semantics<arbitrary>], iteration_bounds = array<i64: 1>, scalar_prefetch = 0 : i64, scratch_operands = 2 : i64, tpu.core_type = #tpu.core_type<tc>, window_params = [{pipeline_mode = #tpu.pipeline_mode<synchronous>, transform_indices = @transform_0, window_bounds = array<i64: 2, 8, 8, 128>}, {pipeline_mode = #tpu.pipeline_mode<synchronous>, transform_indices = @transform_1, window_bounds = array<i64: 1152, 128>}, {pipeline_mode = #tpu.pipeline_mode<synchronous>, transform_indices = @transform_2, window_bounds = array<i64: 1, 128>}, {pipeline_mode = #tpu.pipeline_mode<synchronous>, transform_indices = @transform_3, window_bounds = array<i64: 1, 128>}, {pipeline_mode = #tpu.pipeline_mode<synchronous>, transform_indices = @transform_4, window_bounds = array<i64: 1152, 128>}, {pipeline_mode = #tpu.pipeline_mode<synchronous>, transform_indices = @transform_5, window_bounds = array<i64: 1, 128>}, {pipeline_mode = #tpu.pipeline_mode<synchronous>, transform_indices = @transform_6, window_bounds = array<i64: 1, 128>}, {pipeline_mode = #tpu.pipeline_mode<synchronous>, transform_indices = @transform_7, window_bounds = array<i64: 2, 8, 8, 128>}]} {
    %cst = arith.constant 0.000000e+00 : f32
    %0 = vector.broadcast %cst : f32 to vector<2x1x10x128xf32>
    %c0 = arith.constant 0 : index
    %c0_0 = arith.constant 0 : index
    %c0_1 = arith.constant 0 : index
    %c0_2 = arith.constant 0 : index
    %1 = vector.load %arg9[%c0, %c0_0, %c0_1, %c0_2] : memref<2x10x10x128xf32, #tpu.memory_space<vmem>>, vector<2x1x10x128xf32>
    tpu.vector_store %arg9[%c0, %c0_0, %c0_1, %c0_2], %0 {strides = array<i32>} : memref<2x10x10x128xf32, #tpu.memory_space<vmem>>, vector<2x1x10x128xf32>,
    %c0_3 = arith.constant 0 : index
    %c9 = arith.constant 9 : index
    %c0_4 = arith.constant 0 : index
    %c0_5 = arith.constant 0 : index
    %2 = vector.load %arg9[%c0_3, %c9, %c0_4, %c0_5] : memref<2x10x10x128xf32, #tpu.memory_space<vmem>>, vector<2x1x10x128xf32>
    tpu.vector_store %arg9[%c0_3, %c9, %c0_4, %c0_5], %0 {strides = array<i32>} : memref<2x10x10x128xf32, #tpu.memory_space<vmem>>, vector<2x1x10x128xf32>,
    %cst_6 = arith.constant 0.000000e+00 : f32
    %3 = vector.broadcast %cst_6 : f32 to vector<2x10x1x128xf32>
    %c0_7 = arith.constant 0 : index
    %c0_8 = arith.constant 0 : index
    %c0_9 = arith.constant 0 : index
    %c0_10 = arith.constant 0 : index
    %4 = vector.load %arg9[%c0_7, %c0_8, %c0_9, %c0_10] : memref<2x10x10x128xf32, #tpu.memory_space<vmem>>, vector<2x10x1x128xf32>
    tpu.vector_store %arg9[%c0_7, %c0_8, %c0_9, %c0_10], %3 {strides = array<i32>} : memref<2x10x10x128xf32, #tpu.memory_space<vmem>>, vector<2x10x1x128xf32>,
    %c0_11 = arith.constant 0 : index
    %c0_12 = arith.constant 0 : index
    %c9_13 = arith.constant 9 : index
    %c0_14 = arith.constant 0 : index
    %5 = vector.load %arg9[%c0_11, %c0_12, %c9_13, %c0_14] : memref<2x10x10x128xf32, #tpu.memory_space<vmem>>, vector<2x10x1x128xf32>
    tpu.vector_store %arg9[%c0_11, %c0_12, %c9_13, %c0_14], %3 {strides = array<i32>} : memref<2x10x10x128xf32, #tpu.memory_space<vmem>>, vector<2x10x1x128xf32>,
    %cst_15 = arith.constant 1.000000e+00 : f32
    %6 = vector.broadcast %cst_15 : f32 to vector<1x128xf32>
    %c0_16 = arith.constant 0 : index
    %c0_17 = arith.constant 0 : index
    %c0_18 = arith.constant 0 : index
    %c0_19 = arith.constant 0 : index
    %7 = vector.load %arg1[%c0_16, %c0_17, %c0_18, %c0_19] : memref<2x8x8x128xf32, #tpu.memory_space<vmem>>, vector<2x8x8x128xf32>
    %c0_20 = arith.constant 0 : index
    %c1 = arith.constant 1 : index
    %c1_21 = arith.constant 1 : index
    %c0_22 = arith.constant 0 : index
    %8 = vector.load %arg9[%c0_20, %c1, %c1_21, %c0_22] : memref<2x10x10x128xf32, #tpu.memory_space<vmem>>, vector<2x8x8x128xf32>
    tpu.vector_store %arg9[%c0_20, %c1, %c1_21, %c0_22], %7 {strides = array<i32>} : memref<2x10x10x128xf32, #tpu.memory_space<vmem>>, vector<2x8x8x128xf32>,
    %c0_23 = arith.constant 0 : index
    %c0_24 = arith.constant 0 : index
    %c0_25 = arith.constant 0 : index
    %c0_26 = arith.constant 0 : index
    %9 = vector.load %arg9[%c0_23, %c0_24, %c0_25, %c0_26] : memref<2x10x10x128xf32, #tpu.memory_space<vmem>>, vector<2x8x8x128xf32>
    %10 = vector.shape_cast %9 : vector<2x8x8x128xf32> to vector<128x128xf32>
    %c0_27 = arith.constant 0 : index
    %c0_28 = arith.constant 0 : index
    %11 = vector.load %arg10[%c0_27, %c0_28] : memref<128x1152xf32, #tpu.memory_space<vmem>>, vector<128x128xf32>
    tpu.vector_store %arg10[%c0_27, %c0_28], %10 {strides = array<i32>} : memref<128x1152xf32, #tpu.memory_space<vmem>>, vector<128x128xf32>,
    %c0_29 = arith.constant 0 : index
    %c0_30 = arith.constant 0 : index
    %c1_31 = arith.constant 1 : index
    %c0_32 = arith.constant 0 : index
    %12 = vector.load %arg9[%c0_29, %c0_30, %c1_31, %c0_32] : memref<2x10x10x128xf32, #tpu.memory_space<vmem>>, vector<2x8x8x128xf32>
    %13 = vector.shape_cast %12 : vector<2x8x8x128xf32> to vector<128x128xf32>
    %c0_33 = arith.constant 0 : index
    %c128 = arith.constant 128 : index
    %14 = vector.load %arg10[%c0_33, %c128] : memref<128x1152xf32, #tpu.memory_space<vmem>>, vector<128x128xf32>
    tpu.vector_store %arg10[%c0_33, %c128], %13 {strides = array<i32>} : memref<128x1152xf32, #tpu.memory_space<vmem>>, vector<128x128xf32>,
    %c0_34 = arith.constant 0 : index
    %c0_35 = arith.constant 0 : index
    %c2 = arith.constant 2 : index
    %c0_36 = arith.constant 0 : index
    %15 = vector.load %arg9[%c0_34, %c0_35, %c2, %c0_36] : memref<2x10x10x128xf32, #tpu.memory_space<vmem>>, vector<2x8x8x128xf32>
    %16 = vector.shape_cast %15 : vector<2x8x8x128xf32> to vector<128x128xf32>
    %c0_37 = arith.constant 0 : index
    %c256 = arith.constant 256 : index
    %17 = vector.load %arg10[%c0_37, %c256] : memref<128x1152xf32, #tpu.memory_space<vmem>>, vector<128x128xf32>
    tpu.vector_store %arg10[%c0_37, %c256], %16 {strides = array<i32>} : memref<128x1152xf32, #tpu.memory_space<vmem>>, vector<128x128xf32>,
    %c0_38 = arith.constant 0 : index
    %c1_39 = arith.constant 1 : index
    %c0_40 = arith.constant 0 : index
    %c0_41 = arith.constant 0 : index
    %18 = vector.load %arg9[%c0_38, %c1_39, %c0_40, %c0_41] : memref<2x10x10x128xf32, #tpu.memory_space<vmem>>, vector<2x8x8x128xf32>
    %19 = vector.shape_cast %18 : vector<2x8x8x128xf32> to vector<128x128xf32>
    %c0_42 = arith.constant 0 : index
    %c384 = arith.constant 384 : index
    %20 = vector.load %arg10[%c0_42, %c384] : memref<128x1152xf32, #tpu.memory_space<vmem>>, vector<128x128xf32>
    tpu.vector_store %arg10[%c0_42, %c384], %19 {strides = array<i32>} : memref<128x1152xf32, #tpu.memory_space<vmem>>, vector<128x128xf32>,
    %c0_43 = arith.constant 0 : index
    %c1_44 = arith.constant 1 : index
    %c1_45 = arith.constant 1 : index
    %c0_46 = arith.constant 0 : index
    %21 = vector.load %arg9[%c0_43, %c1_44, %c1_45, %c0_46] : memref<2x10x10x128xf32, #tpu.memory_space<vmem>>, vector<2x8x8x128xf32>
    %22 = vector.shape_cast %21 : vector<2x8x8x128xf32> to vector<128x128xf32>
    %c0_47 = arith.constant 0 : index
    %c512 = arith.constant 512 : index
    %23 = vector.load %arg10[%c0_47, %c512] : memref<128x1152xf32, #tpu.memory_space<vmem>>, vector<128x128xf32>
    tpu.vector_store %arg10[%c0_47, %c512], %22 {strides = array<i32>} : memref<128x1152xf32, #tpu.memory_space<vmem>>, vector<128x128xf32>,
    %c0_48 = arith.constant 0 : index
    %c1_49 = arith.constant 1 : index
    %c2_50 = arith.constant 2 : index
    %c0_51 = arith.constant 0 : index
    %24 = vector.load %arg9[%c0_48, %c1_49, %c2_50, %c0_51] : memref<2x10x10x128xf32, #tpu.memory_space<vmem>>, vector<2x8x8x128xf32>
    %25 = vector.shape_cast %24 : vector<2x8x8x128xf32> to vector<128x128xf32>
    %c0_52 = arith.constant 0 : index
    %c640 = arith.constant 640 : index
    %26 = vector.load %arg10[%c0_52, %c640] : memref<128x1152xf32, #tpu.memory_space<vmem>>, vector<128x128xf32>
    tpu.vector_store %arg10[%c0_52, %c640], %25 {strides = array<i32>} : memref<128x1152xf32, #tpu.memory_space<vmem>>, vector<128x128xf32>,
    %c0_53 = arith.constant 0 : index
    %c2_54 = arith.constant 2 : index
    %c0_55 = arith.constant 0 : index
    %c0_56 = arith.constant 0 : index
    %27 = vector.load %arg9[%c0_53, %c2_54, %c0_55, %c0_56] : memref<2x10x10x128xf32, #tpu.memory_space<vmem>>, vector<2x8x8x128xf32>
    %28 = vector.shape_cast %27 : vector<2x8x8x128xf32> to vector<128x128xf32>
    %c0_57 = arith.constant 0 : index
    %c768 = arith.constant 768 : index
    %29 = vector.load %arg10[%c0_57, %c768] : memref<128x1152xf32, #tpu.memory_space<vmem>>, vector<128x128xf32>
    tpu.vector_store %arg10[%c0_57, %c768], %28 {strides = array<i32>} : memref<128x1152xf32, #tpu.memory_space<vmem>>, vector<128x128xf32>,
    %c0_58 = arith.constant 0 : index
    %c2_59 = arith.constant 2 : index
    %c1_60 = arith.constant 1 : index
    %c0_61 = arith.constant 0 : index
    %30 = vector.load %arg9[%c0_58, %c2_59, %c1_60, %c0_61] : memref<2x10x10x128xf32, #tpu.memory_space<vmem>>, vector<2x8x8x128xf32>
    %31 = vector.shape_cast %30 : vector<2x8x8x128xf32> to vector<128x128xf32>
    %c0_62 = arith.constant 0 : index
    %c896 = arith.constant 896 : index
    %32 = vector.load %arg10[%c0_62, %c896] : memref<128x1152xf32, #tpu.memory_space<vmem>>, vector<128x128xf32>
    tpu.vector_store %arg10[%c0_62, %c896], %31 {strides = array<i32>} : memref<128x1152xf32, #tpu.memory_space<vmem>>, vector<128x128xf32>,
    %c0_63 = arith.constant 0 : index
    %c2_64 = arith.constant 2 : index
    %c2_65 = arith.constant 2 : index
    %c0_66 = arith.constant 0 : index
    %33 = vector.load %arg9[%c0_63, %c2_64, %c2_65, %c0_66] : memref<2x10x10x128xf32, #tpu.memory_space<vmem>>, vector<2x8x8x128xf32>
    %34 = vector.shape_cast %33 : vector<2x8x8x128xf32> to vector<128x128xf32>
    %c0_67 = arith.constant 0 : index
    %c1024 = arith.constant 1024 : index
    %35 = vector.load %arg10[%c0_67, %c1024] : memref<128x1152xf32, #tpu.memory_space<vmem>>, vector<128x128xf32>
    tpu.vector_store %arg10[%c0_67, %c1024], %34 {strides = array<i32>} : memref<128x1152xf32, #tpu.memory_space<vmem>>, vector<128x128xf32>,
    %c0_68 = arith.constant 0 : index
    %c0_69 = arith.constant 0 : index
    %36 = vector.load %arg10[%c0_68, %c0_69] : memref<128x1152xf32, #tpu.memory_space<vmem>>, vector<128x1152xf32>
    %c0_70 = arith.constant 0 : index
    %c0_71 = arith.constant 0 : index
    %37 = vector.load %arg2[%c0_70, %c0_71] : memref<1152x128xf32, #tpu.memory_space<vmem>>, vector<1152x128xf32>
    %cst_72 = arith.constant dense<0.000000e+00> : vector<128x128xf32>
    %38 = tpu.matmul %36, %37, %cst_72 {dimension_numbers = #tpu.dot_dimension_numbers<[1], [0], [0], [1], [0, 0, 1, 1], [], []>} : vector<128x1152xf32>, vector<1152x128xf32>, vector<128x128xf32> -> vector<128x128xf32>
    %cst_73 = arith.constant dense<0.000000e+00> : vector<1x128xf32>
    %39 = tpu.matmul %6, %38, %cst_73 {dimension_numbers = #tpu.dot_dimension_numbers<[1], [0], [0], [1], [0, 0, 1, 1], [], []>} : vector<1x128xf32>, vector<128x128xf32>, vector<1x128xf32> -> vector<1x128xf32>
    %40 = arith.mulf %38, %38 : vector<128x128xf32>
    %cst_74 = arith.constant dense<0.000000e+00> : vector<1x128xf32>
    %41 = tpu.matmul %6, %40, %cst_74 {dimension_numbers = #tpu.dot_dimension_numbers<[1], [0], [0], [1], [0, 0, 1, 1], [], []>} : vector<1x128xf32>, vector<128x128xf32>, vector<1x128xf32> -> vector<1x128xf32>
    %cst_75 = arith.constant 7.812500e-03 : f32
    %42 = vector.broadcast %cst_75 : f32 to vector<1x128xf32>
    %43 = arith.mulf %39, %42 : vector<1x128xf32>
    %cst_76 = arith.constant 7.812500e-03 : f32
    %44 = vector.broadcast %cst_76 : f32 to vector<1x128xf32>
    %45 = arith.mulf %41, %44 : vector<1x128xf32>
    %46 = arith.mulf %43, %43 : vector<1x128xf32>
    %47 = arith.subf %45, %46 : vector<1x128xf32>
    %c0_77 = arith.constant 0 : index
    %c0_78 = arith.constant 0 : index
    %48 = vector.load %arg3[%c0_77, %c0_78] : memref<1x128xf32, #tpu.memory_space<vmem>>, vector<1x128xf32>
    %cst_79 = arith.constant 9.99999974E-6 : f32
    %49 = vector.broadcast %cst_79 : f32 to vector<1x128xf32>
    %50 = arith.addf %47, %49 : vector<1x128xf32>
    %51 = math.rsqrt %50 : vector<1x128xf32>
    %52 = arith.mulf %48, %51 : vector<1x128xf32>
    %c0_80 = arith.constant 0 : index
    %c0_81 = arith.constant 0 : index
    %53 = vector.load %arg4[%c0_80, %c0_81] : memref<1x128xf32, #tpu.memory_space<vmem>>, vector<1x128xf32>
    %54 = arith.mulf %43, %52 : vector<1x128xf32>
    %55 = arith.subf %53, %54 : vector<1x128xf32>
    %56 = vector.broadcast %52 : vector<1x128xf32> to vector<128x128xf32>
    %57 = arith.mulf %38, %56 : vector<128x128xf32>
    %58 = vector.broadcast %55 : vector<1x128xf32> to vector<128x128xf32>
    %59 = arith.addf %57, %58 : vector<128x128xf32>
    %cst_82 = arith.constant 0.000000e+00 : f32
    %60 = vector.broadcast %cst_82 : f32 to vector<128x128xf32>
    %61 = arith.maximumf %59, %60 : vector<128x128xf32>
    %62 = vector.shape_cast %61 : vector<128x128xf32> to vector<2x8x8x128xf32>
    %c0_83 = arith.constant 0 : index
    %c1_84 = arith.constant 1 : index
    %c1_85 = arith.constant 1 : index
    %c0_86 = arith.constant 0 : index
    %63 = vector.load %arg9[%c0_83, %c1_84, %c1_85, %c0_86] : memref<2x10x10x128xf32, #tpu.memory_space<vmem>>, vector<2x8x8x128xf32>
    tpu.vector_store %arg9[%c0_83, %c1_84, %c1_85, %c0_86], %62 {strides = array<i32>} : memref<2x10x10x128xf32, #tpu.memory_space<vmem>>, vector<2x8x8x128xf32>,
    %c0_87 = arith.constant 0 : index
    %c0_88 = arith.constant 0 : index
    %c0_89 = arith.constant 0 : index
    %c0_90 = arith.constant 0 : index
    %64 = vector.load %arg9[%c0_87, %c0_88, %c0_89, %c0_90] : memref<2x10x10x128xf32, #tpu.memory_space<vmem>>, vector<2x8x8x128xf32>
    %65 = vector.shape_cast %64 : vector<2x8x8x128xf32> to vector<128x128xf32>
    %c0_91 = arith.constant 0 : index
    %c0_92 = arith.constant 0 : index
    %66 = vector.load %arg10[%c0_91, %c0_92] : memref<128x1152xf32, #tpu.memory_space<vmem>>, vector<128x128xf32>
    tpu.vector_store %arg10[%c0_91, %c0_92], %65 {strides = array<i32>} : memref<128x1152xf32, #tpu.memory_space<vmem>>, vector<128x128xf32>,
    %c0_93 = arith.constant 0 : index
    %c0_94 = arith.constant 0 : index
    %c1_95 = arith.constant 1 : index
    %c0_96 = arith.constant 0 : index
    %67 = vector.load %arg9[%c0_93, %c0_94, %c1_95, %c0_96] : memref<2x10x10x128xf32, #tpu.memory_space<vmem>>, vector<2x8x8x128xf32>
    %68 = vector.shape_cast %67 : vector<2x8x8x128xf32> to vector<128x128xf32>
    %c0_97 = arith.constant 0 : index
    %c128_98 = arith.constant 128 : index
    %69 = vector.load %arg10[%c0_97, %c128_98] : memref<128x1152xf32, #tpu.memory_space<vmem>>, vector<128x128xf32>
    tpu.vector_store %arg10[%c0_97, %c128_98], %68 {strides = array<i32>} : memref<128x1152xf32, #tpu.memory_space<vmem>>, vector<128x128xf32>,
    %c0_99 = arith.constant 0 : index
    %c0_100 = arith.constant 0 : index
    %c2_101 = arith.constant 2 : index
    %c0_102 = arith.constant 0 : index
    %70 = vector.load %arg9[%c0_99, %c0_100, %c2_101, %c0_102] : memref<2x10x10x128xf32, #tpu.memory_space<vmem>>, vector<2x8x8x128xf32>
    %71 = vector.shape_cast %70 : vector<2x8x8x128xf32> to vector<128x128xf32>
    %c0_103 = arith.constant 0 : index
    %c256_104 = arith.constant 256 : index
    %72 = vector.load %arg10[%c0_103, %c256_104] : memref<128x1152xf32, #tpu.memory_space<vmem>>, vector<128x128xf32>
    tpu.vector_store %arg10[%c0_103, %c256_104], %71 {strides = array<i32>} : memref<128x1152xf32, #tpu.memory_space<vmem>>, vector<128x128xf32>,
    %c0_105 = arith.constant 0 : index
    %c1_106 = arith.constant 1 : index
    %c0_107 = arith.constant 0 : index
    %c0_108 = arith.constant 0 : index
    %73 = vector.load %arg9[%c0_105, %c1_106, %c0_107, %c0_108] : memref<2x10x10x128xf32, #tpu.memory_space<vmem>>, vector<2x8x8x128xf32>
    %74 = vector.shape_cast %73 : vector<2x8x8x128xf32> to vector<128x128xf32>
    %c0_109 = arith.constant 0 : index
    %c384_110 = arith.constant 384 : index
    %75 = vector.load %arg10[%c0_109, %c384_110] : memref<128x1152xf32, #tpu.memory_space<vmem>>, vector<128x128xf32>
    tpu.vector_store %arg10[%c0_109, %c384_110], %74 {strides = array<i32>} : memref<128x1152xf32, #tpu.memory_space<vmem>>, vector<128x128xf32>,
    %c0_111 = arith.constant 0 : index
    %c1_112 = arith.constant 1 : index
    %c1_113 = arith.constant 1 : index
    %c0_114 = arith.constant 0 : index
    %76 = vector.load %arg9[%c0_111, %c1_112, %c1_113, %c0_114] : memref<2x10x10x128xf32, #tpu.memory_space<vmem>>, vector<2x8x8x128xf32>
    %77 = vector.shape_cast %76 : vector<2x8x8x128xf32> to vector<128x128xf32>
    %c0_115 = arith.constant 0 : index
    %c512_116 = arith.constant 512 : index
    %78 = vector.load %arg10[%c0_115, %c512_116] : memref<128x1152xf32, #tpu.memory_space<vmem>>, vector<128x128xf32>
    tpu.vector_store %arg10[%c0_115, %c512_116], %77 {strides = array<i32>} : memref<128x1152xf32, #tpu.memory_space<vmem>>, vector<128x128xf32>,
    %c0_117 = arith.constant 0 : index
    %c1_118 = arith.constant 1 : index
    %c2_119 = arith.constant 2 : index
    %c0_120 = arith.constant 0 : index
    %79 = vector.load %arg9[%c0_117, %c1_118, %c2_119, %c0_120] : memref<2x10x10x128xf32, #tpu.memory_space<vmem>>, vector<2x8x8x128xf32>
    %80 = vector.shape_cast %79 : vector<2x8x8x128xf32> to vector<128x128xf32>
    %c0_121 = arith.constant 0 : index
    %c640_122 = arith.constant 640 : index
    %81 = vector.load %arg10[%c0_121, %c640_122] : memref<128x1152xf32, #tpu.memory_space<vmem>>, vector<128x128xf32>
    tpu.vector_store %arg10[%c0_121, %c640_122], %80 {strides = array<i32>} : memref<128x1152xf32, #tpu.memory_space<vmem>>, vector<128x128xf32>,
    %c0_123 = arith.constant 0 : index
    %c2_124 = arith.constant 2 : index
    %c0_125 = arith.constant 0 : index
    %c0_126 = arith.constant 0 : index
    %82 = vector.load %arg9[%c0_123, %c2_124, %c0_125, %c0_126] : memref<2x10x10x128xf32, #tpu.memory_space<vmem>>, vector<2x8x8x128xf32>
    %83 = vector.shape_cast %82 : vector<2x8x8x128xf32> to vector<128x128xf32>
    %c0_127 = arith.constant 0 : index
    %c768_128 = arith.constant 768 : index
    %84 = vector.load %arg10[%c0_127, %c768_128] : memref<128x1152xf32, #tpu.memory_space<vmem>>, vector<128x128xf32>
    tpu.vector_store %arg10[%c0_127, %c768_128], %83 {strides = array<i32>} : memref<128x1152xf32, #tpu.memory_space<vmem>>, vector<128x128xf32>,
    %c0_129 = arith.constant 0 : index
    %c2_130 = arith.constant 2 : index
    %c1_131 = arith.constant 1 : index
    %c0_132 = arith.constant 0 : index
    %85 = vector.load %arg9[%c0_129, %c2_130, %c1_131, %c0_132] : memref<2x10x10x128xf32, #tpu.memory_space<vmem>>, vector<2x8x8x128xf32>
    %86 = vector.shape_cast %85 : vector<2x8x8x128xf32> to vector<128x128xf32>
    %c0_133 = arith.constant 0 : index
    %c896_134 = arith.constant 896 : index
    %87 = vector.load %arg10[%c0_133, %c896_134] : memref<128x1152xf32, #tpu.memory_space<vmem>>, vector<128x128xf32>
    tpu.vector_store %arg10[%c0_133, %c896_134], %86 {strides = array<i32>} : memref<128x1152xf32, #tpu.memory_space<vmem>>, vector<128x128xf32>,
    %c0_135 = arith.constant 0 : index
    %c2_136 = arith.constant 2 : index
    %c2_137 = arith.constant 2 : index
    %c0_138 = arith.constant 0 : index
    %88 = vector.load %arg9[%c0_135, %c2_136, %c2_137, %c0_138] : memref<2x10x10x128xf32, #tpu.memory_space<vmem>>, vector<2x8x8x128xf32>
    %89 = vector.shape_cast %88 : vector<2x8x8x128xf32> to vector<128x128xf32>
    %c0_139 = arith.constant 0 : index
    %c1024_140 = arith.constant 1024 : index
    %90 = vector.load %arg10[%c0_139, %c1024_140] : memref<128x1152xf32, #tpu.memory_space<vmem>>, vector<128x128xf32>
    tpu.vector_store %arg10[%c0_139, %c1024_140], %89 {strides = array<i32>} : memref<128x1152xf32, #tpu.memory_space<vmem>>, vector<128x128xf32>,
    %c0_141 = arith.constant 0 : index
    %c0_142 = arith.constant 0 : index
    %91 = vector.load %arg10[%c0_141, %c0_142] : memref<128x1152xf32, #tpu.memory_space<vmem>>, vector<128x1152xf32>
    %c0_143 = arith.constant 0 : index
    %c0_144 = arith.constant 0 : index
    %92 = vector.load %arg5[%c0_143, %c0_144] : memref<1152x128xf32, #tpu.memory_space<vmem>>, vector<1152x128xf32>
    %cst_145 = arith.constant dense<0.000000e+00> : vector<128x128xf32>
    %93 = tpu.matmul %91, %92, %cst_145 {dimension_numbers = #tpu.dot_dimension_numbers<[1], [0], [0], [1], [0, 0, 1, 1], [], []>} : vector<128x1152xf32>, vector<1152x128xf32>, vector<128x128xf32> -> vector<128x128xf32>
    %cst_146 = arith.constant dense<0.000000e+00> : vector<1x128xf32>
    %94 = tpu.matmul %6, %93, %cst_146 {dimension_numbers = #tpu.dot_dimension_numbers<[1], [0], [0], [1], [0, 0, 1, 1], [], []>} : vector<1x128xf32>, vector<128x128xf32>, vector<1x128xf32> -> vector<1x128xf32>
    %95 = arith.mulf %93, %93 : vector<128x128xf32>
    %cst_147 = arith.constant dense<0.000000e+00> : vector<1x128xf32>
    %96 = tpu.matmul %6, %95, %cst_147 {dimension_numbers = #tpu.dot_dimension_numbers<[1], [0], [0], [1], [0, 0, 1, 1], [], []>} : vector<1x128xf32>, vector<128x128xf32>, vector<1x128xf32> -> vector<1x128xf32>
    %cst_148 = arith.constant 7.812500e-03 : f32
    %97 = vector.broadcast %cst_148 : f32 to vector<1x128xf32>
    %98 = arith.mulf %94, %97 : vector<1x128xf32>
    %cst_149 = arith.constant 7.812500e-03 : f32
    %99 = vector.broadcast %cst_149 : f32 to vector<1x128xf32>
    %100 = arith.mulf %96, %99 : vector<1x128xf32>
    %101 = arith.mulf %98, %98 : vector<1x128xf32>
    %102 = arith.subf %100, %101 : vector<1x128xf32>
    %c0_150 = arith.constant 0 : index
    %c0_151 = arith.constant 0 : index
    %103 = vector.load %arg6[%c0_150, %c0_151] : memref<1x128xf32, #tpu.memory_space<vmem>>, vector<1x128xf32>
    %cst_152 = arith.constant 9.99999974E-6 : f32
    %104 = vector.broadcast %cst_152 : f32 to vector<1x128xf32>
    %105 = arith.addf %102, %104 : vector<1x128xf32>
    %106 = math.rsqrt %105 : vector<1x128xf32>
    %107 = arith.mulf %103, %106 : vector<1x128xf32>
    %c0_153 = arith.constant 0 : index
    %c0_154 = arith.constant 0 : index
    %108 = vector.load %arg7[%c0_153, %c0_154] : memref<1x128xf32, #tpu.memory_space<vmem>>, vector<1x128xf32>
    %109 = arith.mulf %98, %107 : vector<1x128xf32>
    %110 = arith.subf %108, %109 : vector<1x128xf32>
    %111 = vector.broadcast %107 : vector<1x128xf32> to vector<128x128xf32>
    %112 = arith.mulf %93, %111 : vector<128x128xf32>
    %113 = vector.broadcast %110 : vector<1x128xf32> to vector<128x128xf32>
    %114 = arith.addf %112, %113 : vector<128x128xf32>
    %115 = vector.shape_cast %7 : vector<2x8x8x128xf32> to vector<128x128xf32>
    %116 = arith.addf %114, %115 : vector<128x128xf32>
    %cst_155 = arith.constant 0.000000e+00 : f32
    %117 = vector.broadcast %cst_155 : f32 to vector<128x128xf32>
    %118 = arith.maximumf %116, %117 : vector<128x128xf32>
    %119 = vector.shape_cast %118 : vector<128x128xf32> to vector<2x8x8x128xf32>
    %c0_156 = arith.constant 0 : index
    %c0_157 = arith.constant 0 : index
    %c0_158 = arith.constant 0 : index
    %c0_159 = arith.constant 0 : index
    %120 = vector.load %arg8[%c0_156, %c0_157, %c0_158, %c0_159] : memref<2x8x8x128xf32, #tpu.memory_space<vmem>>, vector<2x8x8x128xf32>
    tpu.vector_store %arg8[%c0_156, %c0_157, %c0_158, %c0_159], %119 {strides = array<i32>} : memref<2x8x8x128xf32, #tpu.memory_space<vmem>>, vector<2x8x8x128xf32>,
    return
  }
  func.func @transform_0(%arg0: i32) -> (i32, i32, i32, i32) {
    %c0_i32 = arith.constant 0 : i32
    %c0_i32_0 = arith.constant 0 : i32
    %c0_i32_1 = arith.constant 0 : i32
    %c0_i32_2 = arith.constant 0 : i32
    %c0_i32_3 = arith.constant 0 : i32
    return %c0_i32, %c0_i32_0, %c0_i32_1, %c0_i32_2 : i32, i32, i32, i32
  }
  func.func @transform_1(%arg0: i32) -> (i32, i32) {
    %c0_i32 = arith.constant 0 : i32
    %c0_i32_0 = arith.constant 0 : i32
    %c0_i32_1 = arith.constant 0 : i32
    return %c0_i32, %c0_i32_0 : i32, i32
  }
  func.func @transform_2(%arg0: i32) -> (i32, i32) {
    %c0_i32 = arith.constant 0 : i32
    %c0_i32_0 = arith.constant 0 : i32
    %c0_i32_1 = arith.constant 0 : i32
    return %c0_i32, %c0_i32_0 : i32, i32
  }
  func.func @transform_3(%arg0: i32) -> (i32, i32) {
    %c0_i32 = arith.constant 0 : i32
    %c0_i32_0 = arith.constant 0 : i32
    %c0_i32_1 = arith.constant 0 : i32
    return %c0_i32, %c0_i32_0 : i32, i32
  }
  func.func @transform_4(%arg0: i32) -> (i32, i32) {
    %c0_i32 = arith.constant 0 : i32
    %c0_i32_0 = arith.constant 0 : i32
    %c0_i32_1 = arith.constant 0 : i32
    return %c0_i32, %c0_i32_0 : i32, i32
  }
  func.func @transform_5(%arg0: i32) -> (i32, i32) {
    %c0_i32 = arith.constant 0 : i32
    %c0_i32_0 = arith.constant 0 : i32
    %c0_i32_1 = arith.constant 0 : i32
    return %c0_i32, %c0_i32_0 : i32, i32
  }
  func.func @transform_6(%arg0: i32) -> (i32, i32) {
    %c0_i32 = arith.constant 0 : i32
    %c0_i32_0 = arith.constant 0 : i32
    %c0_i32_1 = arith.constant 0 : i32
    return %c0_i32, %c0_i32_0 : i32, i32
  }
  func.func @transform_7(%arg0: i32) -> (i32, i32, i32, i32) {
    %c0_i32 = arith.constant 0 : i32
    %c0_i32_0 = arith.constant 0 : i32
    %c0_i32_1 = arith.constant 0 : i32
    %c0_i32_2 = arith.constant 0 : i32
    %c0_i32_3 = arith.constant 0 : i32
    return %c0_i32, %c0_i32_0, %c0_i32_1, %c0_i32_2 : i32, i32, i32, i32
  }
}

</mosaic_0001>

<bundles_post_ra>
// kernel: residual_basic_block.1
= control target key start
LH: loop header
LB: loop body
LE: loop exit
PB: predicated region body
PF: predicated region fallthrough
CT: control target
= control target key end

     0   :  { %v6347_v3 = vmov 0.0   ;;  %vm4249_vm0 = vmmov 0   ;;  %s6339_s1 = inlined_call_operand.vmem [shape: f32[1152,128], index: 1, kind: input, shape index: {}]   ;;  %s6340_s0 = inlined_call_operand.vmem [shape: f32[2,8,8,128], index: 0, kind: input, shape index: {}]   ;;  %s6341_s4 = inlined_call_operand.vmem [shape: f32[1152,128], index: 4, kind: input, shape index: {}]   ;;  %s6342_s2 = inlined_call_operand.vmem [shape: f32[1,128], index: 2, kind: input, shape index: {}]   ;;  %s6343_s3 = inlined_call_operand.vmem [shape: f32[1,128], index: 3, kind: input, shape index: {}]   ;;  %s6344_s5 = inlined_call_operand.vmem [shape: f32[1,128], index: 5, kind: input, shape index: {}]   ;;  %s6345_s6 = inlined_call_operand.vmem [shape: f32[1,128], index: 6, kind: input, shape index: {}]   ;;  %s6346_s7 = inlined_call_operand.vmem [shape: f32[2,8,8,128], index: 7, kind: output, shape index: {}]  }
   0x1   :  { %v572_v0 = vld [vmem:[%s6339_s1 + $0xf8] sm:$0xff]  ;;  %26 = vst [vmem:[#allocation2] sm:$0xff] %v6347_v3  ;;  %27 = vst [vmem:[#allocation2 + $0x8] sm:$0x3] %v6347_v3  ;;  %v571_v5 = vld [vmem:[%s6339_s1 + $0xf0] sm:$0xff] }
   0x2   :  { %v604_v1 = vld [vmem:[%s6339_s1 + $0x1f8] sm:$0xff]  ;;  %28 = vst [vmem:[#allocation2 + $0xa0] sm:$0xff] %v6347_v3  ;;  %29 = vst [vmem:[#allocation2 + $0xa8] sm:$0x3] %v6347_v3  ;;  %3217 = vmatprep.subr.mxu0 %v572_v0  ;;  %v603_v6 = vld [vmem:[%s6339_s1 + $0x1f0] sm:$0xff] }
   0x3   :  { %v556_v2 = vld [vmem:[%s6339_s1 + $0x78] sm:$0xff]  ;;  %31 = vst [vmem:[#allocation2 + $0x90] sm:$0xff] %v6347_v3  ;;  %32 = vst [vmem:[#allocation2 + $0x98] sm:$0x3] %v6347_v3  ;;  %3297 = vmatprep.subr.mxu1 %v604_v1  ;;  %v555_v7 = vld [vmem:[%s6339_s1 + $0x70] sm:$0xff] }
   0x4   :  { %33 = vst [vmem:[#allocation2 + $0x130] sm:$0xff] %v6347_v3  ;;  %34 = vst [vmem:[#allocation2 + $0x138] sm:$0x3] %v6347_v3  ;;  %v588_v4 = vld [vmem:[%s6339_s1 + $0x178] sm:$0xff]  ;;  %3218 = vmatpush3.msra.mxu0 %v556_v2  ;;  %v587_v8 = vld [vmem:[%s6339_s1 + $0x170] sm:$0xff] }
   0x5   :  { %36 = vst [vmem:[#allocation2 + $0x10] sm:$0x1] %v6347_v3  ;;  %37 = vst [vmem:[#allocation2 + $0x20] sm:$0x1] %v6347_v3  ;;  %3298 = vmatpush3.msra.mxu1 %v588_v4  ;;  %v570_v9 = vld [vmem:[%s6339_s1 + $0xe8] sm:$0xff]  ;;  %3219 = vmatprep.subr.mxu0 %v571_v5  ;;  %v569_v13 = vld [vmem:[%s6339_s1 + $0xe0] sm:$0xff] }
   0x6   :  { %38 = vst [vmem:[#allocation2 + $0x30] sm:$0x1] %v6347_v3  ;;  %39 = vst [vmem:[#allocation2 + $0x40] sm:$0x1] %v6347_v3  ;;  %3299 = vmatprep.subr.mxu1 %v603_v6  ;;  %v602_v10 = vld [vmem:[%s6339_s1 + $0x1e8] sm:$0xff]  ;;  %3220 = vmatpush3.msra.mxu0 %v555_v7  ;;  %v601_v14 = vld [vmem:[%s6339_s1 + $0x1e0] sm:$0xff] }
   0x7   :  { %40 = vst [vmem:[#allocation2 + $0x50] sm:$0x1] %v6347_v3  ;;  %41 = vst [vmem:[#allocation2 + $0x60] sm:$0x1] %v6347_v3  ;;  %v554_v11 = vld [vmem:[%s6339_s1 + $0x68] sm:$0xff]  ;;  %3300 = vmatpush3.msra.mxu1 %v587_v8  ;;  %3221 = vmatprep.subr.mxu0 %v570_v9  ;;  %v553_v15 = vld [vmem:[%s6339_s1 + $0x60] sm:$0xff] }
   0x8   :  { %42 = vst [vmem:[#allocation2 + $0x70] sm:$0x1] %v6347_v3  ;;  %43 = vst [vmem:[#allocation2 + $0x80] sm:$0x1] %v6347_v3  ;;  %v586_v12 = vld [vmem:[%s6339_s1 + $0x168] sm:$0xff]  ;;  %3301 = vmatprep.subr.mxu1 %v602_v10  ;;  %v585_v16 = vld [vmem:[%s6339_s1 + $0x160] sm:$0xff]  ;;  %3222 = vmatpush3.msra.mxu0 %v554_v11 }
   0x9   :  { %46 = vst [vmem:[#allocation2 + $0xb0] sm:$0x1] %v6347_v3  ;;  %47 = vst [vmem:[#allocation2 + $0xc0] sm:$0x1] %v6347_v3  ;;  %3302 = vmatpush3.msra.mxu1 %v586_v12  ;;  %v568_v17 = vld [vmem:[%s6339_s1 + $0xd8] sm:$0xff]  ;;  %3223 = vmatprep.subr.mxu0 %v569_v13  ;;  %v567_v21 = vld [vmem:[%s6339_s1 + $0xd0] sm:$0xff] }
   0xa   :  { %48 = vst [vmem:[#allocation2 + $0xd0] sm:$0x1] %v6347_v3  ;;  %49 = vst [vmem:[#allocation2 + $0xe0] sm:$0x1] %v6347_v3  ;;  %v600_v18 = vld [vmem:[%s6339_s1 + $0x1d8] sm:$0xff]  ;;  %3303 = vmatprep.subr.mxu1 %v601_v14  ;;  %3224 = vmatpush3.msra.mxu0 %v553_v15  ;;  %v599_v22 = vld [vmem:[%s6339_s1 + $0x1d0] sm:$0xff] }
   0xb   :  { %50 = vst [vmem:[#allocation2 + $0xf0] sm:$0x1] %v6347_v3  ;;  %51 = vst [vmem:[#allocation2 + $0x100] sm:$0x1] %v6347_v3  ;;  %v552_v19 = vld [vmem:[%s6339_s1 + $0x58] sm:$0xff]  ;;  %3304 = vmatpush3.msra.mxu1 %v585_v16  ;;  %3225 = vmatprep.subr.mxu0 %v568_v17  ;;  %v551_v23 = vld [vmem:[%s6339_s1 + $0x50] sm:$0xff] }
   0xc   :  { %52 = vst [vmem:[#allocation2 + $0x110] sm:$0x1] %v6347_v3  ;;  %53 = vst [vmem:[#allocation2 + $0x120] sm:$0x1] %v6347_v3  ;;  %v584_v20 = vld [vmem:[%s6339_s1 + $0x158] sm:$0xff]  ;;  %3305 = vmatprep.subr.mxu1 %v600_v18  ;;  %v583_v24 = vld [vmem:[%s6339_s1 + $0x150] sm:$0xff]  ;;  %3226 = vmatpush3.msra.mxu0 %v552_v19 }
   0xd   :  { %56 = vst [vmem:[#allocation2 + $0x19] sm:$0x1] %v6347_v3  ;;  %57 = vst [vmem:[#allocation2 + $0x29] sm:$0x1] %v6347_v3  ;;  %3306 = vmatpush3.msra.mxu1 %v584_v20  ;;  %v566_v25 = vld [vmem:[%s6339_s1 + $0xc8] sm:$0xff]  ;;  %3227 = vmatprep.subr.mxu0 %v567_v21  ;;  %v565_v29 = vld [vmem:[%s6339_s1 + $0xc0] sm:$0xff] }
   0xe   :  { %58 = vst [vmem:[#allocation2 + $0x39] sm:$0x1] %v6347_v3  ;;  %59 = vst [vmem:[#allocation2 + $0x49] sm:$0x1] %v6347_v3  ;;  %v598_v26 = vld [vmem:[%s6339_s1 + $0x1c8] sm:$0xff]  ;;  %3307 = vmatprep.subr.mxu1 %v599_v22  ;;  %3228 = vmatpush3.msra.mxu0 %v551_v23  ;;  %v597_v30 = vld [vmem:[%s6339_s1 + $0x1c0] sm:$0xff] }
   0xf   :  { %60 = vst [vmem:[#allocation2 + $0x59] sm:$0x1] %v6347_v3  ;;  %61 = vst [vmem:[#allocation2 + $0x69] sm:$0x1] %v6347_v3  ;;  %v550_v27 = vld [vmem:[%s6339_s1 + $0x48] sm:$0xff]  ;;  %3308 = vmatpush3.msra.mxu1 %v583_v24  ;;  %3229 = vmatprep.subr.mxu0 %v566_v25  ;;  %v549_v31 = vld [vmem:[%s6339_s1 + $0x40] sm:$0xff] }
  0x10   :  { %62 = vst [vmem:[#allocation2 + $0x79] sm:$0x1] %v6347_v3  ;;  %63 = vst [vmem:[#allocation2 + $0x89] sm:$0x1] %v6347_v3  ;;  %v582_v28 = vld [vmem:[%s6339_s1 + $0x148] sm:$0xff]  ;;  %3309 = vmatprep.subr.mxu1 %v598_v26  ;;  %v581_v32 = vld [vmem:[%s6339_s1 + $0x140] sm:$0xff]  ;;  %3230 = vmatpush3.msra.mxu0 %v550_v27 }
  0x11   :  { %66 = vst [vmem:[#allocation2 + $0xb9] sm:$0x1] %v6347_v3  ;;  %67 = vst [vmem:[#allocation2 + $0xc9] sm:$0x1] %v6347_v3  ;;  %3310 = vmatpush3.msra.mxu1 %v582_v28  ;;  %v564_v33 = vld [vmem:[%s6339_s1 + $0xb8] sm:$0xff]  ;;  %3231 = vmatprep.subr.mxu0 %v565_v29  ;;  %v563_v37 = vld [vmem:[%s6339_s1 + $0xb0] sm:$0xff] }
  0x12   :  { %68 = vst [vmem:[#allocation2 + $0xd9] sm:$0x1] %v6347_v3  ;;  %69 = vst [vmem:[#allocation2 + $0xe9] sm:$0x1] %v6347_v3  ;;  %v596_v34 = vld [vmem:[%s6339_s1 + $0x1b8] sm:$0xff]  ;;  %3311 = vmatprep.subr.mxu1 %v597_v30  ;;  %3232 = vmatpush3.msra.mxu0 %v549_v31  ;;  %v595_v38 = vld [vmem:[%s6339_s1 + $0x1b0] sm:$0xff] }
  0x13   :  { %70 = vst [vmem:[#allocation2 + $0xf9] sm:$0x1] %v6347_v3  ;;  %71 = vst [vmem:[#allocation2 + $0x109] sm:$0x1] %v6347_v3  ;;  %v548_v35 = vld [vmem:[%s6339_s1 + $0x38] sm:$0xff]  ;;  %3312 = vmatpush3.msra.mxu1 %v581_v32  ;;  %3233 = vmatprep.subr.mxu0 %v564_v33  ;;  %v547_v39 = vld [vmem:[%s6339_s1 + $0x30] sm:$0xff] }
  0x14   :  { %72 = vst [vmem:[#allocation2 + $0x119] sm:$0x1] %v6347_v3  ;;  %73 = vst [vmem:[#allocation2 + $0x129] sm:$0x1] %v6347_v3  ;;  %v580_v36 = vld [vmem:[%s6339_s1 + $0x138] sm:$0xff]  ;;  %3313 = vmatprep.subr.mxu1 %v596_v34  ;;  %v579_v40 = vld [vmem:[%s6339_s1 + $0x130] sm:$0xff]  ;;  %3234 = vmatpush3.msra.mxu0 %v548_v35 }
  0x15   :  { %35 = vst [vmem:[#allocation2] sm:$0x1] %v6347_v3  ;;  %55 = vst [vmem:[#allocation2 + $0x9] sm:$0x1] %v6347_v3  ;;  %v562_v41 = vld [vmem:[%s6339_s1 + $0xa8] sm:$0xff]  ;;  %3314 = vmatpush3.msra.mxu1 %v580_v36  ;;  %3235 = vmatprep.subr.mxu0 %v563_v37  ;;  %v561_v45 = vld [vmem:[%s6339_s1 + $0xa0] sm:$0xff] }
  0x16   :  { %44 = vst [vmem:[#allocation2 + $0x90] sm:$0x1] %v6347_v3  ;;  %45 = vst [vmem:[#allocation2 + $0xa0] sm:$0x1] %v6347_v3  ;;  %v594_v42 = vld [vmem:[%s6339_s1 + $0x1a8] sm:$0xff]  ;;  %3315 = vmatprep.subr.mxu1 %v595_v38  ;;  %v593_v46 = vld [vmem:[%s6339_s1 + $0x1a0] sm:$0xff]  ;;  %3236 = vmatpush3.msra.mxu0 %v547_v39 }
  0x17   :  { %54 = vst [vmem:[#allocation2 + $0x130] sm:$0x1] %v6347_v3  ;;  %64 = vst [vmem:[#allocation2 + $0x99] sm:$0x1] %v6347_v3  ;;  %v546_v43 = vld [vmem:[%s6339_s1 + $0x28] sm:$0xff]  ;;  %v545_v47 = vld [vmem:[%s6339_s1 + $0x20] sm:$0xff]  ;;  %3316 = vmatpush3.msra.mxu1 %v579_v40  ;;  %3237 = vmatprep.subr.mxu0 %v562_v41 }
  0x18   :  { %65 = vst [vmem:[#allocation2 + $0xa9] sm:$0x1] %v6347_v3  ;;  %74 = vst [vmem:[#allocation2 + $0x139] sm:$0x1] %v6347_v3  ;;  %v578_v44 = vld [vmem:[%s6339_s1 + $0x128] sm:$0xff]  ;;  %v577_v48 = vld [vmem:[%s6339_s1 + $0x120] sm:$0xff]  ;;  %3317 = vmatprep.subr.mxu1 %v594_v42  ;;  %3238 = vmatpush3.msra.mxu0 %v546_v43 }
  0x19   :  { %v560_v49 = vld [vmem:[%s6339_s1 + $0x98] sm:$0xff]  ;;  %v4498_v53 = vld [vmem:[%s6340_s0] sm:$0xff]  ;;  %3318 = vmatpush3.msra.mxu1 %v578_v44  ;;  %v559_v54 = vld [vmem:[%s6339_s1 + $0x90] sm:$0xff]  ;;  %3239 = vmatprep.subr.mxu0 %v561_v45 }
  0x1a   :  { %v592_v50 = vld [vmem:[%s6339_s1 + $0x198] sm:$0xff]  ;;  %6369 = vst [vmem:[#allocation4_spill] sm:$0xff] %v4498_v53  ;;  %v591_v55 = vld [vmem:[%s6339_s1 + $0x190] sm:$0xff]  ;;  %92 = vst [vmem:[#allocation2 + $0x11] sm:$0xff] %v4498_v53  ;;  %3319 = vmatprep.subr.mxu1 %v593_v46  ;;  %3240 = vmatpush3.msra.mxu0 %v545_v47 }
  0x1b   :  { %v544_v51 = vld [vmem:[%s6339_s1 + $0x18] sm:$0xff]  ;;  %v4510_v56 = vld [vmem:[%s6340_s0 + $0x8] sm:$0xff]  ;;  %v4516_v57 = vld [vmem:[%s6340_s0 + $0x10] sm:$0xff]  ;;  %3320 = vmatpush3.msra.mxu1 %v577_v48  ;;  %3241 = vmatprep.subr.mxu0 %v560_v49 }
  0x1c   :  { %v576_v52 = vld [vmem:[%s6339_s1 + $0x118] sm:$0xff]  ;;  %6370 = vst [vmem:[#allocation5_spill] sm:$0xff] %v4510_v56  ;;  %93 = vst [vmem:[#allocation2 + $0x21] sm:$0xff] %v4510_v56  ;;  %v4526_v59 = vld [vmem:[%s6340_s0 + $0x20] sm:$0xff]  ;;  %3321 = vmatprep.subr.mxu1 %v592_v50  ;;  %3242 = vmatpush3.msra.mxu0 %v544_v51 }
  0x1d   :  { %6371 = vst [vmem:[#allocation6_spill] sm:$0xff] %v4516_v57  ;;  %v4521_v58 = vld [vmem:[%s6340_s0 + $0x18] sm:$0xff]  ;;  %6373 = vst [vmem:[#allocation8_spill] sm:$0xff] %v4526_v59  ;;  %v4534_v60 = vld [vmem:[%s6340_s0 + $0x28] sm:$0xff]  ;;  %3322 = vmatpush3.msra.mxu1 %v576_v52  ;;  %3243 = vmatprep.subr.mxu0 %v559_v54 }
  0x1e   :  { %6372 = vst [vmem:[#allocation7_spill] sm:$0xff] %v4521_v58  ;;  %94 = vst [vmem:[#allocation2 + $0x31] sm:$0xff] %v4516_v57  ;;  %v4539_v61 = vld [vmem:[%s6340_s0 + $0x30] sm:$0xff]  ;;  %v4544_v62 = vld [vmem:[%s6340_s0 + $0x38] sm:$0xff]  ;;  %3323 = vmatprep.subr.mxu1 %v591_v55 }
  0x1f   :  { %95 = vst [vmem:[#allocation2 + $0x41] sm:$0xff] %v4521_v58  ;;  %96 = vst [vmem:[#allocation2 + $0x51] sm:$0xff] %v4526_v59  ;;  %v543_v63 = vld [vmem:[%s6339_s1 + $0x10] sm:$0xff]  ;;  %v4558_v1 = vld [vmem:[%s6340_s0 + $0x40] sm:$0xff] }
  0x20   :  { %6374 = vst [vmem:[#allocation9_spill] sm:$0xff] %v4534_v60  ;;  %6375 = vst [vmem:[#allocation10_spill] sm:$0xff] %v4539_v61  ;;  %v575_v0 = vld [vmem:[%s6339_s1 + $0x110] sm:$0xff]  ;;  %v558_v2 = vld [vmem:[%s6339_s1 + $0x88] sm:$0xff]  ;;  %3244 = vmatpush3.msra.mxu0 %v543_v63 }
  0x21   :  { %6376 = vst [vmem:[#allocation11_spill] sm:$0xff] %v4544_v62  ;;  %97 = vst [vmem:[#allocation2 + $0x61] sm:$0xff] %v4534_v60  ;;  %v590_v4 = vld [vmem:[%s6339_s1 + $0x188] sm:$0xff]  ;;  %3324 = vmatpush3.msra.mxu1 %v575_v0  ;;  %v557_v8 = vld [vmem:[%s6339_s1 + $0x80] sm:$0xff]  ;;  %3245 = vmatprep.subr.mxu0 %v558_v2 }
  0x22   :  { %98 = vst [vmem:[#allocation2 + $0x71] sm:$0xff] %v4539_v61  ;;  %99 = vst [vmem:[#allocation2 + $0x81] sm:$0xff] %v4544_v62  ;;  %v542_v5 = vld [vmem:[%s6339_s1 + $0x8] sm:$0xff]  ;;  %v589_v9 = vld [vmem:[%s6339_s1 + $0x180] sm:$0xff]  ;;  %3325 = vmatprep.subr.mxu1 %v590_v4 }
  0x23   :  { %6377 = vst [vmem:[#allocation12_spill] sm:$0xff] %v4558_v1  ;;  %100 = vst [vmem:[#allocation2 + $0xb1] sm:$0xff] %v4558_v1  ;;  %v574_v6 = vld [vmem:[%s6339_s1 + $0x108] sm:$0xff]  ;;  %v541_v10 = vld [vmem:[%s6339_s1] sm:$0xff]  ;;  %3246 = vmatpush3.msra.mxu0 %v542_v5 }
  0x24   :  { %v4576_v7 = vld [vmem:[%s6340_s0 + $0x48] sm:$0xff]  ;;  %3326 = vmatpush3.msra.mxu1 %v574_v6  ;;  %v573_v12 = vld [vmem:[%s6339_s1 + $0x100] sm:$0xff]  ;;  %v204_v13 = vld [vmem:[#allocation2 + $0x10] sm:$0xff]  ;;  %3247 = vmatprep.subr.mxu0 %v557_v8 }
  0x25   :  { %6378 = vst [vmem:[#allocation13_spill] sm:$0xff] %v4576_v7  ;;  %101 = vst [vmem:[#allocation2 + $0xc1] sm:$0xff] %v4576_v7  ;;  %v140_v11 = vld [vmem:[#allocation2 + $0x1] sm:$0xff]  ;;  %3327 = vmatprep.subr.mxu1 %v589_v9  ;;  %3248 = vmatpush3.msra.mxu0 %v541_v10  ;;  %v636_v17 = vld [vmem:[%s6339_s1 + $0x2f8] sm:$0xff] }
  0x26   :  { %v108_v14 = vld [vmem:[#allocation2] sm:$0xff]  ;;  %749 = vmatprep.mubr.f32.mxu0 %v140_v11  ;;  %3328 = vmatpush3.msra.mxu1 %v573_v12  ;;  %v668_v18 = vld [vmem:[%s6339_s1 + $0x3f8] sm:$0xff]  ;;  %v4609_v22 = vld [vmem:[#allocation2 + $0x30] sm:$0xff] }
  0x27   :  { %v172_v15 = vld [vmem:[#allocation2 + $0x2] sm:$0xff]  ;;  %894 = vmatprep.mubr.f32.mxu1 %v204_v13  ;;  %750 = vmatmul.mubr.f32.vlgmr.msra.gmra.mxu0 %v108_v14  ;;  %v620_v19 = vld [vmem:[%s6339_s1 + $0x278] sm:$0xff]  ;;  %v4614_v23 = vld [vmem:[%s6340_s0 + $0x50] sm:$0xff] }
  0x28   :  { %v4591_v16 = vld [vmem:[#allocation2 + $0x20] sm:$0xff]  ;;  %895 = vmatmul.mubr.f32.vlgmr.msra.gmra.mxu1 %v172_v15  ;;  %v652_v20 = vld [vmem:[%s6339_s1 + $0x378] sm:$0xff]  ;;  %754 = vmatprep.mubr.f32.mxu0 %v4498_v53  ;;  %6379 = vst [vmem:[#allocation14_spill] sm:$0xff] %v4614_v23  ;;  %v635_v24 = vld [vmem:[%s6339_s1 + $0x2f0] sm:$0xff] }
  0x29   :  { %899 = vmatprep.mubr.f32.mxu1 %v4591_v16  ;;  %v4607_v21 = vld [vmem:[#allocation2 + $0x12] sm:$0xff]  ;;  %3377 = vmatprep.subr.mxu0 %v636_v17  ;;  %102 = vst [vmem:[#allocation2 + $0xd1] sm:$0xff] %v4614_v23  ;;  %v4632_v28 = vld [vmem:[#allocation2 + $0x22] sm:$0xff] }
  0x2a   :  { %3457 = vmatprep.subr.mxu1 %v668_v18  ;;  %3378 = vmatpush3.msra.mxu0 %v620_v19  ;;  %v667_v25 = vld [vmem:[%s6339_s1 + $0x3f0] sm:$0xff]  ;;  %v4634_v29 = vld [vmem:[#allocation2 + $0x40] sm:$0xff]  ;;  %v4639_v30 = vld [vmem:[%s6340_s0 + $0x58] sm:$0xff] }
  0x2b   :  { %3458 = vmatpush3.msra.mxu1 %v652_v20  ;;  %755 = vmatmul.mubr.f32.gmra.mxu0 %v204_v13  ;;  %v619_v26 = vld [vmem:[%s6339_s1 + $0x270] sm:$0xff]  ;;  %6380 = vst [vmem:[#allocation15_spill] sm:$0xff] %v4639_v30  ;;  %v634_v31 = vld [vmem:[%s6339_s1 + $0x2e8] sm:$0xff]  ;;  %103 = vst [vmem:[#allocation2 + $0xe1] sm:$0xff] %v4639_v30 }
  0x2c   :  { %900 = vmatmul.mubr.f32.gmra.mxu1 %v4607_v21  ;;  %v651_v27 = vld [vmem:[%s6339_s1 + $0x370] sm:$0xff]  ;;  %759 = vmatprep.mubr.f32.mxu0 %v4510_v56  ;;  %v666_v32 = vld [vmem:[%s6339_s1 + $0x3e8] sm:$0xff]  ;;  %v4663_v36 = vld [vmem:[%s6340_s0 + $0x60] sm:$0xff] }
  0x2d   :  { %904 = vmatprep.mubr.f32.mxu1 %v4609_v22  ;;  %3379 = vmatprep.subr.mxu0 %v635_v24  ;;  %v618_v33 = vld [vmem:[%s6339_s1 + $0x268] sm:$0xff]  ;;  %v4658_v35 = vld [vmem:[#allocation2 + $0x32] sm:$0xff]  ;;  %6381 = vst [vmem:[#allocation16_spill] sm:$0xff] %v4663_v36  ;;  %104 = vst [vmem:[#allocation2 + $0xf1] sm:$0xff] %v4663_v36 }
  0x2e   :  { %3459 = vmatprep.subr.mxu1 %v667_v25  ;;  %3380 = vmatpush3.msra.mxu0 %v619_v26  ;;  %v650_v34 = vld [vmem:[%s6339_s1 + $0x368] sm:$0xff]  ;;  %v4665_v37 = vld [vmem:[#allocation2 + $0x50] sm:$0xff]  ;;  %v633_v38 = vld [vmem:[%s6339_s1 + $0x2e0] sm:$0xff] }
  0x2f   :  { %3460 = vmatpush3.msra.mxu1 %v651_v27  ;;  %760 = vmatmul.mubr.f32.gmra.mxu0 %v4591_v16  ;;  %v665_v39 = vld [vmem:[%s6339_s1 + $0x3e0] sm:$0xff]  ;;  %v4685_v42 = vld [vmem:[%s6340_s0 + $0x68] sm:$0xff]  ;;  %v632_v45 = vld [vmem:[%s6339_s1 + $0x2d8] sm:$0xff] }
  0x30   :  { %905 = vmatmul.mubr.f32.gmra.mxu1 %v4632_v28  ;;  %764 = vmatprep.mubr.f32.mxu0 %v4516_v57  ;;  %v617_v40 = vld [vmem:[%s6339_s1 + $0x260] sm:$0xff]  ;;  %6382 = vst [vmem:[#allocation17_spill] sm:$0xff] %v4685_v42  ;;  %105 = vst [vmem:[#allocation2 + $0x101] sm:$0xff] %v4685_v42  ;;  %v664_v46 = vld [vmem:[%s6339_s1 + $0x3d8] sm:$0xff] }
  0x31   :  { %909 = vmatprep.mubr.f32.mxu1 %v4634_v29  ;;  %3381 = vmatprep.subr.mxu0 %v634_v31  ;;  %v649_v41 = vld [vmem:[%s6339_s1 + $0x360] sm:$0xff]  ;;  %v616_v47 = vld [vmem:[%s6339_s1 + $0x258] sm:$0xff]  ;;  %v4711_v49 = vld [vmem:[%s6340_s0 + $0x70] sm:$0xff] }
  0x32   :  { %3461 = vmatprep.subr.mxu1 %v666_v32  ;;  %3382 = vmatpush3.msra.mxu0 %v618_v33  ;;  %v4689_v43 = vld [vmem:[#allocation2 + $0x42] sm:$0xff]  ;;  %v648_v48 = vld [vmem:[%s6339_s1 + $0x358] sm:$0xff]  ;;  %6383 = vst [vmem:[#allocation18_spill] sm:$0xff] %v4711_v49  ;;  %106 = vst [vmem:[#allocation2 + $0x111] sm:$0xff] %v4711_v49 }
  0x33   :  { %3462 = vmatpush3.msra.mxu1 %v650_v34  ;;  %765 = vmatmul.mubr.f32.gmra.mxu0 %v4609_v22  ;;  %v4692_v44 = vld [vmem:[#allocation2 + $0x60] sm:$0xff]  ;;  %v4715_v50 = vld [vmem:[#allocation2 + $0x52] sm:$0xff]  ;;  %v630_v5 = vld [vmem:[%s6339_s1 + $0x2c8] sm:$0xff] }
  0x34   :  { %910 = vmatmul.mubr.f32.gmra.mxu1 %v4658_v35  ;;  %769 = vmatprep.mubr.f32.mxu0 %v4521_v58  ;;  %v4718_v51 = vld [vmem:[#allocation2 + $0x70] sm:$0xff]  ;;  %v4737_v0 = vld [vmem:[%s6340_s0 + $0x78] sm:$0xff]  ;;  %v4741_v2 = vld [vmem:[#allocation2 + $0x62] sm:$0xff] }
  0x35   :  { %914 = vmatprep.mubr.f32.mxu1 %v4665_v37  ;;  %3383 = vmatprep.subr.mxu0 %v633_v38  ;;  %v631_v52 = vld [vmem:[%s6339_s1 + $0x2d0] sm:$0xff]  ;;  %6384 = vst [vmem:[#allocation19_spill] sm:$0xff] %v4737_v0  ;;  %107 = vst [vmem:[#allocation2 + $0x121] sm:$0xff] %v4737_v0  ;;  %v4744_v4 = vld [vmem:[#allocation2 + $0x80] sm:$0xff] }
  0x36   :  { %3463 = vmatprep.subr.mxu1 %v665_v39  ;;  %3384 = vmatpush3.msra.mxu0 %v617_v40  ;;  %v663_v54 = vld [vmem:[%s6339_s1 + $0x3d0] sm:$0xff]  ;;  %v662_v6 = vld [vmem:[%s6339_s1 + $0x3c8] sm:$0xff]  ;;  %v629_v13 = vld [vmem:[%s6339_s1 + $0x2c0] sm:$0xff] }
  0x37   :  { %3464 = vmatpush3.msra.mxu1 %v649_v41  ;;  %770 = vmatmul.mubr.f32.gmra.mxu0 %v4634_v29  ;;  %v615_v55 = vld [vmem:[%s6339_s1 + $0x250] sm:$0xff]  ;;  %v614_v8 = vld [vmem:[%s6339_s1 + $0x248] sm:$0xff]  ;;  %v661_v14 = vld [vmem:[%s6339_s1 + $0x3c0] sm:$0xff] }
  0x38   :  { %915 = vmatmul.mubr.f32.gmra.mxu1 %v4689_v43  ;;  %774 = vmatprep.mubr.f32.mxu0 %v4526_v59  ;;  %v647_v63 = vld [vmem:[%s6339_s1 + $0x350] sm:$0xff]  ;;  %v646_v9 = vld [vmem:[%s6339_s1 + $0x348] sm:$0xff]  ;;  %v613_v15 = vld [vmem:[%s6339_s1 + $0x240] sm:$0xff] }
  0x39   :  { %919 = vmatprep.mubr.f32.mxu1 %v4692_v44  ;;  %3385 = vmatprep.subr.mxu0 %v632_v45  ;;  %v4762_v10 = vld [vmem:[#allocation2 + $0x72] sm:$0xff]  ;;  %v148_v11 = vld [vmem:[#allocation2 + $0xa1] sm:$0xff] }
  0x3a   :  { %3465 = vmatprep.subr.mxu1 %v664_v46  ;;  %3386 = vmatpush3.msra.mxu0 %v616_v47  ;;  %v212_v12 = vld [vmem:[#allocation2 + $0xb0] sm:$0xff]  ;;  %v645_v17 = vld [vmem:[%s6339_s1 + $0x340] sm:$0xff]  ;;  %v628_v24 = vld [vmem:[%s6339_s1 + $0x2b8] sm:$0xff] }
  0x3b   :  { %3466 = vmatpush3.msra.mxu1 %v648_v48  ;;  %775 = vmatmul.mubr.f32.gmra.mxu0 %v4665_v37  ;;  %v116_v18 = vld [vmem:[#allocation2 + $0xa0] sm:$0xff]  ;;  %v660_v25 = vld [vmem:[%s6339_s1 + $0x3b8] sm:$0xff]  ;;  %v4796_v32 = vld [vmem:[#allocation2 + $0xd0] sm:$0xff] }
  0x3c   :  { %920 = vmatmul.mubr.f32.gmra.mxu1 %v4715_v50  ;;  %779 = vmatprep.mubr.f32.mxu0 %v4534_v60  ;;  %v180_v19 = vld [vmem:[#allocation2 + $0xa2] sm:$0xff]  ;;  %v612_v26 = vld [vmem:[%s6339_s1 + $0x238] sm:$0xff]  ;;  %v627_v33 = vld [vmem:[%s6339_s1 + $0x2b0] sm:$0xff] }
  0x3d   :  { %924 = vmatprep.mubr.f32.mxu1 %v4718_v51  ;;  %3387 = vmatprep.subr.mxu0 %v631_v52  ;;  %v4778_v20 = vld [vmem:[#allocation2 + $0xc0] sm:$0xff]  ;;  %v644_v27 = vld [vmem:[%s6339_s1 + $0x338] sm:$0xff]  ;;  %v659_v34 = vld [vmem:[%s6339_s1 + $0x3b0] sm:$0xff] }
  0x3e   :  { %3467 = vmatprep.subr.mxu1 %v663_v54  ;;  %3388 = vmatpush3.msra.mxu0 %v615_v55  ;;  %v4794_v31 = vld [vmem:[#allocation2 + $0xb2] sm:$0xff]  ;;  %v4813_v40 = vld [vmem:[#allocation2 + $0xc2] sm:$0xff] }
  0x3f   :  { %3468 = vmatpush3.msra.mxu1 %v647_v63  ;;  %780 = vmatmul.mubr.f32.gmra.mxu0 %v4692_v44  ;;  %v611_v38 = vld [vmem:[%s6339_s1 + $0x230] sm:$0xff]  ;;  %v4815_v41 = vld [vmem:[#allocation2 + $0xe0] sm:$0xff]  ;;  %v626_v45 = vld [vmem:[%s6339_s1 + $0x2a8] sm:$0xff] }
  0x40   :  { %925 = vmatmul.mubr.f32.gmra.mxu1 %v4741_v2  ;;  %784 = vmatprep.mubr.f32.mxu0 %v4539_v61  ;;  %v643_v39 = vld [vmem:[%s6339_s1 + $0x330] sm:$0xff]  ;;  %v658_v46 = vld [vmem:[%s6339_s1 + $0x3a8] sm:$0xff]  ;;  %v625_v55 = vld [vmem:[%s6339_s1 + $0x2a0] sm:$0xff] }
  0x41   :  { %929 = vmatprep.mubr.f32.mxu1 %v4744_v4  ;;  %3389 = vmatprep.subr.mxu0 %v630_v5  ;;  %v610_v47 = vld [vmem:[%s6339_s1 + $0x228] sm:$0xff]  ;;  %v4833_v52 = vld [vmem:[#allocation2 + $0xd2] sm:$0xff]  ;;  %v657_v63 = vld [vmem:[%s6339_s1 + $0x3a0] sm:$0xff] }
  0x42   :  { %3469 = vmatprep.subr.mxu1 %v662_v6  ;;  %3390 = vmatpush3.msra.mxu0 %v614_v8  ;;  %v642_v48 = vld [vmem:[%s6339_s1 + $0x328] sm:$0xff]  ;;  %v4835_v54 = vld [vmem:[#allocation2 + $0xf0] sm:$0xff]  ;;  %v609_v5 = vld [vmem:[%s6339_s1 + $0x220] sm:$0xff] }
  0x43   :  { %3470 = vmatpush3.msra.mxu1 %v646_v9  ;;  %785 = vmatmul.mubr.f32.gmra.mxu0 %v4718_v51  ;;  %v641_v6 = vld [vmem:[%s6339_s1 + $0x320] sm:$0xff] }
  0x44   :  { %930 = vmatmul.mubr.f32.gmra.mxu1 %v4762_v10  ;;  %789 = vmatprep.mubr.f32.mxu0 %v148_v11  ;;  %v4853_v8 = vld [vmem:[#allocation2 + $0xe2] sm:$0xff]  ;;  %v624_v11 = vld [vmem:[%s6339_s1 + $0x298] sm:$0xff] }
  0x45   :  { %934 = vmatprep.mubr.f32.mxu1 %v212_v12  ;;  %3391 = vmatprep.subr.mxu0 %v629_v13  ;;  %v4855_v9 = vld [vmem:[#allocation2 + $0x100] sm:$0xff]  ;;  %v608_v13 = vld [vmem:[%s6339_s1 + $0x218] sm:$0xff] }
  0x46   :  { %3471 = vmatprep.subr.mxu1 %v661_v14  ;;  %3392 = vmatpush3.msra.mxu0 %v613_v15  ;;  %v640_v14 = vld [vmem:[%s6339_s1 + $0x318] sm:$0xff] }
  0x47   :  { %3472 = vmatpush3.msra.mxu1 %v645_v17  ;;  %790 = vmatmul.mubr.f32.gmra.mxu0 %v116_v18  ;;  %v4873_v15 = vld [vmem:[#allocation2 + $0xf2] sm:$0xff] }
  0x48   :  { %935 = vmatmul.mubr.f32.gmra.mxu1 %v180_v19  ;;  %794 = vmatprep.mubr.f32.mxu0 %v4558_v1  ;;  %v4875_v17 = vld [vmem:[#allocation2 + $0x110] sm:$0xff] }
  0x49   :  { %939 = vmatprep.mubr.f32.mxu1 %v4778_v20  ;;  %3393 = vmatprep.subr.mxu0 %v628_v24  ;;  %v623_v18 = vld [vmem:[%s6339_s1 + $0x290] sm:$0xff] }
  0x4a   :  { %3473 = vmatprep.subr.mxu1 %v660_v25  ;;  %3394 = vmatpush3.msra.mxu0 %v612_v26  ;;  %v655_v19 = vld [vmem:[%s6339_s1 + $0x390] sm:$0xff]  ;;  %v4893_v26 = vld [vmem:[#allocation2 + $0x102] sm:$0xff] }
  0x4b   :  { %3474 = vmatpush3.msra.mxu1 %v644_v27  ;;  %795 = vmatmul.mubr.f32.gmra.mxu0 %v212_v12  ;;  %v656_v12 = vld [vmem:[%s6339_s1 + $0x398] sm:$0xff]  ;;  %v607_v24 = vld [vmem:[%s6339_s1 + $0x210] sm:$0xff]  ;;  %v4895_v27 = vld [vmem:[#allocation2 + $0x120] sm:$0xff] }
  0x4c   :  { %940 = vmatmul.mubr.f32.gmra.mxu1 %v4794_v31  ;;  %799 = vmatprep.mubr.f32.mxu0 %v4576_v7  ;;  %v639_v25 = vld [vmem:[%s6339_s1 + $0x310] sm:$0xff] }
  0x4d   :  { %944 = vmatprep.mubr.f32.mxu1 %v4796_v32  ;;  %3395 = vmatprep.subr.mxu0 %v627_v33  ;;  %v622_v33 = vld [vmem:[%s6339_s1 + $0x288] sm:$0xff] }
  0x4e   :  { %3475 = vmatprep.subr.mxu1 %v659_v34  ;;  %3396 = vmatpush3.msra.mxu0 %v611_v38  ;;  %v654_v34 = vld [vmem:[%s6339_s1 + $0x388] sm:$0xff] }
  0x4f   :  { %3476 = vmatpush3.msra.mxu1 %v643_v39  ;;  %800 = vmatmul.mubr.f32.gmra.mxu0 %v4778_v20  ;;  %v606_v38 = vld [vmem:[%s6339_s1 + $0x208] sm:$0xff] }
  0x50   :  { %945 = vmatmul.mubr.f32.gmra.mxu1 %v4813_v40  ;;  %804 = vmatprep.mubr.f32.mxu0 %v4614_v23  ;;  %v638_v39 = vld [vmem:[%s6339_s1 + $0x308] sm:$0xff] }
  0x51   :  { %949 = vmatprep.mubr.f32.mxu1 %v4815_v41  ;;  %3397 = vmatprep.subr.mxu0 %v626_v45  ;;  %v4913_v45 = vld [vmem:[#allocation2 + $0x112] sm:$0xff] }
  0x52   :  { %3477 = vmatprep.subr.mxu1 %v658_v46  ;;  %3398 = vmatpush3.msra.mxu0 %v610_v47  ;;  %v621_v46 = vld [vmem:[%s6339_s1 + $0x280] sm:$0xff] }
  0x53   :  { %3478 = vmatpush3.msra.mxu1 %v642_v48  ;;  %805 = vmatmul.mubr.f32.gmra.mxu0 %v4796_v32  ;;  %v605_v47 = vld [vmem:[%s6339_s1 + $0x200] sm:$0xff] }
  0x54   :  { %950 = vmatmul.mubr.f32.gmra.mxu1 %v4833_v52  ;;  %809 = vmatprep.mubr.f32.mxu0 %v4639_v30  ;;  %v653_v48 = vld [vmem:[%s6339_s1 + $0x380] sm:$0xff] }
  0x55   :  { %954 = vmatprep.mubr.f32.mxu1 %v4835_v54  ;;  %3399 = vmatprep.subr.mxu0 %v625_v55  ;;  %v637_v55 = vld [vmem:[%s6339_s1 + $0x300] sm:$0xff] }
  0x56   :  { %3479 = vmatprep.subr.mxu1 %v657_v63  ;;  %3400 = vmatpush3.msra.mxu0 %v609_v5  ;;  %v684_v63 = vld [vmem:[%s6339_s1 + $0x478] sm:$0xff]  ;;  %v4974_v5 = vld [vmem:[#allocation2 + $0x82] sm:$0xff] }
  0x57   :  { %3480 = vmatpush3.msra.mxu1 %v641_v6  ;;  %810 = vmatmul.mubr.f32.gmra.mxu0 %v4815_v41  ;;  %v678_v6 = vld [vmem:[%s6339_s1 + $0x448] sm:$0xff] }
  0x58   :  { %955 = vmatmul.mubr.f32.gmra.mxu1 %v4853_v8  ;;  %814 = vmatprep.mubr.f32.mxu0 %v4663_v36 }
  0x59   :  { %959 = vmatprep.mubr.f32.mxu1 %v4855_v9  ;;  %3401 = vmatprep.subr.mxu0 %v624_v11  ;;  %v677_v11 = vld [vmem:[%s6339_s1 + $0x440] sm:$0xff] }
  0x5a   :  { %3481 = vmatprep.subr.mxu1 %v656_v12  ;;  %3402 = vmatpush3.msra.mxu0 %v608_v13  ;;  %v670_v12 = vld [vmem:[%s6339_s1 + $0x408] sm:$0xff]  ;;  %v348_v13 = vld [vmem:[#allocation2 + $0x131] sm:$0xff] }
  0x5b   :  { %3482 = vmatpush3.msra.mxu1 %v640_v14  ;;  %815 = vmatmul.mubr.f32.gmra.mxu0 %v4835_v54  ;;  %v669_v14 = vld [vmem:[%s6339_s1 + $0x400] sm:$0xff] }
  0x5c   :  { %960 = vmatmul.mubr.f32.gmra.mxu1 %v4873_v15  ;;  %819 = vmatprep.mubr.f32.mxu0 %v4685_v42 }
  0x5d   :  { %964 = vmatprep.mubr.f32.mxu1 %v4875_v17  ;;  %3403 = vmatprep.subr.mxu0 %v623_v18  ;;  %v372_v18 = vld [vmem:[#allocation2 + $0x92] sm:$0xff] }
  0x5e   :  { %3483 = vmatprep.subr.mxu1 %v655_v19  ;;  %3404 = vmatpush3.msra.mxu0 %v607_v24 }
  0x5f   :  { %3484 = vmatpush3.msra.mxu1 %v639_v25  ;;  %820 = vmatmul.mubr.f32.gmra.mxu0 %v4855_v9 }
  0x60   :  { %965 = vmatmul.mubr.f32.gmra.mxu1 %v4893_v26  ;;  %824 = vmatprep.mubr.f32.mxu0 %v4711_v49 }
  0x61   :  { %969 = vmatprep.mubr.f32.mxu1 %v4895_v27  ;;  %3405 = vmatprep.subr.mxu0 %v622_v33 }
  0x62   :  { %3485 = vmatprep.subr.mxu1 %v654_v34  ;;  %3406 = vmatpush3.msra.mxu0 %v606_v38 }
  0x63   :  { %3486 = vmatpush3.msra.mxu1 %v638_v39  ;;  %825 = vmatmul.mubr.f32.gmra.mxu0 %v4875_v17 }
  0x64   :  { %970 = vmatmul.mubr.f32.gmra.mxu1 %v4913_v45  ;;  %3407 = vmatprep.subr.mxu0 %v621_v46 }
  0x65   :  { %1039 = vmatprep.mubr.f32.mxu0 %v4607_v21  ;;  %3408 = vmatpush3.msra.mxu0 %v605_v47  ;;  %v683_v21 = vld [vmem:[%s6339_s1 + $0x470] sm:$0xff] }
  0x66   :  { %3487 = vmatprep.subr.mxu1 %v653_v48  ;;  %1184 = vmatprep.mubr.f32.mxu1 %v4510_v56 }
  0x67   :  { %3488 = vmatpush3.msra.mxu1 %v637_v55  ;;  %1040 = vmatmul.mubr.f32.vlgmr.msra.gmra.mxu0 %v4498_v53 }
  0x68   :  { %1185 = vmatmul.mubr.f32.vlgmr.msra.gmra.mxu1 %v4591_v16  ;;  %1044 = vmatprep.mubr.f32.mxu0 %v4632_v28  ;;  %v682_v16 = vld [vmem:[%s6339_s1 + $0x468] sm:$0xff] }
  0x69   :  { %1189 = vmatprep.mubr.f32.mxu1 %v4516_v57  ;;  %3989 = vmatprep.subr.mxu0 %v684_v63 }
  0x6a   :  { %4045 = vmatprep.subr.mxu1 %v6347_v3  ;;  %3990 = vmatpush3.msra.mxu0 %v684_v63 }
  0x6b   :  { %1045 = vmatmul.mubr.f32.gmra.mxu0 %v4510_v56  ;;  %3991 = vmatprep.subr.mxu0 %v683_v21 }
  0x6c   :  { %1190 = vmatmul.mubr.f32.gmra.mxu1 %v4609_v22  ;;  %1049 = vmatprep.mubr.f32.mxu0 %v4658_v35  ;;  %v681_v22 = vld [vmem:[%s6339_s1 + $0x460] sm:$0xff] }
  0x6d   :  { %1194 = vmatprep.mubr.f32.mxu1 %v4521_v58  ;;  %3992 = vmatpush3.msra.mxu0 %v683_v21 }
  0x6e   :  { %3993 = vmatprep.subr.mxu0 %v682_v16 }
  0x6f   :  { %1050 = vmatmul.mubr.f32.gmra.mxu0 %v4516_v57 }
  0x70   :  { %1195 = vmatmul.mubr.f32.gmra.mxu1 %v4634_v29  ;;  %1054 = vmatprep.mubr.f32.mxu0 %v4689_v43  ;;  %v680_v29 = vld [vmem:[%s6339_s1 + $0x458] sm:$0xff] }
  0x71   :  { %1199 = vmatprep.mubr.f32.mxu1 %v4526_v59  ;;  %3994 = vmatpush3.msra.mxu0 %v682_v16 }
  0x72   :  { %3995 = vmatprep.subr.mxu0 %v681_v22 }
  0x73   :  { %1055 = vmatmul.mubr.f32.gmra.mxu0 %v4521_v58 }
  0x74   :  { %1200 = vmatmul.mubr.f32.gmra.mxu1 %v4665_v37  ;;  %1059 = vmatprep.mubr.f32.mxu0 %v4715_v50  ;;  %v679_v37 = vld [vmem:[%s6339_s1 + $0x450] sm:$0xff] }
  0x75   :  { %1204 = vmatprep.mubr.f32.mxu1 %v4534_v60  ;;  %3996 = vmatpush3.msra.mxu0 %v681_v22 }
  0x76   :  { %3997 = vmatprep.subr.mxu0 %v680_v29 }
  0x77   :  { %1060 = vmatmul.mubr.f32.gmra.mxu0 %v4526_v59 }
  0x78   :  { %1205 = vmatmul.mubr.f32.gmra.mxu1 %v4692_v44  ;;  %1064 = vmatprep.mubr.f32.mxu0 %v4741_v2  ;;  %v340_v44 = vld [vmem:[#allocation2 + $0x91] sm:$0xff] }
  0x79   :  { %1209 = vmatprep.mubr.f32.mxu1 %v4539_v61  ;;  %3998 = vmatpush3.msra.mxu0 %v680_v29 }
  0x7a   :  { %3999 = vmatprep.subr.mxu0 %v679_v37 }
  0x7b   :  { %1065 = vmatmul.mubr.f32.gmra.mxu0 %v4534_v60 }
  0x7c   :  { %1210 = vmatmul.mubr.f32.gmra.mxu1 %v4718_v51  ;;  %1069 = vmatprep.mubr.f32.mxu0 %v4762_v10  ;;  %v308_v51 = vld [vmem:[#allocation2 + $0x90] sm:$0xff] }
  0x7d   :  { %1214 = vmatprep.mubr.f32.mxu1 %v4544_v62  ;;  %4000 = vmatpush3.msra.mxu0 %v679_v37 }
  0x7e   :  { %4001 = vmatprep.subr.mxu0 %v678_v6 }
  0x7f   :  { %1070 = vmatmul.mubr.f32.gmra.mxu0 %v4539_v61 }
  0x80   :  { %1215 = vmatmul.mubr.f32.gmra.mxu1 %v4744_v4  ;;  %1074 = vmatprep.mubr.f32.mxu0 %v4974_v5  ;;  %v676_v4 = vld [vmem:[%s6339_s1 + $0x438] sm:$0xff] }
  0x81   :  { %1219 = vmatprep.mubr.f32.mxu1 %v340_v44  ;;  %4002 = vmatpush3.msra.mxu0 %v678_v6 }
  0x82   :  { %4003 = vmatprep.subr.mxu0 %v677_v11 }
  0x83   :  { %1075 = vmatmul.mubr.f32.gmra.mxu0 %v4544_v62 }
  0x84   :  { %1220 = vmatmul.mubr.f32.gmra.mxu1 %v308_v51  ;;  %1079 = vmatprep.mubr.f32.mxu0 %v4794_v31  ;;  %v675_v31 = vld [vmem:[%s6339_s1 + $0x430] sm:$0xff] }
  0x85   :  { %1224 = vmatprep.mubr.f32.mxu1 %v4576_v7  ;;  %4004 = vmatpush3.msra.mxu0 %v677_v11 }
  0x86   :  { %4005 = vmatprep.subr.mxu0 %v676_v4 }
  0x87   :  { %1080 = vmatmul.mubr.f32.gmra.mxu0 %v4558_v1 }
  0x88   :  { %1225 = vmatmul.mubr.f32.gmra.mxu1 %v4778_v20  ;;  %1084 = vmatprep.mubr.f32.mxu0 %v4813_v40  ;;  %v674_v20 = vld [vmem:[%s6339_s1 + $0x428] sm:$0xff] }
  0x89   :  { %1229 = vmatprep.mubr.f32.mxu1 %v4614_v23  ;;  %4006 = vmatpush3.msra.mxu0 %v676_v4 }
  0x8a   :  { %4007 = vmatprep.subr.mxu0 %v675_v31 }
  0x8b   :  { %1085 = vmatmul.mubr.f32.gmra.mxu0 %v4576_v7 }
  0x8c   :  { %1230 = vmatmul.mubr.f32.gmra.mxu1 %v4796_v32  ;;  %1089 = vmatprep.mubr.f32.mxu0 %v4833_v52  ;;  %v673_v32 = vld [vmem:[%s6339_s1 + $0x420] sm:$0xff] }
  0x8d   :  { %1234 = vmatprep.mubr.f32.mxu1 %v4639_v30  ;;  %4008 = vmatpush3.msra.mxu0 %v675_v31 }
  0x8e   :  { %4009 = vmatprep.subr.mxu0 %v674_v20 }
  0x8f   :  { %1090 = vmatmul.mubr.f32.gmra.mxu0 %v4614_v23 }
  0x90   :  { %1235 = vmatmul.mubr.f32.gmra.mxu1 %v4815_v41  ;;  %1094 = vmatprep.mubr.f32.mxu0 %v4853_v8  ;;  %v672_v41 = vld [vmem:[%s6339_s1 + $0x418] sm:$0xff] }
  0x91   :  { %1239 = vmatprep.mubr.f32.mxu1 %v4663_v36  ;;  %4010 = vmatpush3.msra.mxu0 %v674_v20 }
  0x92   :  { %4011 = vmatprep.subr.mxu0 %v673_v32 }
  0x93   :  { %1095 = vmatmul.mubr.f32.gmra.mxu0 %v4639_v30 }
  0x94   :  { %1240 = vmatmul.mubr.f32.gmra.mxu1 %v4835_v54  ;;  %1099 = vmatprep.mubr.f32.mxu0 %v4873_v15  ;;  %v671_v54 = vld [vmem:[%s6339_s1 + $0x410] sm:$0xff] }
  0x95   :  { %1244 = vmatprep.mubr.f32.mxu1 %v4685_v42  ;;  %4012 = vmatpush3.msra.mxu0 %v673_v32 }
  0x96   :  { %4013 = vmatprep.subr.mxu0 %v672_v41 }
  0x97   :  { %1100 = vmatmul.mubr.f32.gmra.mxu0 %v4663_v36 }
  0x98   :  { %1245 = vmatmul.mubr.f32.gmra.mxu1 %v4855_v9  ;;  %1104 = vmatprep.mubr.f32.mxu0 %v4893_v26  ;;  %v283_v9 = vld [vmem:[#allocation2 + $0x122] sm:$0xff] }
  0x99   :  { %1249 = vmatprep.mubr.f32.mxu1 %v4711_v49  ;;  %4014 = vmatpush3.msra.mxu0 %v672_v41 }
  0x9a   :  { %4015 = vmatprep.subr.mxu0 %v671_v54 }
  0x9b   :  { %1105 = vmatmul.mubr.f32.gmra.mxu0 %v4685_v42 }
  0x9c   :  { %1250 = vmatmul.mubr.f32.gmra.mxu1 %v4875_v17  ;;  %1109 = vmatprep.mubr.f32.mxu0 %v4913_v45  ;;  %v316_v17 = vld [vmem:[#allocation2 + $0x130] sm:$0xff] }
  0x9d   :  { %1254 = vmatprep.mubr.f32.mxu1 %v4737_v0  ;;  %4016 = vmatpush3.msra.mxu0 %v671_v54 }
  0x9e   :  { %4017 = vmatprep.subr.mxu0 %v670_v12 }
  0x9f   :  { %1110 = vmatmul.mubr.f32.gmra.mxu0 %v4711_v49 }
  0xa0   :  { %1255 = vmatmul.mubr.f32.gmra.mxu1 %v4895_v27  ;;  %1114 = vmatprep.mubr.f32.mxu0 %v283_v9 }
  0xa1   :  { %1259 = vmatprep.mubr.f32.mxu1 %v348_v13  ;;  %4018 = vmatpush3.msra.mxu0 %v670_v12 }
  0xa2   :  { %4019 = vmatprep.subr.mxu0 %v669_v14 }
  0xa3   :  { %1115 = vmatmul.mubr.f32.gmra.mxu0 %v4737_v0 }
  0xa4   :  { %1260 = vmatmul.mubr.f32.gmra.mxu1 %v316_v17  ;;  %4020 = vmatpush3.msra.mxu0 %v669_v14 }
  0xa5   :  { %4021 = vmatprep.mubr.f32.mxu0 %v4632_v28  ;;  %4080 = vmatprep.subr.mxu0 %v6347_v3  ;;  %v380_v28 = vld [vmem:[#allocation2 + $0x132] sm:$0xff] }
  0xa6   :  { %4077 = vmatprep.mubr.msk.f32.mxu1 %vm4249_vm0, %v6347_v3 }
  0xa7   :  { %4022 = vmatmul.mubr.f32.vlgmr.msra.gmra.mxu0 %v4658_v35 }
  0xa8   :  { %4024 = vmatprep.mubr.f32.mxu0 %v4689_v43 }
  0xab   :  { %4025 = vmatmul.mubr.f32.gmra.mxu0 %v4715_v50 }
  0xac   :  { %4027 = vmatprep.mubr.f32.mxu0 %v4741_v2 }
  0xaf   :  { %4028 = vmatmul.mubr.f32.gmra.mxu0 %v4762_v10 }
  0xb0   :  { %4030 = vmatprep.mubr.f32.mxu0 %v4974_v5 }
  0xb3   :  { %4031 = vmatmul.mubr.f32.gmra.mxu0 %v372_v18 }
  0xb4   :  { %4033 = vmatprep.mubr.f32.mxu0 %v4813_v40 }
  0xb7   :  { %4034 = vmatmul.mubr.f32.gmra.mxu0 %v4833_v52 }
  0xb8   :  { %4036 = vmatprep.mubr.f32.mxu0 %v4853_v8 }
  0xbb   :  { %4037 = vmatmul.mubr.f32.gmra.mxu0 %v4873_v15 }
  0xbc   :  { %4039 = vmatprep.mubr.f32.mxu0 %v4893_v26 }
  0xbf   :  { %4040 = vmatmul.mubr.f32.gmra.mxu0 %v4913_v45 }
  0xc0   :  { %4042 = vmatprep.mubr.f32.mxu0 %v283_v9 }
  0xc3   :  { %4043 = vmatmul.mubr.f32.gmra.mxu0 %v380_v28 }
  0xc4   :  { %4112 = vmatprep.mubr.msk.f32.mxu0 %vm4249_vm0, %v6347_v3 }
  0xe7   :  { %v3249_v35 = vpop.f32.mrf.mxu0 }
  0xe8   :  { %v3329_v43 = vpop.f32.mrf.mxu1 }
  0xe9   :  { %v3250_v50 = vpop.f32.mrf.mxu0 }
  0xea   :  { %v3330_v2 = vpop.f32.mrf.mxu1  ;;  %v3251_v10 = vadd.f32 %v3250_v50, %v3249_v35 }
  0xeb   :  { %v3331_v19 = vadd.f32 %v3330_v2, %v3329_v43  ;;  %v3252_v40 = vpop.f32.mrf.mxu0 }
  0xec   :  { %v3332_v24 = vpop.f32.mrf.mxu1 }
  0xed   :  { %v5053_v52 = vadd.f32 %v3331_v19, %v3251_v10  ;;  %v3253_v8 = vpop.f32.mrf.mxu0 }
  0xee   :  { %v3333_v25 = vpop.f32.mrf.mxu1  ;;  %v3254_v15 = vadd.f32 %v3253_v8, %v3252_v40 }
  0xef   :  { %v3334_v27 = vadd.f32 %v3333_v25, %v3332_v24  ;;  %v3255_v26 = vpop.f32.mrf.mxu0 }
  0xf0   :  { %v3335_v33 = vpop.f32.mrf.mxu1 }
  0xf1   :  { %v5055_v34 = vadd.f32 %v3334_v27, %v3254_v15  ;;  %v3256_v38 = vpop.f32.mrf.mxu0 }
  0xf2   :  { %v3336_v39 = vpop.f32.mrf.mxu1  ;;  %v3257_v45 = vadd.f32 %v3256_v38, %v3255_v26 }
  0xf3   :  { %v3337_v46 = vadd.f32 %v3336_v39, %v3335_v33  ;;  %v3258_v47 = vpop.f32.mrf.mxu0 }
  0xf4   :  { %v3338_v48 = vpop.f32.mrf.mxu1 }
  0xf5   :  { %v5057_v55 = vadd.f32 %v3337_v46, %v3257_v45  ;;  %v3259_v63 = vpop.f32.mrf.mxu0 }
  0xf6   :  { %v3339_v21 = vpop.f32.mrf.mxu1  ;;  %v3260_v16 = vadd.f32 %v3259_v63, %v3258_v47 }
  0xf7   :  { %v3340_v22 = vadd.f32 %v3339_v21, %v3338_v48  ;;  %v3261_v29 = vpop.f32.mrf.mxu0 }
  0xf8   :  { %v3341_v37 = vpop.f32.mrf.mxu1 }
  0xf9   :  { %v5059_v5 = vadd.f32 %v3340_v22, %v3260_v16  ;;  %v3262_v44 = vpop.f32.mrf.mxu0 }
  0xfa   :  { %v3342_v6 = vpop.f32.mrf.mxu1  ;;  %v3263_v51 = vadd.f32 %v3262_v44, %v3261_v29 }
  0xfb   :  { %v3343_v11 = vadd.f32 %v3342_v6, %v3341_v37  ;;  %v3264_v4 = vpop.f32.mrf.mxu0 }
  0xfc   :  { %v3344_v31 = vpop.f32.mrf.mxu1 }
  0xfd   :  { %v5061_v20 = vadd.f32 %v3343_v11, %v3263_v51  ;;  %v3265_v32 = vpop.f32.mrf.mxu0 }
  0xfe   :  { %v3345_v41 = vpop.f32.mrf.mxu1  ;;  %v3266_v54 = vadd.f32 %v3265_v32, %v3264_v4 }
  0xff   :  { %v3346_v9 = vadd.f32 %v3345_v41, %v3344_v31  ;;  %v3267_v12 = vpop.f32.mrf.mxu0 }
 0x100   :  { %v3347_v13 = vpop.f32.mrf.mxu1 }
 0x101   :  { %v5063_v14 = vadd.f32 %v3346_v9, %v3266_v54  ;;  %v3268_v17 = vpop.f32.mrf.mxu0 }
 0x102   :  { %v3348_v18 = vpop.f32.mrf.mxu1  ;;  %v3269_v28 = vadd.f32 %v3268_v17, %v3267_v12 }
 0x103   :  { %v3349_v35 = vadd.f32 %v3348_v18, %v3347_v13  ;;  %v3270_v43 = vpop.f32.mrf.mxu0 }
 0x104   :  { %v3350_v50 = vpop.f32.mrf.mxu1 }
 0x105   :  { %v5065_v2 = vadd.f32 %v3349_v35, %v3269_v28  ;;  %v3271_v10 = vpop.f32.mrf.mxu0 }
 0x106   :  { %v3351_v19 = vpop.f32.mrf.mxu1  ;;  %v3272_v40 = vadd.f32 %v3271_v10, %v3270_v43 }
 0x107   :  { %v3352_v24 = vadd.f32 %v3351_v19, %v3350_v50  ;;  %v3273_v8 = vpop.f32.mrf.mxu0 }
 0x108   :  { %v3353_v25 = vpop.f32.mrf.mxu1 }
 0x109   :  { %v5067_v15 = vadd.f32 %v3352_v24, %v3272_v40  ;;  %v3274_v27 = vpop.f32.mrf.mxu0 }
 0x10a   :  { %v3354_v26 = vpop.f32.mrf.mxu1  ;;  %v3275_v33 = vadd.f32 %v3274_v27, %v3273_v8 }
 0x10b   :  { %v3355_v38 = vadd.f32 %v3354_v26, %v3353_v25  ;;  %v3276_v39 = vpop.f32.mrf.mxu0 }
 0x10c   :  { %v3356_v45 = vpop.f32.mrf.mxu1 }
 0x10d   :  { %v5069_v46 = vadd.f32 %v3355_v38, %v3275_v33  ;;  %v3277_v47 = vpop.f32.mrf.mxu0 }
 0x10e   :  { %v3357_v48 = vpop.f32.mrf.mxu1  ;;  %v3278_v63 = vadd.f32 %v3277_v47, %v3276_v39 }
 0x10f   :  { %v3358_v21 = vadd.f32 %v3357_v48, %v3356_v45  ;;  %v3279_v16 = vpop.f32.mrf.mxu0 }
 0x110   :  { %v3359_v22 = vpop.f32.mrf.mxu1 }
 0x111   :  { %v5071_v29 = vadd.f32 %v3358_v21, %v3278_v63  ;;  %v3280_v37 = vpop.f32.mrf.mxu0 }
 0x112   :  { %v3360_v44 = vpop.f32.mrf.mxu1  ;;  %v3281_v6 = vadd.f32 %v3280_v37, %v3279_v16 }
 0x113   :  { %v3361_v51 = vadd.f32 %v3360_v44, %v3359_v22  ;;  %v3282_v11 = vpop.f32.mrf.mxu0 }
 0x114   :  { %v3362_v4 = vpop.f32.mrf.mxu1 }
 0x115   :  { %v5073_v31 = vadd.f32 %v3361_v51, %v3281_v6  ;;  %v3283_v32 = vpop.f32.mrf.mxu0 }
 0x116   :  { %v3363_v41 = vpop.f32.mrf.mxu1  ;;  %v3284_v54 = vadd.f32 %v3283_v32, %v3282_v11 }
 0x117   :  { %v3364_v9 = vadd.f32 %v3363_v41, %v3362_v4  ;;  %v3285_v12 = vpop.f32.mrf.mxu0 }
 0x118   :  { %v3365_v13 = vpop.f32.mrf.mxu1 }
 0x119   :  { %v5075_v17 = vadd.f32 %v3364_v9, %v3284_v54  ;;  %v3286_v18 = vpop.f32.mrf.mxu0 }
 0x11a   :  { %v3366_v28 = vpop.f32.mrf.mxu1  ;;  %v3287_v35 = vadd.f32 %v3286_v18, %v3285_v12 }
 0x11b   :  { %v3367_v43 = vadd.f32 %v3366_v28, %v3365_v13  ;;  %v3288_v50 = vpop.f32.mrf.mxu0 }
 0x11c   :  { %v3368_v10 = vpop.f32.mrf.mxu1 }
 0x11d   :  { %v5077_v19 = vadd.f32 %v3367_v43, %v3287_v35  ;;  %v3289_v40 = vpop.f32.mrf.mxu0 }
 0x11e   :  { %v3369_v24 = vpop.f32.mrf.mxu1  ;;  %v3290_v8 = vadd.f32 %v3289_v40, %v3288_v50 }
 0x11f   :  { %v3370_v25 = vadd.f32 %v3369_v24, %v3368_v10  ;;  %v3291_v27 = vpop.f32.mrf.mxu0 }
 0x120   :  { %v3371_v26 = vpop.f32.mrf.mxu1 }
 0x121   :  { %v5079_v33 = vadd.f32 %v3370_v25, %v3290_v8  ;;  %v3292_v38 = vpop.f32.mrf.mxu0 }
 0x122   :  { %v3372_v39 = vpop.f32.mrf.mxu1  ;;  %v3293_v45 = vadd.f32 %v3292_v38, %v3291_v27 }
 0x123   :  { %v3373_v47 = vadd.f32 %v3372_v39, %v3371_v26  ;;  %v5081_v48 = vpop.f32.mrf.mxu0 }
 0x124   :  { %v5083_v63 = vpop.f32.mrf.mxu1 }
 0x125   :  { %v5085_v21 = vadd.f32 %v3373_v47, %v3293_v45  ;;  %v5091_v16 = vpop.f32.mrf.mxu0 }
 0x126   :  { %v5093_v22 = vpop.f32.mrf.mxu1  ;;  %v3296_v53 = vadd.f32 %v5091_v16, %v5081_v48 }
 0x127   :  { %v3409_v37 = vpop.f32.mrf.mxu0 }
 0x128   :  { %v3489_v44 = vpop.f32.mrf.mxu1 }
 0x129   :  { %v3410_v6 = vpop.f32.mrf.mxu0 }
 0x12a   :  { %v3490_v51 = vpop.f32.mrf.mxu1  ;;  %v3411_v11 = vadd.f32 %v3410_v6, %v3409_v37 }
 0x12b   :  { %v3491_v4 = vadd.f32 %v3490_v51, %v3489_v44  ;;  %v3412_v32 = vpop.f32.mrf.mxu0 }
 0x12c   :  { %v3492_v41 = vpop.f32.mrf.mxu1  ;;  %v1042_v54 = vadd.f32 %v3411_v11, %v5053_v52 }
 0x12d   :  { %v3413_v9 = vpop.f32.mrf.mxu0 }
 0x12e   :  { %v3493_v12 = vpop.f32.mrf.mxu1  ;;  %v3414_v13 = vadd.f32 %v3413_v9, %v3412_v32  ;;  %v5096_v28 = vadd.f32 %v3491_v4, %v1042_v54 }
 0x12f   :  { %v3494_v18 = vadd.f32 %v3493_v12, %v3492_v41  ;;  %v3415_v35 = vpop.f32.mrf.mxu0 }
 0x130   :  { %6385 = vst [vmem:[#allocation20_spill] sm:$0xff] %v5096_v28  ;;  %v3495_v43 = vpop.f32.mrf.mxu1  ;;  %v1047_v50 = vadd.f32 %v3414_v13, %v5055_v34 }
 0x131   :  { %v3416_v10 = vpop.f32.mrf.mxu0 }
 0x132   :  { %v3496_v40 = vpop.f32.mrf.mxu1  ;;  %v3417_v24 = vadd.f32 %v3416_v10, %v3415_v35  ;;  %v5099_v25 = vadd.f32 %v3494_v18, %v1047_v50 }
 0x133   :  { %v3497_v8 = vadd.f32 %v3496_v40, %v3495_v43  ;;  %v3418_v27 = vpop.f32.mrf.mxu0 }
 0x134   :  { %6386 = vst [vmem:[#allocation21_spill] sm:$0xff] %v5099_v25  ;;  %v3498_v26 = vpop.f32.mrf.mxu1  ;;  %v1052_v52 = vadd.f32 %v3417_v24, %v5057_v55 }
 0x135   :  { %v3419_v38 = vpop.f32.mrf.mxu0 }
 0x136   :  { %v3499_v39 = vpop.f32.mrf.mxu1  ;;  %v3420_v45 = vadd.f32 %v3419_v38, %v3418_v27  ;;  %v5102_v37 = vadd.f32 %v3497_v8, %v1052_v52 }
 0x137   :  { %v3500_v47 = vadd.f32 %v3499_v39, %v3498_v26  ;;  %v3421_v44 = vpop.f32.mrf.mxu0 }
 0x138   :  { %6387 = vst [vmem:[#allocation22_spill] sm:$0xff] %v5102_v37  ;;  %v3501_v6 = vpop.f32.mrf.mxu1  ;;  %v1057_v34 = vadd.f32 %v3420_v45, %v5059_v5 }
 0x139   :  { %v3422_v51 = vpop.f32.mrf.mxu0 }
 0x13a   :  { %v3502_v11 = vpop.f32.mrf.mxu1  ;;  %v3423_v4 = vadd.f32 %v3422_v51, %v3421_v44  ;;  %v5105_v41 = vadd.f32 %v3500_v47, %v1057_v34 }
 0x13b   :  { %v3503_v32 = vadd.f32 %v3502_v11, %v3501_v6  ;;  %v3424_v54 = vpop.f32.mrf.mxu0 }
 0x13c   :  { %6388 = vst [vmem:[#allocation23_spill] sm:$0xff] %v5105_v41  ;;  %v5107_v9 = vpop.f32.mrf.mxu1  ;;  %v1062_v55 = vadd.f32 %v3423_v4, %v5061_v20 }
 0x13d   :  { %v3425_v12 = vpop.f32.mrf.mxu0 }
 0x13e   :  { %v5110_v13 = vpop.f32.mrf.mxu1  ;;  %v3426_v18 = vadd.f32 %v3425_v12, %v3424_v54  ;;  %v5112_v35 = vadd.f32 %v3503_v32, %v1062_v55 }
 0x13f   :  { %v3427_v43 = vpop.f32.mrf.mxu0 }
 0x140   :  { %6389 = vst [vmem:[#allocation24_spill] sm:$0xff] %v5112_v35  ;;  %v5114_v50 = vpop.f32.mrf.mxu1  ;;  %v5117_v5 = vadd.f32 %v3426_v18, %v5063_v14 }
 0x141   :  { %v3428_v10 = vpop.f32.mrf.mxu0 }
 0x142   :  { %6390 = vst [vmem:[#allocation25_spill] sm:$0xff] %v5117_v5  ;;  %v5119_v40 = vpop.f32.mrf.mxu1  ;;  %v3429_v24 = vadd.f32 %v3428_v10, %v3427_v43 }
 0x143   :  { %v3430_v8 = vpop.f32.mrf.mxu0 }
 0x144   :  { %v5121_v27 = vpop.f32.mrf.mxu1  ;;  %v5124_v20 = vadd.f32 %v3429_v24, %v5065_v2 }
 0x145   :  { %v3431_v26 = vpop.f32.mrf.mxu0 }
 0x146   :  { %6391 = vst [vmem:[#allocation26_spill] sm:$0xff] %v5124_v20  ;;  %v5126_v52 = vpop.f32.mrf.mxu1  ;;  %v3432_v38 = vadd.f32 %v3431_v26, %v3430_v8 }
 0x147   :  { %v3433_v39 = vpop.f32.mrf.mxu0 }
 0x148   :  { %v5128_v45 = vpop.f32.mrf.mxu1  ;;  %v5131_v14 = vadd.f32 %v3432_v38, %v5067_v15 }
 0x149   :  { %v3434_v47 = vpop.f32.mrf.mxu0 }
 0x14a   :  { %v5133_v44 = vpop.f32.mrf.mxu1  ;;  %v3435_v6 = vadd.f32 %v3434_v47, %v3433_v39 }
 0x14b   :  { %v3436_v34 = vpop.f32.mrf.mxu0 }
 0x14c   :  { %v5135_v51 = vpop.f32.mrf.mxu1  ;;  %v5138_v2 = vadd.f32 %v3435_v6, %v5069_v46 }
 0x14d   :  { %v3437_v11 = vpop.f32.mrf.mxu0 }
 0x14e   :  { %v5140_v4 = vpop.f32.mrf.mxu1 }
 0x14f   :  { %v3439_v32 = vpop.f32.mrf.mxu0 }
 0x150   :  { %v5142_v54 = vpop.f32.mrf.mxu1 }
 0x151   :  { %v3440_v55 = vpop.f32.mrf.mxu0 }
 0x152   :  { %v3520_v15 = vpop.f32.mrf.mxu1 }
 0x153   :  { %v3442_v12 = vpop.f32.mrf.mxu0 }
 0x154   :  { %v3522_v43 = vpop.f32.mrf.mxu1 }
 0x155   :  { %v3443_v18 = vpop.f32.mrf.mxu0 }
 0x156   :  { %v3523_v8 = vpop.f32.mrf.mxu1  ;;  %v3444_v5 = vadd.f32 %v3443_v18, %v3442_v12 }
 0x157   :  { %v3445_v10 = vpop.f32.mrf.mxu0 }
 0x158   :  { %v3525_v39 = vpop.f32.mrf.mxu1 }
 0x159   :  { %v3446_v24 = vpop.f32.mrf.mxu0 }
 0x15a   :  { %v3526_v6 = vpop.f32.mrf.mxu1  ;;  %v3447_v35 = vadd.f32 %v3446_v24, %v3445_v10  ;;  %v6408_v10 = vld [vmem:[#allocation24_spill] sm:$0xff] }
 0x15b   :  { %v3448_v26 = vpop.f32.mrf.mxu0 }
 0x15c   :  { %v3528_v49 = vpop.f32.mrf.mxu1 }
 0x15d   :  { %v3449_v38 = vpop.f32.mrf.mxu0 }
 0x15e   :  { %v3529_v30 = vpop.f32.mrf.mxu1 }
 0x15f   :  { %v3451_v47 = vpop.f32.mrf.mxu0  ;;  %v3530_v48 = vadd.f32 %v3529_v30, %v3528_v49  ;;  %v3521_v30 = vadd.f32 %v3520_v15, %v5142_v54 }
 0x160   :  { %v3531_v1 = vpop.f32.mrf.mxu1 }
 0x161   :  { %v3452_v46 = vpop.f32.mrf.mxu0 }
 0x162   :  { %v3532_v60 = vpop.f32.mrf.mxu1  ;;  %v3453_v41 = vadd.f32 %v3452_v46, %v3451_v47  ;;  %v6410_v47 = vld [vmem:[#allocation23_spill] sm:$0xff] }
 0x163   :  { %v3454_v3 = vpop.f32.mrf.mxu0 }
 0x164   :  { %v3534_v57 = vpop.f32.mrf.mxu1  ;;  %v1112_v16 = vadd.f32 %v3453_v41, %v5085_v21  ;;  %v3515_v41 = vadd.f32 %v5133_v44, %v5128_v45  ;;  %v3509_v44 = vadd.f32 %v5119_v40, %v5114_v50 }
 0x165   :  { %v3455_v0 = vpop.f32.mrf.mxu0 }
 0x166   :  { %v3535_v25 = vpop.f32.mrf.mxu1 }
 0x167   :  { %v5144_v42 = vpop.f32.mrf.mxu0 }
 0x168   :  { %6392 = vst [vmem:[#allocation27_spill] sm:$0xff] %v5144_v42  ;;  %v3456_v42 = vadd.f32 %v3455_v0, %v3454_v3  ;;  %v1102_v3 = vadd.f32 %v3447_v35, %v5077_v19  ;;  %v3527_v0 = vadd.f32 %v3526_v6, %v3525_v39  ;;  %v6401_v19 = vmov 0.0  }
 0x169   :  { %v5146_v36 = vpop.f32.mrf.mxu0 }
 0x16a   :  { %6393 = vst [vmem:[#allocation28_spill] sm:$0xff] %v5146_v36  ;;  %v3376_v36 = vadd.f32 %v5093_v22, %v5083_v63  ;;  %v3533_v63 = vadd.f32 %v3532_v60, %v3531_v1  ;;  %v3441_v22 = vadd.f32 %v3440_v55, %v3439_v32  ;;  %v1247_v49 = vadd.f32 %v3527_v0, %v1102_v3  ;;  %v6414_v0 = vld [vmem:[#allocation21_spill] sm:$0xff] }
 0x16b   :  { %v5148_v23 = vpop.f32.mrf.mxu0 }
 0x16c   :  { %6394 = vst [vmem:[#allocation29_spill] sm:$0xff] %v5148_v23  ;;  %v972_v37 = vadd.f32 %v3376_v36, %v3296_v53  ;;  %v3450_v23 = vadd.f32 %v3449_v38, %v3448_v26  ;;  %v3438_v36 = vadd.f32 %v3437_v11, %v3436_v34  ;;  %v3524_v26 = vadd.f32 %v3523_v8, %v3522_v43 }
 0x16d   :  { %v5150_v7 = vpop.f32.mrf.mxu0  ;;  %v3506_v34 = vadd.f32 %v5110_v13, %v5107_v9 }
 0x16e   :  { %6395 = vst [vmem:[#allocation30_spill] sm:$0xff] %v5150_v7 }
 0x16f   :  { %v5152_v62 = vpop.f32.mrf.mxu0 }
 0x170   :  { %6396 = vst [vmem:[#allocation31_spill] sm:$0xff] %v5152_v62  ;;  %v1117_v62 = vadd.f32 %v3456_v42, %v972_v37  ;;  %v1097_v42 = vadd.f32 %v3444_v5, %v5075_v17  ;;  %v1257_v37 = vadd.f32 %v3533_v63, %v1112_v16  ;;  %v3518_v17 = vadd.f32 %v5140_v4, %v5135_v51  ;;  %v6405_v4 = vld [vmem:[#allocation25_spill] sm:$0xff]  ;;  %v6412_v16 = vld [vmem:[#allocation22_spill] sm:$0xff] }
 0x171   :  { %v5154_v61 = vpop.f32.mrf.mxu0  ;;  %v3512_v5 = vadd.f32 %v5126_v52, %v5121_v27  ;;  %v1227_v52 = vadd.f32 %v3515_v41, %v5138_v2  ;;  %v6404_v2 = vld [vmem:[#allocation26_spill] sm:$0xff]  ;;  %v1212_v32 = vadd.f32 %v3506_v34, %v6405_v4  ;;  %v2113_v41 = vld [vmem:[%s6341_s4 + $0xe0] sm:$0xff]  ;;  %v2110_v34 = vld [vmem:[%s6341_s4 + $0xc8] sm:$0xff] }
 0x172   :  { %6397 = vst [vmem:[#allocation32_spill] sm:$0xff] %v5154_v61  ;;  %v1217_v11 = vadd.f32 %v3509_v44, %v6404_v2  ;;  %v2132_v44 = vld [vmem:[%s6341_s4 + $0x178] sm:$0xff]  ;;  %v2130_v2 = vld [vmem:[%s6341_s4 + $0x168] sm:$0xff] }
 0x173   :  { %v5156_v59 = vpop.f32.mrf.mxu0  ;;  %v1222_v50 = vadd.f32 %v3512_v5, %v5131_v14  ;;  %v6411_v46 = vld [vmem:[#allocation29_spill] sm:$0xff]  ;;  %v2096_v5 = vld [vmem:[%s6341_s4 + $0x58] sm:$0xff] }
 0x174   :  { %6398 = vst [vmem:[#allocation33_spill] sm:$0xff] %v5156_v59  ;;  %v1107_v59 = vadd.f32 %v3450_v23, %v5079_v33  ;;  %v1092_v23 = vadd.f32 %v3441_v22, %v5073_v31  ;;  %v1242_v31 = vadd.f32 %v3524_v26, %v1097_v42  ;;  %v5271_v6 = vadd.f32 %v6411_v46, %v6410_v47  ;;  %v6417_v42 = vld [vmem:[#allocation28_spill] sm:$0xff]  ;;  %v2108_v4 = vld [vmem:[%s6341_s4 + $0xb8] sm:$0xff]  ;;  %v2127_v47 = vld [vmem:[%s6341_s4 + $0x150] sm:$0xff] }
 0x175   :  { %v5158_v58 = vpop.f32.mrf.mxu0  ;;  %v6413_v63 = vld [vmem:[#allocation30_spill] sm:$0xff]  ;;  %v2090_v46 = vld [vmem:[%s6341_s4 + $0x28] sm:$0xff] }
 0x176   :  { %6399 = vst [vmem:[#allocation34_spill] sm:$0xff] %v5158_v58  ;;  %v3536_v58 = vadd.f32 %v3535_v25, %v3534_v57  ;;  %v1252_v57 = vadd.f32 %v3530_v48, %v1107_v59  ;;  %v1087_v59 = vadd.f32 %v3438_v36, %v5071_v29  ;;  %v1237_v35 = vadd.f32 %v3521_v30, %v1092_v23 }
 0x177   :  { %v5160_v56 = vpop.f32.mrf.mxu0  ;;  %v6407_v15 = vld [vmem:[#allocation31_spill] sm:$0xff]  ;;  %v5280_v22 = vadd.f32 %v6413_v63, %v6412_v16  ;;  %v1483_v26 = vmul.f32 %v5271_v6, %v5271_v6  ;;  %v2105_v16 = vld [vmem:[%s6341_s4 + $0xa0] sm:$0xff]  ;;  %v2126_v63 = vld [vmem:[%s6341_s4 + $0x148] sm:$0xff] }
 0x178   :  { %v1262_v53 = vadd.f32 %v3536_v58, %v1117_v62  ;;  %v5253_v18 = vadd.f32 %v6407_v15, %v1212_v32  ;;  %v2129_v32 = vld [vmem:[%s6341_s4 + $0x160] sm:$0xff]  ;;  %v2107_v15 = vld [vmem:[%s6341_s4 + $0xb0] sm:$0xff] }
 0x179   :  { %v5166_v28 = vpop.f32.mrf.mxu0  ;;  %v6409_v24 = vld [vmem:[#allocation32_spill] sm:$0xff] }
 0x17a   :  { %6400 = vst [vmem:[#allocation35_spill] sm:$0xff] %v5166_v28  ;;  %v5262_v8 = vadd.f32 %v6409_v24, %v6408_v10  ;;  %v1485_v48 = vmul.f32 %v5253_v18, %v5253_v18  ;;  %v2091_v10 = vld [vmem:[%s6341_s4 + $0x30] sm:$0xff] }
 0x17b   :  { %v4038_v7 = vpop.f32.mrf.mxu0  ;;  %v6403_v9 = vld [vmem:[#allocation33_spill] sm:$0xff]  ;;  %v2143_v24 = vld [vmem:[%s6341_s4 + $0x1d0] sm:$0xff] }
 0x17c   :  { %v5196_v29 = vadd.f32 %v4038_v7, %v1242_v31  ;;  %v5235_v13 = vadd.f32 %v6403_v9, %v1222_v50  ;;  %v1484_v3 = vmul.f32 %v5262_v8, %v5262_v8  ;;  %v2114_v31 = vld [vmem:[%s6341_s4 + $0xe8] sm:$0xff]  ;;  %v2131_v50 = vld [vmem:[%s6341_s4 + $0x170] sm:$0xff]  ;;  %v2109_v9 = vld [vmem:[%s6341_s4 + $0xc0] sm:$0xff] }
 0x17d   :  { %v1381_v61 = vpop.f32.mrf.mxu0  ;;  %v6406_v54 = vld [vmem:[#allocation34_spill] sm:$0xff] }
 0x17e   :  { %v5205_v45 = vadd.f32 %v1381_v61, %v1237_v35  ;;  %v1491_v61 = vmul.f32 %v5196_v29, %v5196_v29  ;;  %v5245_v55 = vadd.f32 %v6406_v54, %v1217_v11  ;;  %v1487_v43 = vmul.f32 %v5235_v13, %v5235_v13  ;;  %v2097_v35 = vld [vmem:[%s6341_s4 + $0x60] sm:$0xff]  ;;  %v2092_v54 = vld [vmem:[%s6341_s4 + $0x38] sm:$0xff] }
 0x17f   :  { %v4041_v20 = vpop.f32.mrf.mxu0  ;;  %v2093_v11 = vld [vmem:[%s6341_s4 + $0x40] sm:$0xff] }
 0x180   :  { %v5176_v1 = vadd.f32 %v4041_v20, %v1252_v57  ;;  %v1232_v20 = vadd.f32 %v3518_v17, %v1087_v59  ;;  %v1490_v51 = vmul.f32 %v5205_v45, %v5205_v45  ;;  %v1486_v39 = vmul.f32 %v5245_v55, %v5245_v55  ;;  %v2115_v59 = vld [vmem:[%s6341_s4 + $0xf0] sm:$0xff] }
 0x181   :  { %v1391_v28 = vpop.f32.mrf.mxu0  ;;  %v6402_v40 = vld [vmem:[#allocation35_spill] sm:$0xff]  ;;  %v2099_v17 = vld [vmem:[%s6341_s4 + $0x70] sm:$0xff] }
 0x182   :  { %v5187_v33 = vadd.f32 %v1391_v28, %v1247_v49  ;;  %v1493_v28 = vmul.f32 %v5176_v1, %v5176_v1  ;;  %v5215_v27 = vadd.f32 %v5160_v56, %v1232_v20  ;;  %v5227_v56 = vadd.f32 %v6402_v40, %v1227_v52  ;;  %v2116_v49 = vld [vmem:[%s6341_s4 + $0xf8] sm:$0xff]  ;;  %v2095_v52 = vld [vmem:[%s6341_s4 + $0x50] sm:$0xff]  ;;  %v2094_v40 = vld [vmem:[%s6341_s4 + $0x48] sm:$0xff] }
 0x183   :  { %v4044_v38 = vpop.f32.mrf.mxu0  ;;  %v2148_v20 = vld [vmem:[%s6341_s4 + $0x1f8] sm:$0xff] }
 0x184   :  { %v5172_v25 = vadd.f32 %v4044_v38, %v1262_v53  ;;  %v1492_v7 = vmul.f32 %v5187_v33, %v5187_v33  ;;  %v1489_v14 = vmul.f32 %v5215_v27, %v5215_v27  ;;  %v1488_v12 = vmul.f32 %v5227_v56, %v5227_v56  ;;  %v6415_v53 = vld [vmem:[#allocation27_spill] sm:$0xff]  ;;  %v6416_v38 = vld [vmem:[#allocation20_spill] sm:$0xff] }
 0x185   :  { %v1401_v60 = vpop.f32.mrf.mxu0  ;;  %v5289_v36 = vadd.f32 %v6415_v53, %v6414_v0  ;;  %v5298_v57 = vadd.f32 %v6417_v42, %v6416_v38  ;;  %v2141_v0 = vld [vmem:[%s6341_s4 + $0x1c0] sm:$0xff]  ;;  %v2104_v53 = vld [vmem:[%s6341_s4 + $0x98] sm:$0xff] }
 0x186   :  { %v1495_v58 = vmul.f32 %v5172_v25, %v5172_v25  ;;  %v5180_v62 = vadd.f32 %v1401_v60, %v1257_v37  ;;  %4046 = vmatpush3.msra.mxu1 %v5172_v25  ;;  %v1482_v37 = vmul.f32 %v5280_v22, %v5280_v22  ;;  %v6365_v60 = vmov 1.0   ;;  %v2088_v38 = vld [vmem:[%s6341_s4 + $0x18] sm:$0xff] }
 0x187   :  { %4047 = vmatprep.subr.mxu1 %v6401_v19  ;;  %v1481_v23 = vmul.f32 %v5289_v36, %v5289_v36  ;;  %v1480_v30 = vmul.f32 %v5298_v57, %v5298_v57  ;;  %v2140_v42 = vld [vmem:[%s6341_s4 + $0x1b8] sm:$0xff] }
 0x188   :  { %v1494_v21 = vmul.f32 %v5180_v62, %v5180_v62  ;;  %4048 = vmatpush3.msra.mxu1 %v5180_v62  ;;  %4081 = vmatpush3.msra.mxu0 %v1495_v58  ;;  %v2100_v58 = vld [vmem:[%s6341_s4 + $0x78] sm:$0xff] }
 0x189   :  { %4049 = vmatprep.subr.mxu1 %v6401_v19  ;;  %4082 = vmatprep.subr.mxu0 %v6401_v19 }
 0x18a   :  { %4050 = vmatpush3.msra.mxu1 %v5176_v1  ;;  %4083 = vmatpush3.msra.mxu0 %v1494_v21  ;;  %v2098_v21 = vld [vmem:[%s6341_s4 + $0x68] sm:$0xff] }
 0x18b   :  { %4051 = vmatprep.subr.mxu1 %v6401_v19  ;;  %4084 = vmatprep.subr.mxu0 %v6401_v19 }
 0x18c   :  { %4052 = vmatpush3.msra.mxu1 %v5187_v33  ;;  %4085 = vmatpush3.msra.mxu0 %v1493_v28  ;;  %v2112_v28 = vld [vmem:[%s6341_s4 + $0xd8] sm:$0xff] }
 0x18d   :  { %4053 = vmatprep.subr.mxu1 %v6401_v19  ;;  %4086 = vmatprep.subr.mxu0 %v6401_v19 }
 0x18e   :  { %4054 = vmatpush3.msra.mxu1 %v5196_v29  ;;  %4087 = vmatpush3.msra.mxu0 %v1492_v7  ;;  %v2111_v7 = vld [vmem:[%s6341_s4 + $0xd0] sm:$0xff] }
 0x18f   :  { %4055 = vmatprep.subr.mxu1 %v6401_v19  ;;  %4088 = vmatprep.subr.mxu0 %v6401_v19 }
 0x190   :  { %4056 = vmatpush3.msra.mxu1 %v5205_v45  ;;  %4089 = vmatpush3.msra.mxu0 %v1491_v61  ;;  %v2147_v61 = vld [vmem:[%s6341_s4 + $0x1f0] sm:$0xff] }
 0x191   :  { %4057 = vmatprep.subr.mxu1 %v6401_v19  ;;  %4090 = vmatprep.subr.mxu0 %v6401_v19 }
 0x192   :  { %4058 = vmatpush3.msra.mxu1 %v5215_v27  ;;  %4091 = vmatpush3.msra.mxu0 %v1490_v51  ;;  %v2146_v51 = vld [vmem:[%s6341_s4 + $0x1e8] sm:$0xff] }
 0x193   :  { %4059 = vmatprep.subr.mxu1 %v6401_v19  ;;  %4092 = vmatprep.subr.mxu0 %v6401_v19 }
 0x194   :  { %4060 = vmatpush3.msra.mxu1 %v5227_v56  ;;  %4093 = vmatpush3.msra.mxu0 %v1489_v14  ;;  %v2145_v14 = vld [vmem:[%s6341_s4 + $0x1e0] sm:$0xff] }
 0x195   :  { %4061 = vmatprep.subr.mxu1 %v6401_v19  ;;  %4094 = vmatprep.subr.mxu0 %v6401_v19 }
 0x196   :  { %4062 = vmatpush3.msra.mxu1 %v5235_v13  ;;  %4095 = vmatpush3.msra.mxu0 %v1488_v12  ;;  %v2144_v12 = vld [vmem:[%s6341_s4 + $0x1d8] sm:$0xff] }
 0x197   :  { %4063 = vmatprep.subr.mxu1 %v6401_v19  ;;  %4096 = vmatprep.subr.mxu0 %v6401_v19 }
 0x198   :  { %4064 = vmatpush3.msra.mxu1 %v5245_v55  ;;  %4097 = vmatpush3.msra.mxu0 %v1487_v43  ;;  %v2128_v43 = vld [vmem:[%s6341_s4 + $0x158] sm:$0xff] }
 0x199   :  { %4065 = vmatprep.subr.mxu1 %v6401_v19  ;;  %4098 = vmatprep.subr.mxu0 %v6401_v19 }
 0x19a   :  { %4066 = vmatpush3.msra.mxu1 %v5253_v18  ;;  %4099 = vmatpush3.msra.mxu0 %v1486_v39  ;;  %v2106_v39 = vld [vmem:[%s6341_s4 + $0xa8] sm:$0xff] }
 0x19b   :  { %4067 = vmatprep.subr.mxu1 %v6401_v19  ;;  %4100 = vmatprep.subr.mxu0 %v6401_v19 }
 0x19c   :  { %4068 = vmatpush3.msra.mxu1 %v5262_v8  ;;  %4101 = vmatpush3.msra.mxu0 %v1485_v48  ;;  %v2142_v48 = vld [vmem:[%s6341_s4 + $0x1c8] sm:$0xff] }
 0x19d   :  { %4069 = vmatprep.subr.mxu1 %v6401_v19  ;;  %4102 = vmatprep.subr.mxu0 %v6401_v19 }
 0x19e   :  { %4070 = vmatpush3.msra.mxu1 %v5271_v6  ;;  %4103 = vmatpush3.msra.mxu0 %v1484_v3  ;;  %v2089_v3 = vld [vmem:[%s6341_s4 + $0x20] sm:$0xff] }
 0x19f   :  { %4071 = vmatprep.subr.mxu1 %v6401_v19  ;;  %4104 = vmatprep.subr.mxu0 %v6401_v19 }
 0x1a0   :  { %4072 = vmatpush3.msra.mxu1 %v5280_v22  ;;  %4105 = vmatpush3.msra.mxu0 %v1483_v26  ;;  %v2125_v26 = vld [vmem:[%s6341_s4 + $0x140] sm:$0xff] }
 0x1a1   :  { %4073 = vmatprep.subr.mxu1 %v6401_v19  ;;  %4106 = vmatprep.subr.mxu0 %v6401_v19 }
 0x1a2   :  { %4074 = vmatpush3.msra.mxu1 %v5289_v36  ;;  %4107 = vmatpush3.msra.mxu0 %v1482_v37  ;;  %v2103_v37 = vld [vmem:[%s6341_s4 + $0x90] sm:$0xff] }
 0x1a3   :  { %4075 = vmatprep.subr.mxu1 %v6401_v19  ;;  %4108 = vmatprep.subr.mxu0 %v6401_v19 }
 0x1a4   :  { %4076 = vmatpush3.msra.mxu1 %v5298_v57  ;;  %4109 = vmatpush3.msra.mxu0 %v1481_v23  ;;  %v2124_v23 = vld [vmem:[%s6341_s4 + $0x138] sm:$0xff] }
 0x1a5   :  { %4078 = vmatmul.mubr.f32.vlgmr.msra.gmra.mxu1 %v6365_v60  ;;  %4110 = vmatprep.subr.mxu0 %v6401_v19 }
 0x1a6   :  { %4111 = vmatpush3.msra.mxu0 %v1480_v30  ;;  %3603 = vmatprep.subr.mxu1 %v2116_v49  ;;  %v2087_v30 = vld [vmem:[%s6341_s4 + $0x10] sm:$0xff] }
 0x1a7   :  { %4113 = vmatmul.mubr.f32.vlgmr.msra.gmra.mxu0 %v6365_v60  ;;  %3604 = vmatpush3.msra.mxu1 %v2100_v58  ;;  %v2139_v49 = vld [vmem:[%s6341_s4 + $0x1b0] sm:$0xff] }
 0x1a8   :  { %3605 = vmatprep.subr.mxu1 %v2115_v59  ;;  %3683 = vmatprep.subr.mxu0 %v2148_v20  ;;  %v2123_v58 = vld [vmem:[%s6341_s4 + $0x130] sm:$0xff]  ;;  %v2138_v59 = vld [vmem:[%s6341_s4 + $0x1a8] sm:$0xff] }
 0x1a9   :  { %3606 = vmatpush3.msra.mxu1 %v2099_v17  ;;  %3684 = vmatpush3.msra.mxu0 %v2132_v44  ;;  %v2122_v17 = vld [vmem:[%s6341_s4 + $0x128] sm:$0xff]  ;;  %v1653_v44 = vld [vmem:[#allocation2] sm:$0xff] }
 0x1aa   :  { %3607 = vmatprep.subr.mxu1 %v2114_v31  ;;  %3685 = vmatprep.subr.mxu0 %v2147_v61  ;;  %v2102_v31 = vld [vmem:[%s6341_s4 + $0x88] sm:$0xff]  ;;  %v2135_v61 = vld [vmem:[%s6341_s4 + $0x190] sm:$0xff] }
 0x1ab   :  { %3608 = vmatpush3.msra.mxu1 %v2098_v21  ;;  %3686 = vmatpush3.msra.mxu0 %v2131_v50  ;;  %v2137_v21 = vld [vmem:[%s6341_s4 + $0x1a0] sm:$0xff]  ;;  %v2134_v50 = vld [vmem:[%s6341_s4 + $0x188] sm:$0xff] }
 0x1ac   :  { %3609 = vmatprep.subr.mxu1 %v2113_v41  ;;  %3687 = vmatprep.subr.mxu0 %v2146_v51  ;;  %v2086_v41 = vld [vmem:[%s6341_s4 + $0x8] sm:$0xff]  ;;  %v2133_v51 = vld [vmem:[%s6341_s4 + $0x180] sm:$0xff] }
 0x1ad   :  { %3610 = vmatpush3.msra.mxu1 %v2097_v35  ;;  %3688 = vmatpush3.msra.mxu0 %v2130_v2  ;;  %v2101_v35 = vld [vmem:[%s6341_s4 + $0x80] sm:$0xff]  ;;  %v2180_v2 = vld [vmem:[%s6341_s4 + $0x2f8] sm:$0xff] }
 0x1ae   :  { %3611 = vmatprep.subr.mxu1 %v2112_v28  ;;  %3689 = vmatprep.subr.mxu0 %v2145_v14  ;;  %v2121_v28 = vld [vmem:[%s6341_s4 + $0x120] sm:$0xff]  ;;  %v2179_v14 = vld [vmem:[%s6341_s4 + $0x2f0] sm:$0xff] }
 0x1af   :  { %3612 = vmatpush3.msra.mxu1 %v2096_v5  ;;  %3690 = vmatpush3.msra.mxu0 %v2129_v32  ;;  %v2085_v5 = vld [vmem:[%s6341_s4] sm:$0xff]  ;;  %v2178_v32 = vld [vmem:[%s6341_s4 + $0x2e8] sm:$0xff] }
 0x1b0   :  { %3613 = vmatprep.subr.mxu1 %v2111_v7  ;;  %3691 = vmatprep.subr.mxu0 %v2144_v12  ;;  %v1685_v20 = vld [vmem:[#allocation2 + $0x1] sm:$0xff]  ;;  %v2136_v7 = vld [vmem:[%s6341_s4 + $0x198] sm:$0xff] }
 0x1b1   :  { %3614 = vmatpush3.msra.mxu1 %v2095_v52  ;;  %3692 = vmatpush3.msra.mxu0 %v2128_v43  ;;  %v2120_v52 = vld [vmem:[%s6341_s4 + $0x118] sm:$0xff]  ;;  %v2162_v12 = vld [vmem:[%s6341_s4 + $0x268] sm:$0xff]  ;;  %v2161_v43 = vld [vmem:[%s6341_s4 + $0x260] sm:$0xff] }
 0x1b2   :  { %3615 = vmatprep.subr.mxu1 %v2110_v34  ;;  %3693 = vmatprep.subr.mxu0 %v2143_v24  ;;  %v2119_v34 = vld [vmem:[%s6341_s4 + $0x110] sm:$0xff]  ;;  %v2160_v24 = vld [vmem:[%s6341_s4 + $0x258] sm:$0xff] }
 0x1b3   :  { %3616 = vmatpush3.msra.mxu1 %v2094_v40  ;;  %3694 = vmatpush3.msra.mxu0 %v2127_v47  ;;  %v2118_v40 = vld [vmem:[%s6341_s4 + $0x108] sm:$0xff]  ;;  %v2159_v47 = vld [vmem:[%s6341_s4 + $0x250] sm:$0xff] }
 0x1b4   :  { %3617 = vmatprep.subr.mxu1 %v2109_v9  ;;  %3695 = vmatprep.subr.mxu0 %v2142_v48  ;;  %v2117_v9 = vld [vmem:[%s6341_s4 + $0x100] sm:$0xff]  ;;  %v2158_v48 = vld [vmem:[%s6341_s4 + $0x248] sm:$0xff] }
 0x1b5   :  { %3618 = vmatpush3.msra.mxu1 %v2093_v11  ;;  %3696 = vmatpush3.msra.mxu0 %v2126_v63  ;;  %v2164_v11 = vld [vmem:[%s6341_s4 + $0x278] sm:$0xff]  ;;  %v2157_v63 = vld [vmem:[%s6341_s4 + $0x240] sm:$0xff] }
 0x1b6   :  { %3619 = vmatprep.subr.mxu1 %v2108_v4  ;;  %3697 = vmatprep.subr.mxu0 %v2141_v0  ;;  %v2163_v4 = vld [vmem:[%s6341_s4 + $0x270] sm:$0xff]  ;;  %v2156_v0 = vld [vmem:[%s6341_s4 + $0x238] sm:$0xff] }
 0x1b7   :  { %3620 = vmatpush3.msra.mxu1 %v2092_v54  ;;  %3698 = vmatpush3.msra.mxu0 %v2125_v26  ;;  %v2212_v54 = vld [vmem:[%s6341_s4 + $0x3f8] sm:$0xff]  ;;  %v2155_v26 = vld [vmem:[%s6341_s4 + $0x230] sm:$0xff] }
 0x1b8   :  { %3621 = vmatprep.subr.mxu1 %v2107_v15  ;;  %3699 = vmatprep.subr.mxu0 %v2140_v42  ;;  %v2177_v15 = vld [vmem:[%s6341_s4 + $0x2e0] sm:$0xff]  ;;  %v2154_v42 = vld [vmem:[%s6341_s4 + $0x228] sm:$0xff] }
 0x1b9   :  { %3622 = vmatpush3.msra.mxu1 %v2091_v10  ;;  %3700 = vmatpush3.msra.mxu0 %v2124_v23  ;;  %v2176_v10 = vld [vmem:[%s6341_s4 + $0x2d8] sm:$0xff]  ;;  %v2153_v23 = vld [vmem:[%s6341_s4 + $0x220] sm:$0xff] }
 0x1ba   :  { %3623 = vmatprep.subr.mxu1 %v2106_v39  ;;  %3701 = vmatprep.subr.mxu0 %v2139_v49  ;;  %v2175_v39 = vld [vmem:[%s6341_s4 + $0x2d0] sm:$0xff]  ;;  %v2152_v49 = vld [vmem:[%s6341_s4 + $0x218] sm:$0xff] }
 0x1bb   :  { %3624 = vmatpush3.msra.mxu1 %v2090_v46  ;;  %3702 = vmatpush3.msra.mxu0 %v2123_v58  ;;  %v2174_v46 = vld [vmem:[%s6341_s4 + $0x2c8] sm:$0xff]  ;;  %v2167_v58 = vld [vmem:[%s6341_s4 + $0x290] sm:$0xff] }
 0x1bc   :  { %3625 = vmatprep.subr.mxu1 %v2105_v16  ;;  %3703 = vmatprep.subr.mxu0 %v2138_v59  ;;  %v2173_v16 = vld [vmem:[%s6341_s4 + $0x2c0] sm:$0xff]  ;;  %v2151_v59 = vld [vmem:[%s6341_s4 + $0x210] sm:$0xff] }
 0x1bd   :  { %3626 = vmatpush3.msra.mxu1 %v2089_v3  ;;  %3704 = vmatpush3.msra.mxu0 %v2122_v17  ;;  %v2172_v3 = vld [vmem:[%s6341_s4 + $0x2b8] sm:$0xff]  ;;  %v2166_v17 = vld [vmem:[%s6341_s4 + $0x288] sm:$0xff] }
 0x1be   :  { %3627 = vmatprep.subr.mxu1 %v2104_v53  ;;  %3705 = vmatprep.subr.mxu0 %v2137_v21  ;;  %v2171_v53 = vld [vmem:[%s6341_s4 + $0x2b0] sm:$0xff]  ;;  %v2165_v21 = vld [vmem:[%s6341_s4 + $0x280] sm:$0xff] }
 0x1bf   :  { %3628 = vmatpush3.msra.mxu1 %v2088_v38  ;;  %3706 = vmatpush3.msra.mxu0 %v2121_v28  ;;  %v2170_v38 = vld [vmem:[%s6341_s4 + $0x2a8] sm:$0xff] }
 0x1c0   :  { %3629 = vmatprep.subr.mxu1 %v2103_v37  ;;  %2293 = vmatprep.mubr.f32.mxu1 %v1685_v20  ;;  %v2169_v37 = vld [vmem:[%s6341_s4 + $0x2a0] sm:$0xff] }
 0x1c1   :  { %3630 = vmatpush3.msra.mxu1 %v2087_v30  ;;  %3707 = vmatprep.subr.mxu0 %v2136_v7  ;;  %v2168_v30 = vld [vmem:[%s6341_s4 + $0x298] sm:$0xff] }
 0x1c2   :  { %3631 = vmatprep.subr.mxu1 %v2102_v31  ;;  %3708 = vmatpush3.msra.mxu0 %v2120_v52  ;;  %v2150_v31 = vld [vmem:[%s6341_s4 + $0x208] sm:$0xff] }
 0x1c3   :  { %3632 = vmatpush3.msra.mxu1 %v2086_v41  ;;  %3709 = vmatprep.subr.mxu0 %v2135_v61  ;;  %v2149_v41 = vld [vmem:[%s6341_s4 + $0x200] sm:$0xff] }
 0x1c4   :  { %3633 = vmatprep.subr.mxu1 %v2101_v35  ;;  %3710 = vmatpush3.msra.mxu0 %v2119_v34 }
 0x1c5   :  { %3634 = vmatpush3.msra.mxu1 %v2085_v5  ;;  %3711 = vmatprep.subr.mxu0 %v2134_v50  ;;  %v5610_v50 = vld [vmem:[%s6341_s4 + $0x478] sm:$0xff] }
 0x1c6   :  { %2294 = vmatmul.mubr.f32.vlgmr.msra.gmra.mxu1 %v1653_v44  ;;  %3712 = vmatpush3.msra.mxu0 %v2118_v40  ;;  %v1578_v40 = vlaneseq }
 0x1c7   :  { %3713 = vmatprep.subr.mxu0 %v2133_v51  ;;  %3763 = vmatprep.subr.mxu1 %v2180_v2 }
 0x1c8   :  { %3714 = vmatpush3.msra.mxu0 %v2117_v9  ;;  %3764 = vmatpush3.msra.mxu1 %v2164_v11  ;;  %v1579_v51 = vshrl.u32 %v1578_v40, 7  ;;  %v1570_v9 = vld [vmem:[%s6342_s2] sm:$0x1]  ;;  %v2196_v40 = vld [vmem:[%s6341_s4 + $0x378] sm:$0xff] }
 0x1c9   :  { %3765 = vmatprep.subr.mxu1 %v2179_v14  ;;  %3843 = vmatprep.subr.mxu0 %v2212_v54 }
 0x1ca   :  { %3766 = vmatpush3.msra.mxu1 %v2163_v4  ;;  %v5616_v2 = vsub.s32 0, %v1579_v51  ;;  %v1574_v4 = vld [vmem:[%s6343_s3] sm:$0x1]  ;;  %v2211_v51 = vld [vmem:[%s6341_s4 + $0x3f0] sm:$0xff] }
 0x1cb   :  { %3767 = vmatprep.subr.mxu1 %v2178_v32 }
 0x1cc   :  { %3768 = vmatpush3.msra.mxu1 %v2162_v12  ;;  %6418 = vst [vmem:[#allocation35_spill] sm:$0xff] %v5616_v2 }
 0x1cd   :  { %3769 = vmatprep.subr.mxu1 %v2177_v15 }
 0x1ce   :  { %3770 = vmatpush3.msra.mxu1 %v2161_v43 }
 0x1cf   :  { %3771 = vmatprep.subr.mxu1 %v2176_v10 }
 0x1d0   :  { %3772 = vmatpush3.msra.mxu1 %v2160_v24 }
 0x1d1   :  { %3773 = vmatprep.subr.mxu1 %v2175_v39 }
 0x1d2   :  { %3774 = vmatpush3.msra.mxu1 %v2159_v47 }
 0x1d3   :  { %3775 = vmatprep.subr.mxu1 %v2174_v46 }
 0x1d4   :  { %3776 = vmatpush3.msra.mxu1 %v2158_v48 }
 0x1d5   :  { %3777 = vmatprep.subr.mxu1 %v2173_v16 }
 0x1d6   :  { %3778 = vmatpush3.msra.mxu1 %v2157_v63 }
 0x1d7   :  { %3779 = vmatprep.subr.mxu1 %v2172_v3 }
 0x1d8   :  { %3780 = vmatpush3.msra.mxu1 %v2156_v0 }
 0x1d9   :  { %3781 = vmatprep.subr.mxu1 %v2171_v53 }
 0x1da   :  { %3782 = vmatpush3.msra.mxu1 %v2155_v26 }
 0x1db   :  { %3783 = vmatprep.subr.mxu1 %v2170_v38 }
 0x1dc   :  { %3784 = vmatpush3.msra.mxu1 %v2154_v42 }
 0x1dd   :  { %3785 = vmatprep.subr.mxu1 %v2169_v37 }
 0x1de   :  { %3786 = vmatpush3.msra.mxu1 %v2153_v23 }
 0x1df   :  { %3787 = vmatprep.subr.mxu1 %v2168_v30 }
 0x1e0   :  { %3788 = vmatpush3.msra.mxu1 %v2152_v49 }
 0x1e1   :  { %3789 = vmatprep.subr.mxu1 %v2167_v58 }
 0x1e2   :  { %3790 = vmatpush3.msra.mxu1 %v2151_v59 }
 0x1e3   :  { %3791 = vmatprep.subr.mxu1 %v2166_v17 }
 0x1e4   :  { %3792 = vmatpush3.msra.mxu1 %v2150_v31 }
 0x1e5   :  { %3793 = vmatprep.subr.mxu1 %v2165_v21 }
 0x1e6   :  { %3794 = vmatpush3.msra.mxu1 %v2149_v41 }
 0x1e7   :  { %4115 = vmatprep.subr.mxu1 %v5610_v50 }
 0x265   :  { %v1476_v35 = vpop.f32.mrf.mxu1 }
 0x266   :  { %v1566_v28 = vmul.f32 0.0078125, %v1476_v35 }
 0x267   :  { %v4079_v5 = vpop.f32.mrf.mxu1  ;;  %v1562_v20 = vpop.f32.mrf.mxu0 }
 0x268   :  { %v1568_v7 = vmul.f32 %v1566_v28, %v1566_v28  ;;  %v1567_v44 = vmul.f32 0.0078125, %v1562_v20 }
 0x269   :  { %v4114_v52 = vpop.f32.mrf.mxu0 }
 0x26a   :  { %v1569_v61 = vsub.f32 %v1567_v44, %v1568_v7 }
 0x26c   :  { %v1571_v34 = vadd.f32 1e-05, %v1569_v61  ;;  %v1717_v61 = vld [vmem:[#allocation2 + $0x2] sm:$0xff] }
 0x26e   :  { %4244 = vrsqrt.f32 %v1571_v34 }
 0x27b   :  { %v4245_v11 = vpop.eup %4244 }
 0x27c   :  { %v1573_v14 = vmul.f32 %v4245_v11, %v1570_v9  ;;  %v2195_v11 = vld [vmem:[%s6341_s4 + $0x370] sm:$0xff] }
 0x27e   :  { %v1575_v32 = vmul.f32 %v1573_v14, %v1566_v28  ;;  %v1581_v54 = vrot.slane %v1573_v14, %v5616_v2  ;;  %v2210_v14 = vld [vmem:[%s6341_s4 + $0x3e8] sm:$0xff] }
 0x280   :  { %v1576_v12 = vsub.f32 %v1574_v4, %v1575_v32  ;;  %v1583_v15 = vmul.f32 %v1581_v54, %v5298_v57  ;;  %v1584_v43 = vmul.f32 %v1581_v54, %v5289_v36  ;;  %v1585_v10 = vmul.f32 %v1581_v54, %v5280_v22  ;;  %v2194_v32 = vld [vmem:[%s6341_s4 + $0x368] sm:$0xff] }
 0x281   :  { %v1586_v24 = vmul.f32 %v1581_v54, %v5271_v6  ;;  %v1587_v39 = vmul.f32 %v1581_v54, %v5262_v8  ;;  %v1588_v47 = vmul.f32 %v1581_v54, %v5253_v18  ;;  %v1589_v46 = vmul.f32 %v1581_v54, %v5245_v55 }
 0x282   :  { %v1603_v48 = vrot.slane %v1576_v12, %v5616_v2  ;;  %v1590_v16 = vmul.f32 %v1581_v54, %v5235_v13  ;;  %v1591_v63 = vmul.f32 %v1581_v54, %v5227_v56  ;;  %v1592_v57 = vmul.f32 %v1581_v54, %v5215_v27  ;;  %v2209_v12 = vld [vmem:[%s6341_s4 + $0x3e0] sm:$0xff] }
 0x283   :  { %v1593_v36 = vmul.f32 %v1581_v54, %v5205_v45  ;;  %v1594_v22 = vmul.f32 %v1581_v54, %v5196_v29  ;;  %v1595_v6 = vmul.f32 %v1581_v54, %v5187_v33  ;;  %v1596_v8 = vmul.f32 %v1581_v54, %v5176_v1 }
 0x284   :  { %v1605_v3 = vadd.f32 %v1603_v48, %v1583_v15  ;;  %v1606_v18 = vadd.f32 %v1603_v48, %v1584_v43  ;;  %v1607_v0 = vadd.f32 %v1603_v48, %v1585_v10  ;;  %v1608_v55 = vadd.f32 %v1603_v48, %v1586_v24  ;;  %v2193_v15 = vld [vmem:[%s6341_s4 + $0x360] sm:$0xff]  ;;  %v2208_v10 = vld [vmem:[%s6341_s4 + $0x3d8] sm:$0xff] }
 0x285   :  { %v1609_v53 = vadd.f32 %v1603_v48, %v1587_v39  ;;  %v1610_v26 = vadd.f32 %v1603_v48, %v1588_v47  ;;  %v1611_v38 = vadd.f32 %v1603_v48, %v1589_v46  ;;  %v1612_v13 = vadd.f32 %v1603_v48, %v1590_v16  ;;  %v2192_v39 = vld [vmem:[%s6341_s4 + $0x358] sm:$0xff]  ;;  %v2207_v47 = vld [vmem:[%s6341_s4 + $0x3d0] sm:$0xff] }
 0x286   :  { %v5637_v42 = vmax.f32 %v1605_v3, 0.0  ;;  %v5639_v56 = vmax.f32 %v1606_v18, 0.0  ;;  %v5641_v27 = vmax.f32 %v1607_v0, 0.0  ;;  %v5643_v45 = vmax.f32 %v1608_v55, 0.0  ;;  %v2204_v3 = vld [vmem:[%s6341_s4 + $0x3b8] sm:$0xff] }
 0x287   :  { %v5645_v29 = vmax.f32 %v1609_v53, 0.0  ;;  %v5647_v33 = vmax.f32 %v1610_v26, 0.0  ;;  %v5649_v1 = vmax.f32 %v1611_v38, 0.0  ;;  %v5651_v37 = vmax.f32 %v1612_v13, 0.0  ;;  %v2188_v0 = vld [vmem:[%s6341_s4 + $0x338] sm:$0xff]  ;;  %v2203_v53 = vld [vmem:[%s6341_s4 + $0x3b0] sm:$0xff] }
 0x288   :  { %1637 = vst [vmem:[#allocation2 + $0x11] sm:$0xff] %v5637_v42  ;;  %2298 = vmatprep.mubr.f32.mxu1 %v5637_v42  ;;  %1638 = vst [vmem:[#allocation2 + $0x21] sm:$0xff] %v5639_v56  ;;  %v1613_v23 = vadd.f32 %v1603_v48, %v1591_v63  ;;  %v1614_v30 = vadd.f32 %v1603_v48, %v1592_v57  ;;  %v1615_v49 = vadd.f32 %v1603_v48, %v1593_v36  ;;  %v2206_v63 = vld [vmem:[%s6341_s4 + $0x3c8] sm:$0xff]  ;;  %v2187_v38 = vld [vmem:[%s6341_s4 + $0x330] sm:$0xff] }
 0x289   :  { %1639 = vst [vmem:[#allocation2 + $0x31] sm:$0xff] %v5641_v27  ;;  %1640 = vst [vmem:[#allocation2 + $0x41] sm:$0xff] %v5643_v45  ;;  %v1616_v58 = vadd.f32 %v1603_v48, %v1594_v22  ;;  %v1617_v59 = vadd.f32 %v1603_v48, %v1595_v6  ;;  %v1618_v17 = vadd.f32 %v1603_v48, %v1596_v8  ;;  %v2190_v57 = vld [vmem:[%s6341_s4 + $0x348] sm:$0xff]  ;;  %v2205_v22 = vld [vmem:[%s6341_s4 + $0x3c0] sm:$0xff] }
 0x28a   :  { %1641 = vst [vmem:[#allocation2 + $0x51] sm:$0xff] %v5645_v29  ;;  %1642 = vst [vmem:[#allocation2 + $0x61] sm:$0xff] %v5647_v33  ;;  %v1597_v31 = vmul.f32 %v1581_v54, %v5180_v62  ;;  %v1598_v21 = vmul.f32 %v1581_v54, %v5172_v25  ;;  %v5664_v41 = vmax.f32 %v1613_v23, 0.0  ;;  %v5666_v35 = vmax.f32 %v1614_v30, 0.0  ;;  %v2189_v8 = vld [vmem:[%s6341_s4 + $0x340] sm:$0xff]  ;;  %v2202_v23 = vld [vmem:[%s6341_s4 + $0x3a8] sm:$0xff] }
 0x28b   :  { %1643 = vst [vmem:[#allocation2 + $0x71] sm:$0xff] %v5649_v1  ;;  %1644 = vst [vmem:[#allocation2 + $0x81] sm:$0xff] %v5651_v37  ;;  %v5668_v28 = vmax.f32 %v1615_v49, 0.0  ;;  %v5670_v5 = vmax.f32 %v1616_v58, 0.0  ;;  %v5672_v20 = vmax.f32 %v1617_v59, 0.0  ;;  %v5674_v7 = vmax.f32 %v1618_v17, 0.0 }
 0x28c   :  { %v1619_v44 = vadd.f32 %v1603_v48, %v1597_v31  ;;  %v1620_v52 = vadd.f32 %v1603_v48, %v1598_v21  ;;  %1645 = vst [vmem:[#allocation2 + $0xb1] sm:$0xff] %v5664_v41  ;;  %1646 = vst [vmem:[#allocation2 + $0xc1] sm:$0xff] %v5666_v35  ;;  %v2191_v48 = vld [vmem:[%s6341_s4 + $0x350] sm:$0xff]  ;;  %v1693_v26 = vld [vmem:[#allocation2 + $0xa1] sm:$0xff] }
 0x28d   :  { %1647 = vst [vmem:[#allocation2 + $0xd1] sm:$0xff] %v5668_v28  ;;  %1648 = vst [vmem:[#allocation2 + $0xe1] sm:$0xff] %v5670_v5  ;;  %v1661_v49 = vld [vmem:[#allocation2 + $0xa0] sm:$0xff]  ;;  %v2186_v58 = vld [vmem:[%s6341_s4 + $0x328] sm:$0xff] }
 0x28e   :  { %1649 = vst [vmem:[#allocation2 + $0xf1] sm:$0xff] %v5672_v20  ;;  %1650 = vst [vmem:[#allocation2 + $0x101] sm:$0xff] %v5674_v7  ;;  %v5682_v25 = vmax.f32 %v1619_v44, 0.0  ;;  %v5684_v62 = vmax.f32 %v1620_v52, 0.0  ;;  %v2201_v59 = vld [vmem:[%s6341_s4 + $0x3a0] sm:$0xff]  ;;  %v2200_v44 = vld [vmem:[%s6341_s4 + $0x398] sm:$0xff] }
 0x28f   :  { %v1749_v34 = vld [vmem:[#allocation2 + $0x10] sm:$0xff]  ;;  %v5695_v9 = vld [vmem:[#allocation2 + $0x20] sm:$0xff] }
 0x290   :  { %1651 = vst [vmem:[#allocation2 + $0x111] sm:$0xff] %v5682_v25  ;;  %1652 = vst [vmem:[#allocation2 + $0x121] sm:$0xff] %v5684_v62  ;;  %2438 = vmatprep.mubr.f32.mxu0 %v1749_v34  ;;  %2299 = vmatmul.mubr.f32.gmra.mxu1 %v1749_v34  ;;  %v5705_v4 = vld [vmem:[#allocation2 + $0x12] sm:$0xff]  ;;  %v5722_v43 = vld [vmem:[#allocation2 + $0x22] sm:$0xff] }
 0x291   :  { %2439 = vmatmul.mubr.f32.vlgmr.msra.gmra.mxu0 %v1717_v61  ;;  %2303 = vmatprep.mubr.f32.mxu1 %v5639_v56  ;;  %v5712_v54 = vld [vmem:[#allocation2 + $0x30] sm:$0xff]  ;;  %v5729_v24 = vld [vmem:[#allocation2 + $0x40] sm:$0xff]  ;;  %v2184_v61 = vld [vmem:[%s6341_s4 + $0x318] sm:$0xff] }
 0x292   :  { %2443 = vmatprep.mubr.f32.mxu0 %v5695_v9  ;;  %3844 = vmatpush3.msra.mxu0 %v2196_v40  ;;  %v5739_v46 = vld [vmem:[#allocation2 + $0x32] sm:$0xff]  ;;  %v5756_v36 = vld [vmem:[#allocation2 + $0x42] sm:$0xff] }
 0x293   :  { %3845 = vmatprep.subr.mxu0 %v2211_v51  ;;  %v5746_v16 = vld [vmem:[#allocation2 + $0x50] sm:$0xff]  ;;  %v5763_v6 = vld [vmem:[#allocation2 + $0x60] sm:$0xff] }
 0x294   :  { %2304 = vmatmul.mubr.f32.gmra.mxu1 %v5695_v9  ;;  %3846 = vmatpush3.msra.mxu0 %v2195_v11  ;;  %v5773_v18 = vld [vmem:[#allocation2 + $0x52] sm:$0xff]  ;;  %v5790_v13 = vld [vmem:[#allocation2 + $0x62] sm:$0xff] }
 0x295   :  { %2444 = vmatmul.mubr.f32.gmra.mxu0 %v5705_v4  ;;  %2308 = vmatprep.mubr.f32.mxu1 %v5641_v27  ;;  %v5780_v55 = vld [vmem:[#allocation2 + $0x70] sm:$0xff]  ;;  %v5796_v30 = vld [vmem:[#allocation2 + $0x80] sm:$0xff]  ;;  %v2198_v11 = vld [vmem:[%s6341_s4 + $0x388] sm:$0xff] }
 0x296   :  { %2448 = vmatprep.mubr.f32.mxu0 %v5712_v54  ;;  %3847 = vmatprep.subr.mxu0 %v2210_v14  ;;  %v5805_v17 = vld [vmem:[#allocation2 + $0x72] sm:$0xff]  ;;  %v2185_v31 = vld [vmem:[%s6341_s4 + $0x320] sm:$0xff] }
 0x297   :  { %3848 = vmatpush3.msra.mxu0 %v2194_v32  ;;  %v1757_v21 = vld [vmem:[#allocation2 + $0xb0] sm:$0xff]  ;;  %v1725_v52 = vld [vmem:[#allocation2 + $0xa2] sm:$0xff] }
 0x298   :  { %2309 = vmatmul.mubr.f32.gmra.mxu1 %v5712_v54  ;;  %3849 = vmatprep.subr.mxu0 %v2209_v12  ;;  %v2199_v34 = vld [vmem:[%s6341_s4 + $0x390] sm:$0xff]  ;;  %v5822_v40 = vld [vmem:[#allocation2 + $0xc0] sm:$0xff]  ;;  %v2182_v32 = vld [vmem:[%s6341_s4 + $0x308] sm:$0xff] }
 0x299   :  { %2449 = vmatmul.mubr.f32.gmra.mxu0 %v5722_v43  ;;  %2313 = vmatprep.mubr.f32.mxu1 %v5643_v45  ;;  %v2183_v51 = vld [vmem:[%s6341_s4 + $0x310] sm:$0xff] }
 0x29a   :  { %2453 = vmatprep.mubr.f32.mxu0 %v5729_v24  ;;  %3850 = vmatpush3.msra.mxu0 %v2193_v15  ;;  %v5832_v14 = vld [vmem:[#allocation2 + $0xb2] sm:$0xff]  ;;  %v2197_v15 = vld [vmem:[%s6341_s4 + $0x380] sm:$0xff] }
 0x29b   :  { %3851 = vmatprep.subr.mxu0 %v2208_v10  ;;  %v5839_v12 = vld [vmem:[#allocation2 + $0xd0] sm:$0xff]  ;;  %v2181_v10 = vld [vmem:[%s6341_s4 + $0x300] sm:$0xff] }
 0x29c   :  { %2314 = vmatmul.mubr.f32.gmra.mxu1 %v5729_v24  ;;  %3852 = vmatpush3.msra.mxu0 %v2192_v39  ;;  %v5849_v39 = vld [vmem:[#allocation2 + $0xc2] sm:$0xff] }
 0x29d   :  { %2454 = vmatmul.mubr.f32.gmra.mxu0 %v5739_v46  ;;  %2318 = vmatprep.mubr.f32.mxu1 %v5645_v29 }
 0x29e   :  { %2458 = vmatprep.mubr.f32.mxu0 %v5746_v16  ;;  %3853 = vmatprep.subr.mxu0 %v2207_v47  ;;  %v5853_v47 = vld [vmem:[#allocation2 + $0xe0] sm:$0xff] }
 0x29f   :  { %3854 = vmatpush3.msra.mxu0 %v2191_v48  ;;  %v5858_v48 = vld [vmem:[#allocation2 + $0xd2] sm:$0xff] }
 0x2a0   :  { %2319 = vmatmul.mubr.f32.gmra.mxu1 %v5746_v16  ;;  %3855 = vmatprep.subr.mxu0 %v2206_v63  ;;  %v5862_v63 = vld [vmem:[#allocation2 + $0xf0] sm:$0xff] }
 0x2a1   :  { %2459 = vmatmul.mubr.f32.gmra.mxu0 %v5756_v36  ;;  %2323 = vmatprep.mubr.f32.mxu1 %v5647_v33 }
 0x2a2   :  { %2463 = vmatprep.mubr.f32.mxu0 %v5763_v6  ;;  %3856 = vmatpush3.msra.mxu0 %v2190_v57  ;;  %v5866_v57 = vld [vmem:[#allocation2 + $0xe2] sm:$0xff] }
 0x2a3   :  { %3857 = vmatprep.subr.mxu0 %v2205_v22  ;;  %v5870_v22 = vld [vmem:[#allocation2 + $0x100] sm:$0xff] }
 0x2a4   :  { %2324 = vmatmul.mubr.f32.gmra.mxu1 %v5763_v6  ;;  %3858 = vmatpush3.msra.mxu0 %v2189_v8  ;;  %v5874_v8 = vld [vmem:[#allocation2 + $0xf2] sm:$0xff] }
 0x2a5   :  { %2464 = vmatmul.mubr.f32.gmra.mxu0 %v5773_v18  ;;  %2328 = vmatprep.mubr.f32.mxu1 %v5649_v1 }
 0x2a6   :  { %2468 = vmatprep.mubr.f32.mxu0 %v5780_v55  ;;  %3859 = vmatprep.subr.mxu0 %v2204_v3  ;;  %v5878_v3 = vld [vmem:[#allocation2 + $0x110] sm:$0xff] }
 0x2a7   :  { %3860 = vmatpush3.msra.mxu0 %v2188_v0  ;;  %v5882_v0 = vld [vmem:[#allocation2 + $0x102] sm:$0xff] }
 0x2a8   :  { %2329 = vmatmul.mubr.f32.gmra.mxu1 %v5780_v55  ;;  %3861 = vmatprep.subr.mxu0 %v2203_v53  ;;  %v5885_v53 = vld [vmem:[#allocation2 + $0x120] sm:$0xff] }
 0x2a9   :  { %2469 = vmatmul.mubr.f32.gmra.mxu0 %v5790_v13  ;;  %2333 = vmatprep.mubr.f32.mxu1 %v1693_v26  ;;  %v5889_v26 = vld [vmem:[#allocation2 + $0x112] sm:$0xff] }
 0x2aa   :  { %2473 = vmatprep.mubr.f32.mxu0 %v5796_v30  ;;  %3862 = vmatpush3.msra.mxu0 %v2187_v38  ;;  %v2227_v38 = vld [vmem:[%s6341_s4 + $0x470] sm:$0xff] }
 0x2ab   :  { %3863 = vmatprep.subr.mxu0 %v2202_v23 }
 0x2ac   :  { %2334 = vmatmul.mubr.f32.gmra.mxu1 %v1661_v49  ;;  %3864 = vmatpush3.msra.mxu0 %v2186_v58 }
 0x2ad   :  { %2474 = vmatmul.mubr.f32.gmra.mxu0 %v5805_v17  ;;  %2338 = vmatprep.mubr.f32.mxu1 %v5664_v41 }
 0x2ae   :  { %2478 = vmatprep.mubr.f32.mxu0 %v1757_v21  ;;  %3865 = vmatprep.subr.mxu0 %v2201_v59 }
 0x2af   :  { %3866 = vmatpush3.msra.mxu0 %v2185_v31 }
 0x2b0   :  { %2339 = vmatmul.mubr.f32.gmra.mxu1 %v1757_v21  ;;  %3867 = vmatprep.subr.mxu0 %v2200_v44 }
 0x2b1   :  { %2479 = vmatmul.mubr.f32.gmra.mxu0 %v1725_v52  ;;  %2343 = vmatprep.mubr.f32.mxu1 %v5666_v35 }
 0x2b2   :  { %2483 = vmatprep.mubr.f32.mxu0 %v5822_v40  ;;  %3868 = vmatpush3.msra.mxu0 %v2184_v61 }
 0x2b3   :  { %3869 = vmatprep.subr.mxu0 %v2199_v34 }
 0x2b4   :  { %2344 = vmatmul.mubr.f32.gmra.mxu1 %v5822_v40  ;;  %3870 = vmatpush3.msra.mxu0 %v2183_v51 }
 0x2b5   :  { %2484 = vmatmul.mubr.f32.gmra.mxu0 %v5832_v14  ;;  %2348 = vmatprep.mubr.f32.mxu1 %v5668_v28 }
 0x2b6   :  { %2488 = vmatprep.mubr.f32.mxu0 %v5839_v12  ;;  %3871 = vmatprep.subr.mxu0 %v2198_v11 }
 0x2b7   :  { %3872 = vmatpush3.msra.mxu0 %v2182_v32 }
 0x2b8   :  { %2349 = vmatmul.mubr.f32.gmra.mxu1 %v5839_v12  ;;  %3873 = vmatprep.subr.mxu0 %v2197_v15 }
 0x2b9   :  { %2489 = vmatmul.mubr.f32.gmra.mxu0 %v5849_v39  ;;  %2353 = vmatprep.mubr.f32.mxu1 %v5670_v5 }
 0x2ba   :  { %2493 = vmatprep.mubr.f32.mxu0 %v5853_v47  ;;  %3874 = vmatpush3.msra.mxu0 %v2181_v10 }
 0x2bb   :  { %4171 = vmatprep.subr.mxu0 %v6401_v19 }
 0x2bc   :  { %2354 = vmatmul.mubr.f32.gmra.mxu1 %v5853_v47 }
 0x2bd   :  { %2494 = vmatmul.mubr.f32.gmra.mxu0 %v5858_v48  ;;  %2358 = vmatprep.mubr.f32.mxu1 %v5672_v20 }
 0x2be   :  { %2498 = vmatprep.mubr.f32.mxu0 %v5862_v63 }
 0x2c0   :  { %2359 = vmatmul.mubr.f32.gmra.mxu1 %v5862_v63 }
 0x2c1   :  { %2499 = vmatmul.mubr.f32.gmra.mxu0 %v5866_v57  ;;  %2363 = vmatprep.mubr.f32.mxu1 %v5674_v7 }
 0x2c2   :  { %2503 = vmatprep.mubr.f32.mxu0 %v5870_v22 }
 0x2c4   :  { %2364 = vmatmul.mubr.f32.gmra.mxu1 %v5870_v22 }
 0x2c5   :  { %2504 = vmatmul.mubr.f32.gmra.mxu0 %v5874_v8  ;;  %2368 = vmatprep.mubr.f32.mxu1 %v5682_v25 }
 0x2c6   :  { %2508 = vmatprep.mubr.f32.mxu0 %v5878_v3 }
 0x2c8   :  { %2369 = vmatmul.mubr.f32.gmra.mxu1 %v5878_v3 }
 0x2c9   :  { %2509 = vmatmul.mubr.f32.gmra.mxu0 %v5882_v0  ;;  %2583 = vmatprep.mubr.f32.mxu1 %v5705_v4  ;;  %v2226_v4 = vld [vmem:[%s6341_s4 + $0x468] sm:$0xff] }
 0x2ca   :  { %2513 = vmatprep.mubr.f32.mxu0 %v5885_v53 }
 0x2cc   :  { %2584 = vmatmul.mubr.f32.vlgmr.msra.gmra.mxu1 %v5637_v42  ;;  %v2224_v42 = vld [vmem:[%s6341_s4 + $0x458] sm:$0xff] }
 0x2cd   :  { %2514 = vmatmul.mubr.f32.gmra.mxu0 %v5889_v26  ;;  %2588 = vmatprep.mubr.f32.mxu1 %v5722_v43 }
 0x2ce   :  { %2728 = vmatprep.mubr.f32.mxu0 %v5639_v56  ;;  %4116 = vmatpush3.msra.mxu1 %v5610_v50  ;;  %v2225_v50 = vld [vmem:[%s6341_s4 + $0x460] sm:$0xff] }
 0x2cf   :  { %4117 = vmatprep.subr.mxu1 %v2227_v38 }
 0x2d0   :  { %2589 = vmatmul.mubr.f32.gmra.mxu1 %v5639_v56  ;;  %v2223_v56 = vld [vmem:[%s6341_s4 + $0x450] sm:$0xff] }
 0x2d1   :  { %2729 = vmatmul.mubr.f32.vlgmr.msra.gmra.mxu0 %v5695_v9  ;;  %2593 = vmatprep.mubr.f32.mxu1 %v5739_v46  ;;  %v1852_v9 = vld [vmem:[#allocation2 + $0x90] sm:$0xff] }
 0x2d2   :  { %2733 = vmatprep.mubr.f32.mxu0 %v5641_v27  ;;  %4118 = vmatpush3.msra.mxu1 %v2227_v38 }
 0x2d3   :  { %4119 = vmatprep.subr.mxu1 %v2226_v4 }
 0x2d4   :  { %2594 = vmatmul.mubr.f32.gmra.mxu1 %v5641_v27  ;;  %v2222_v27 = vld [vmem:[%s6341_s4 + $0x448] sm:$0xff] }
 0x2d5   :  { %2734 = vmatmul.mubr.f32.gmra.mxu0 %v5712_v54  ;;  %2598 = vmatprep.mubr.f32.mxu1 %v5756_v36  ;;  %v2219_v54 = vld [vmem:[%s6341_s4 + $0x430] sm:$0xff] }
 0x2d6   :  { %2738 = vmatprep.mubr.f32.mxu0 %v5643_v45  ;;  %4120 = vmatpush3.msra.mxu1 %v2226_v4 }
 0x2d7   :  { %4121 = vmatprep.subr.mxu1 %v2225_v50 }
 0x2d8   :  { %2599 = vmatmul.mubr.f32.gmra.mxu1 %v5643_v45  ;;  %v5935_v45 = vld [vmem:[#allocation2 + $0x82] sm:$0xff] }
 0x2d9   :  { %2739 = vmatmul.mubr.f32.gmra.mxu0 %v5729_v24  ;;  %2603 = vmatprep.mubr.f32.mxu1 %v5773_v18  ;;  %v2213_v24 = vld [vmem:[%s6341_s4 + $0x400] sm:$0xff] }
 0x2da   :  { %2743 = vmatprep.mubr.f32.mxu0 %v5645_v29  ;;  %4122 = vmatpush3.msra.mxu1 %v2225_v50 }
 0x2db   :  { %4123 = vmatprep.subr.mxu1 %v2224_v42 }
 0x2dc   :  { %2604 = vmatmul.mubr.f32.gmra.mxu1 %v5645_v29  ;;  %v2221_v29 = vld [vmem:[%s6341_s4 + $0x440] sm:$0xff] }
 0x2dd   :  { %2744 = vmatmul.mubr.f32.gmra.mxu0 %v5746_v16  ;;  %2608 = vmatprep.mubr.f32.mxu1 %v5790_v13 }
 0x2de   :  { %2748 = vmatprep.mubr.f32.mxu0 %v5647_v33  ;;  %4124 = vmatpush3.msra.mxu1 %v2224_v42 }
 0x2df   :  { %4125 = vmatprep.subr.mxu1 %v2223_v56 }
 0x2e0   :  { %2609 = vmatmul.mubr.f32.gmra.mxu1 %v5647_v33  ;;  %v1884_v33 = vld [vmem:[#allocation2 + $0x91] sm:$0xff] }
 0x2e1   :  { %2749 = vmatmul.mubr.f32.gmra.mxu0 %v5763_v6  ;;  %2613 = vmatprep.mubr.f32.mxu1 %v5805_v17 }
 0x2e2   :  { %2753 = vmatprep.mubr.f32.mxu0 %v5649_v1  ;;  %4126 = vmatpush3.msra.mxu1 %v2223_v56 }
 0x2e3   :  { %4127 = vmatprep.subr.mxu1 %v2222_v27 }
 0x2e4   :  { %2614 = vmatmul.mubr.f32.gmra.mxu1 %v5649_v1  ;;  %v2220_v1 = vld [vmem:[%s6341_s4 + $0x438] sm:$0xff] }
 0x2e5   :  { %2754 = vmatmul.mubr.f32.gmra.mxu0 %v5780_v55  ;;  %2618 = vmatprep.mubr.f32.mxu1 %v5935_v45 }
 0x2e6   :  { %2758 = vmatprep.mubr.f32.mxu0 %v5651_v37  ;;  %4128 = vmatpush3.msra.mxu1 %v2222_v27 }
 0x2e7   :  { %4129 = vmatprep.subr.mxu1 %v2221_v29 }
 0x2e8   :  { %2619 = vmatmul.mubr.f32.gmra.mxu1 %v5651_v37  ;;  %v2218_v37 = vld [vmem:[%s6341_s4 + $0x428] sm:$0xff] }
 0x2e9   :  { %2759 = vmatmul.mubr.f32.gmra.mxu0 %v5796_v30  ;;  %2623 = vmatprep.mubr.f32.mxu1 %v5832_v14 }
 0x2ea   :  { %2763 = vmatprep.mubr.f32.mxu0 %v1884_v33  ;;  %4130 = vmatpush3.msra.mxu1 %v2221_v29 }
 0x2eb   :  { %4131 = vmatprep.subr.mxu1 %v2220_v1 }
 0x2ec   :  { %2624 = vmatmul.mubr.f32.gmra.mxu1 %v5664_v41  ;;  %v2217_v41 = vld [vmem:[%s6341_s4 + $0x420] sm:$0xff] }
 0x2ed   :  { %2764 = vmatmul.mubr.f32.gmra.mxu0 %v1852_v9  ;;  %2628 = vmatprep.mubr.f32.mxu1 %v5849_v39 }
 0x2ee   :  { %2768 = vmatprep.mubr.f32.mxu0 %v5666_v35  ;;  %4132 = vmatpush3.msra.mxu1 %v2220_v1 }
 0x2ef   :  { %4133 = vmatprep.subr.mxu1 %v2219_v54 }
 0x2f0   :  { %2629 = vmatmul.mubr.f32.gmra.mxu1 %v5666_v35  ;;  %v2216_v35 = vld [vmem:[%s6341_s4 + $0x418] sm:$0xff] }
 0x2f1   :  { %2769 = vmatmul.mubr.f32.gmra.mxu0 %v5822_v40  ;;  %2633 = vmatprep.mubr.f32.mxu1 %v5858_v48 }
 0x2f2   :  { %2773 = vmatprep.mubr.f32.mxu0 %v5668_v28  ;;  %4134 = vmatpush3.msra.mxu1 %v2219_v54 }
 0x2f3   :  { %4135 = vmatprep.subr.mxu1 %v2218_v37 }
 0x2f4   :  { %2634 = vmatmul.mubr.f32.gmra.mxu1 %v5668_v28  ;;  %v2215_v28 = vld [vmem:[%s6341_s4 + $0x410] sm:$0xff] }
 0x2f5   :  { %2774 = vmatmul.mubr.f32.gmra.mxu0 %v5839_v12  ;;  %2638 = vmatprep.mubr.f32.mxu1 %v5866_v57 }
 0x2f6   :  { %2778 = vmatprep.mubr.f32.mxu0 %v5670_v5  ;;  %4136 = vmatpush3.msra.mxu1 %v2218_v37 }
 0x2f7   :  { %4137 = vmatprep.subr.mxu1 %v2217_v41 }
 0x2f8   :  { %2639 = vmatmul.mubr.f32.gmra.mxu1 %v5670_v5  ;;  %v2214_v5 = vld [vmem:[%s6341_s4 + $0x408] sm:$0xff] }
 0x2f9   :  { %2779 = vmatmul.mubr.f32.gmra.mxu0 %v5853_v47  ;;  %2643 = vmatprep.mubr.f32.mxu1 %v5874_v8 }
 0x2fa   :  { %2783 = vmatprep.mubr.f32.mxu0 %v5672_v20  ;;  %4138 = vmatpush3.msra.mxu1 %v2217_v41 }
 0x2fb   :  { %4139 = vmatprep.subr.mxu1 %v2216_v35 }
 0x2fc   :  { %2644 = vmatmul.mubr.f32.gmra.mxu1 %v5672_v20  ;;  %v1828_v20 = vld [vmem:[#allocation2 + $0x122] sm:$0xff] }
 0x2fd   :  { %2784 = vmatmul.mubr.f32.gmra.mxu0 %v5862_v63  ;;  %2648 = vmatprep.mubr.f32.mxu1 %v5882_v0 }
 0x2fe   :  { %2788 = vmatprep.mubr.f32.mxu0 %v5674_v7  ;;  %4140 = vmatpush3.msra.mxu1 %v2216_v35 }
 0x2ff   :  { %4141 = vmatprep.subr.mxu1 %v2215_v28 }
 0x300   :  { %2649 = vmatmul.mubr.f32.gmra.mxu1 %v5674_v7  ;;  %v1892_v7 = vld [vmem:[#allocation2 + $0x131] sm:$0xff] }
 0x301   :  { %2789 = vmatmul.mubr.f32.gmra.mxu0 %v5870_v22  ;;  %2653 = vmatprep.mubr.f32.mxu1 %v5889_v26 }
 0x302   :  { %2793 = vmatprep.mubr.f32.mxu0 %v5682_v25  ;;  %4142 = vmatpush3.msra.mxu1 %v2215_v28 }
 0x303   :  { %4143 = vmatprep.subr.mxu1 %v2214_v5 }
 0x304   :  { %2654 = vmatmul.mubr.f32.gmra.mxu1 %v5682_v25  ;;  %v1860_v25 = vld [vmem:[#allocation2 + $0x130] sm:$0xff] }
 0x305   :  { %2794 = vmatmul.mubr.f32.gmra.mxu0 %v5878_v3  ;;  %2658 = vmatprep.mubr.f32.mxu1 %v1828_v20 }
 0x306   :  { %2798 = vmatprep.mubr.f32.mxu0 %v5684_v62  ;;  %4144 = vmatpush3.msra.mxu1 %v2214_v5 }
 0x307   :  { %4145 = vmatprep.subr.mxu1 %v2213_v24 }
 0x308   :  { %2659 = vmatmul.mubr.f32.gmra.mxu1 %v5684_v62  ;;  %v1916_v62 = vld [vmem:[#allocation2 + $0x92] sm:$0xff] }
 0x309   :  { %2799 = vmatmul.mubr.f32.gmra.mxu0 %v5885_v53  ;;  %4147 = vmatprep.mubr.f32.mxu1 %v5722_v43  ;;  %v1924_v43 = vld [vmem:[#allocation2 + $0x132] sm:$0xff] }
 0x30a   :  { %2803 = vmatprep.mubr.f32.mxu0 %v1892_v7  ;;  %4146 = vmatpush3.msra.mxu1 %v2213_v24 }
 0x30b   :  { %4206 = vmatprep.subr.mxu1 %v6401_v19 }
 0x30c   :  { %4148 = vmatmul.mubr.f32.vlgmr.msra.gmra.mxu1 %v5739_v46  ;;  %v3635_v46 = vpop.f32.mrf.mxu1 }
 0x30d   :  { %2804 = vmatmul.mubr.f32.gmra.mxu0 %v1860_v25  ;;  %4150 = vmatprep.mubr.f32.mxu1 %v5756_v36 }
 0x30e   :  { %4203 = vmatprep.mubr.msk.f32.mxu0 %vm4249_vm0, %v6401_v19  ;;  %v3636_v16 = vpop.f32.mrf.mxu1 }
 0x30f   :  { %v3637_v23 = vadd.f32 %v3636_v16, %v3635_v46 }
 0x310   :  { %4151 = vmatmul.mubr.f32.gmra.mxu1 %v5773_v18 }
 0x311   :  { %4153 = vmatprep.mubr.f32.mxu1 %v5790_v13 }
 0x314   :  { %4154 = vmatmul.mubr.f32.gmra.mxu1 %v5805_v17 }
 0x315   :  { %4156 = vmatprep.mubr.f32.mxu1 %v5935_v45 }
 0x318   :  { %4157 = vmatmul.mubr.f32.gmra.mxu1 %v1916_v62 }
 0x319   :  { %4159 = vmatprep.mubr.f32.mxu1 %v5849_v39 }
 0x31c   :  { %4160 = vmatmul.mubr.f32.gmra.mxu1 %v5858_v48 }
 0x31d   :  { %4162 = vmatprep.mubr.f32.mxu1 %v5866_v57 }
 0x320   :  { %4163 = vmatmul.mubr.f32.gmra.mxu1 %v5874_v8 }
 0x321   :  { %4165 = vmatprep.mubr.f32.mxu1 %v5882_v0 }
 0x324   :  { %4166 = vmatmul.mubr.f32.gmra.mxu1 %v5889_v26 }
 0x325   :  { %4168 = vmatprep.mubr.f32.mxu1 %v1828_v20 }
 0x328   :  { %4169 = vmatmul.mubr.f32.gmra.mxu1 %v1924_v43 }
 0x329   :  { %4238 = vmatprep.mubr.msk.f32.mxu1 %vm4249_vm0, %v6401_v19 }
 0x350   :  { %v3638_v36 = vpop.f32.mrf.mxu1 }
 0x351   :  { %v3715_v6 = vpop.f32.mrf.mxu0 }
 0x352   :  { %v3639_v18 = vpop.f32.mrf.mxu1 }
 0x353   :  { %v3640_v55 = vadd.f32 %v3639_v18, %v3638_v36  ;;  %v3716_v13 = vpop.f32.mrf.mxu0 }
 0x354   :  { %v3717_v30 = vadd.f32 %v3716_v13, %v3715_v6  ;;  %v3641_v49 = vpop.f32.mrf.mxu1 }
 0x355   :  { %v3718_v58 = vpop.f32.mrf.mxu0 }
 0x356   :  { %v6016_v59 = vadd.f32 %v3717_v30, %v3637_v23  ;;  %v3642_v17 = vpop.f32.mrf.mxu1 }
 0x357   :  { %v3643_v31 = vadd.f32 %v3642_v17, %v3641_v49  ;;  %v3719_v21 = vpop.f32.mrf.mxu0 }
 0x358   :  { %v3720_v44 = vadd.f32 %v3719_v21, %v3718_v58  ;;  %v3644_v52 = vpop.f32.mrf.mxu1 }
 0x359   :  { %v3721_v61 = vpop.f32.mrf.mxu0 }
 0x35a   :  { %v6018_v34 = vadd.f32 %v3720_v44, %v3640_v55  ;;  %v3645_v40 = vpop.f32.mrf.mxu1 }
 0x35b   :  { %v3646_v51 = vadd.f32 %v3645_v40, %v3644_v52  ;;  %v3722_v11 = vpop.f32.mrf.mxu0 }
 0x35c   :  { %v3723_v14 = vadd.f32 %v3722_v11, %v3721_v61  ;;  %v3647_v32 = vpop.f32.mrf.mxu1 }
 0x35d   :  { %v3724_v12 = vpop.f32.mrf.mxu0 }
 0x35e   :  { %v6020_v15 = vadd.f32 %v3723_v14, %v3643_v31  ;;  %v3648_v10 = vpop.f32.mrf.mxu1 }
 0x35f   :  { %v3649_v39 = vadd.f32 %v3648_v10, %v3647_v32  ;;  %v3725_v47 = vpop.f32.mrf.mxu0 }
 0x360   :  { %v3726_v48 = vadd.f32 %v3725_v47, %v3724_v12  ;;  %v3650_v63 = vpop.f32.mrf.mxu1 }
 0x361   :  { %v3727_v57 = vpop.f32.mrf.mxu0 }
 0x362   :  { %v6022_v22 = vadd.f32 %v3726_v48, %v3646_v51  ;;  %v3651_v8 = vpop.f32.mrf.mxu1 }
 0x363   :  { %v3652_v3 = vadd.f32 %v3651_v8, %v3650_v63  ;;  %v3728_v0 = vpop.f32.mrf.mxu0 }
 0x364   :  { %v3729_v53 = vadd.f32 %v3728_v0, %v3727_v57  ;;  %v3653_v26 = vpop.f32.mrf.mxu1 }
 0x365   :  { %v3730_v38 = vpop.f32.mrf.mxu0 }
 0x366   :  { %v6024_v4 = vadd.f32 %v3729_v53, %v3649_v39  ;;  %v3654_v50 = vpop.f32.mrf.mxu1 }
 0x367   :  { %v3655_v42 = vadd.f32 %v3654_v50, %v3653_v26  ;;  %v3731_v56 = vpop.f32.mrf.mxu0 }
 0x368   :  { %v3732_v27 = vadd.f32 %v3731_v56, %v3730_v38  ;;  %v3656_v45 = vpop.f32.mrf.mxu1 }
 0x369   :  { %v3733_v29 = vpop.f32.mrf.mxu0 }
 0x36a   :  { %v6026_v33 = vadd.f32 %v3732_v27, %v3652_v3  ;;  %v3657_v1 = vpop.f32.mrf.mxu1 }
 0x36b   :  { %v3658_v9 = vadd.f32 %v3657_v1, %v3656_v45  ;;  %v3734_v54 = vpop.f32.mrf.mxu0 }
 0x36c   :  { %v3735_v37 = vadd.f32 %v3734_v54, %v3733_v29  ;;  %v3659_v41 = vpop.f32.mrf.mxu1 }
 0x36d   :  { %v3736_v35 = vpop.f32.mrf.mxu0 }
 0x36e   :  { %v6028_v28 = vadd.f32 %v3735_v37, %v3655_v42  ;;  %v3660_v5 = vpop.f32.mrf.mxu1 }
 0x36f   :  { %v3661_v20 = vadd.f32 %v3660_v5, %v3659_v41  ;;  %v3737_v24 = vpop.f32.mrf.mxu0 }
 0x370   :  { %v3738_v7 = vadd.f32 %v3737_v24, %v3736_v35  ;;  %v3662_v25 = vpop.f32.mrf.mxu1 }
 0x371   :  { %v3739_v62 = vpop.f32.mrf.mxu0 }
 0x372   :  { %v6030_v43 = vadd.f32 %v3738_v7, %v3658_v9  ;;  %v3663_v46 = vpop.f32.mrf.mxu1 }
 0x373   :  { %v3664_v16 = vadd.f32 %v3663_v46, %v3662_v25  ;;  %v3740_v36 = vpop.f32.mrf.mxu0 }
 0x374   :  { %v3741_v6 = vadd.f32 %v3740_v36, %v3739_v62  ;;  %v3665_v18 = vpop.f32.mrf.mxu1 }
 0x375   :  { %v3742_v55 = vpop.f32.mrf.mxu0 }
 0x376   :  { %v6032_v13 = vadd.f32 %v3741_v6, %v3661_v20  ;;  %v3666_v23 = vpop.f32.mrf.mxu1 }
 0x377   :  { %v3667_v30 = vadd.f32 %v3666_v23, %v3665_v18  ;;  %v3743_v49 = vpop.f32.mrf.mxu0 }
 0x378   :  { %v3744_v58 = vadd.f32 %v3743_v49, %v3742_v55  ;;  %v3668_v17 = vpop.f32.mrf.mxu1 }
 0x379   :  { %v3745_v31 = vpop.f32.mrf.mxu0 }
 0x37a   :  { %v6034_v21 = vadd.f32 %v3744_v58, %v3664_v16  ;;  %v3669_v44 = vpop.f32.mrf.mxu1 }
 0x37b   :  { %v3670_v52 = vadd.f32 %v3669_v44, %v3668_v17  ;;  %v3746_v61 = vpop.f32.mrf.mxu0 }
 0x37c   :  { %v3747_v40 = vadd.f32 %v3746_v61, %v3745_v31  ;;  %v3671_v51 = vpop.f32.mrf.mxu1 }
 0x37d   :  { %v3748_v11 = vpop.f32.mrf.mxu0 }
 0x37e   :  { %v6036_v14 = vadd.f32 %v3747_v40, %v3667_v30  ;;  %v3672_v32 = vpop.f32.mrf.mxu1 }
 0x37f   :  { %v3673_v12 = vadd.f32 %v3672_v32, %v3671_v51  ;;  %v3749_v10 = vpop.f32.mrf.mxu0 }
 0x380   :  { %v3750_v39 = vadd.f32 %v3749_v10, %v3748_v11  ;;  %v3674_v47 = vpop.f32.mrf.mxu1 }
 0x381   :  { %v3751_v48 = vpop.f32.mrf.mxu0 }
 0x382   :  { %v6038_v63 = vadd.f32 %v3750_v39, %v3670_v52  ;;  %v3675_v57 = vpop.f32.mrf.mxu1 }
 0x383   :  { %v3676_v8 = vadd.f32 %v3675_v57, %v3674_v47  ;;  %v3752_v3 = vpop.f32.mrf.mxu0 }
 0x384   :  { %v3753_v0 = vadd.f32 %v3752_v3, %v3751_v48  ;;  %v3677_v53 = vpop.f32.mrf.mxu1 }
 0x385   :  { %v3754_v26 = vpop.f32.mrf.mxu0 }
 0x386   :  { %v6040_v38 = vadd.f32 %v3753_v0, %v3673_v12  ;;  %v3678_v50 = vpop.f32.mrf.mxu1 }
 0x387   :  { %v3679_v42 = vadd.f32 %v3678_v50, %v3677_v53  ;;  %v3755_v56 = vpop.f32.mrf.mxu0 }
 0x388   :  { %v3756_v27 = vadd.f32 %v3755_v56, %v3754_v26  ;;  %v3680_v45 = vpop.f32.mrf.mxu1 }
 0x389   :  { %v3757_v29 = vpop.f32.mrf.mxu0 }
 0x38a   :  { %v6042_v1 = vadd.f32 %v3756_v27, %v3676_v8  ;;  %v3681_v9 = vpop.f32.mrf.mxu1 }
 0x38b   :  { %v6044_v54 = vadd.f32 %v3681_v9, %v3680_v45  ;;  %v3758_v37 = vpop.f32.mrf.mxu0 }
 0x38c   :  { %v3759_v41 = vadd.f32 %v3758_v37, %v3757_v29  ;;  %v3795_v35 = vpop.f32.mrf.mxu1 }
 0x38d   :  { %v6046_v5 = vpop.f32.mrf.mxu0 }
 0x38e   :  { %v6048_v20 = vadd.f32 %v3759_v41, %v3679_v42  ;;  %v3796_v24 = vpop.f32.mrf.mxu1 }
 0x38f   :  { %v6050_v7 = vpop.f32.mrf.mxu0  ;;  %v3797_v25 = vadd.f32 %v3796_v24, %v3795_v35 }
 0x390   :  { %v3798_v62 = vpop.f32.mrf.mxu1 }
 0x391   :  { %v2586_v46 = vadd.f32 %v3797_v25, %v6016_v59  ;;  %v3875_v16 = vpop.f32.mrf.mxu0 }
 0x392   :  { %v3799_v36 = vpop.f32.mrf.mxu1 }
 0x393   :  { %v3800_v6 = vadd.f32 %v3799_v36, %v3798_v62  ;;  %v3876_v18 = vpop.f32.mrf.mxu0 }
 0x394   :  { %v3877_v55 = vadd.f32 %v3876_v18, %v3875_v16  ;;  %v3801_v23 = vpop.f32.mrf.mxu1 }
 0x395   :  { %v2591_v30 = vadd.f32 %v3800_v6, %v6018_v34  ;;  %v3878_v49 = vpop.f32.mrf.mxu0 }
 0x396   :  { %v3802_v58 = vpop.f32.mrf.mxu1  ;;  %v6054_v17 = vadd.f32 %v3877_v55, %v2586_v46 }
 0x397   :  { %v3803_v31 = vadd.f32 %v3802_v58, %v3801_v23  ;;  %v3879_v44 = vpop.f32.mrf.mxu0 }
 0x398   :  { %6419 = vst [vmem:[#allocation33_spill] sm:$0xff] %v6054_v17  ;;  %v3880_v52 = vadd.f32 %v3879_v44, %v3878_v49  ;;  %v3804_v61 = vpop.f32.mrf.mxu1 }
 0x399   :  { %v2596_v40 = vadd.f32 %v3803_v31, %v6020_v15  ;;  %v3881_v51 = vpop.f32.mrf.mxu0 }
 0x39a   :  { %v3805_v59 = vpop.f32.mrf.mxu1  ;;  %v6057_v11 = vadd.f32 %v3880_v52, %v2591_v30 }
 0x39b   :  { %v3806_v32 = vadd.f32 %v3805_v59, %v3804_v61  ;;  %v3882_v12 = vpop.f32.mrf.mxu0 }
 0x39c   :  { %6420 = vst [vmem:[#allocation26_spill] sm:$0xff] %v6057_v11  ;;  %v3883_v10 = vadd.f32 %v3882_v12, %v3881_v51  ;;  %v3807_v39 = vpop.f32.mrf.mxu1 }
 0x39d   :  { %v2601_v34 = vadd.f32 %v3806_v32, %v6022_v22  ;;  %v3884_v47 = vpop.f32.mrf.mxu0 }
 0x39e   :  { %v3808_v48 = vpop.f32.mrf.mxu1  ;;  %v6060_v57 = vadd.f32 %v3883_v10, %v2596_v40 }
 0x39f   :  { %v3809_v8 = vadd.f32 %v3808_v48, %v3807_v39  ;;  %v3885_v3 = vpop.f32.mrf.mxu0 }
 0x3a0   :  { %6421 = vst [vmem:[#allocation25_spill] sm:$0xff] %v6060_v57  ;;  %v3886_v0 = vadd.f32 %v3885_v3, %v3884_v47  ;;  %v3810_v53 = vpop.f32.mrf.mxu1 }
 0x3a1   :  { %v2606_v15 = vadd.f32 %v3809_v8, %v6024_v4  ;;  %v3887_v26 = vpop.f32.mrf.mxu0 }
 0x3a2   :  { %v3811_v50 = vpop.f32.mrf.mxu1  ;;  %v6063_v42 = vadd.f32 %v3886_v0, %v2601_v34 }
 0x3a3   :  { %v3812_v56 = vadd.f32 %v3811_v50, %v3810_v53  ;;  %v3888_v27 = vpop.f32.mrf.mxu0 }
 0x3a4   :  { %6422 = vst [vmem:[#allocation34_spill] sm:$0xff] %v6063_v42  ;;  %v3889_v45 = vadd.f32 %v3888_v27, %v3887_v26  ;;  %v3813_v29 = vpop.f32.mrf.mxu1 }
 0x3a5   :  { %v6066_v22 = vadd.f32 %v3812_v56, %v6026_v33  ;;  %v6068_v9 = vpop.f32.mrf.mxu0 }
 0x3a6   :  { %6424 = vst [vmem:[#allocation24_spill] sm:$0xff] %v6068_v9  ;;  %v3814_v37 = vpop.f32.mrf.mxu1  ;;  %v6070_v41 = vadd.f32 %v3889_v45, %v2606_v15 }
 0x3a7   :  { %6423 = vst [vmem:[#allocation31_spill] sm:$0xff] %v6066_v22  ;;  %v3815_v35 = vadd.f32 %v3814_v37, %v3813_v29  ;;  %v6072_v24 = vpop.f32.mrf.mxu0 }
 0x3a8   :  { %6425 = vst [vmem:[#allocation32_spill] sm:$0xff] %v6070_v41  ;;  %6426 = vst [vmem:[#allocation23_spill] sm:$0xff] %v6072_v24  ;;  %v3816_v4 = vpop.f32.mrf.mxu1 }
 0x3a9   :  { %v6075_v25 = vadd.f32 %v3815_v35, %v6028_v28  ;;  %v6077_v62 = vpop.f32.mrf.mxu0 }
 0x3aa   :  { %v3817_v46 = vpop.f32.mrf.mxu1 }
 0x3ab   :  { %6427 = vst [vmem:[#allocation29_spill] sm:$0xff] %v6075_v25  ;;  %v3818_v16 = vadd.f32 %v3817_v46, %v3816_v4  ;;  %v6079_v36 = vpop.f32.mrf.mxu0 }
 0x3ac   :  { %v3819_v33 = vpop.f32.mrf.mxu1 }
 0x3ad   :  { %v6082_v6 = vadd.f32 %v3818_v16, %v6030_v43  ;;  %v6084_v18 = vpop.f32.mrf.mxu0 }
 0x3ae   :  { %v3820_v55 = vpop.f32.mrf.mxu1 }
 0x3af   :  { %6428 = vst [vmem:[#allocation22_spill] sm:$0xff] %v6082_v6  ;;  %v3821_v23 = vadd.f32 %v3820_v55, %v3819_v33  ;;  %v6086_v30 = vpop.f32.mrf.mxu0 }
 0x3b0   :  { %v6088_v49 = vpop.f32.mrf.mxu1 }
 0x3b1   :  { %v6091_v28 = vadd.f32 %v3821_v23, %v6032_v13  ;;  %v6093_v58 = vpop.f32.mrf.mxu0 }
 0x3b2   :  { %v6095_v31 = vpop.f32.mrf.mxu1 }
 0x3b3   :  { %v6097_v44 = vpop.f32.mrf.mxu0 }
 0x3b4   :  { %v3825_v52 = vpop.f32.mrf.mxu1 }
 0x3b5   :  { %v6099_v43 = vpop.f32.mrf.mxu0 }
 0x3b6   :  { %v3826_v61 = vpop.f32.mrf.mxu1 }
 0x3b7   :  { %v6101_v40 = vpop.f32.mrf.mxu0 }
 0x3b8   :  { %v3828_v51 = vpop.f32.mrf.mxu1 }
 0x3b9   :  { %v3905_v59 = vpop.f32.mrf.mxu0 }
 0x3ba   :  { %v3829_v32 = vpop.f32.mrf.mxu1 }
 0x3bb   :  { %v3906_v12 = vpop.f32.mrf.mxu0 }
 0x3bc   :  { %v3831_v10 = vpop.f32.mrf.mxu1 }
 0x3bd   :  { %v3908_v39 = vpop.f32.mrf.mxu0 }
 0x3be   :  { %v3832_v13 = vpop.f32.mrf.mxu1 }
 0x3bf   :  { %v3909_v34 = vpop.f32.mrf.mxu0 }
 0x3c0   :  { %v3834_v47 = vpop.f32.mrf.mxu1 }
 0x3c1   :  { %v3911_v8 = vpop.f32.mrf.mxu0 }
 0x3c2   :  { %v3835_v48 = vpop.f32.mrf.mxu1 }
 0x3c3   :  { %v3912_v53 = vpop.f32.mrf.mxu0 }
 0x3c4   :  { %v3837_v3 = vpop.f32.mrf.mxu1  ;;  %v3913_v24 = vadd.f32 %v3912_v53, %v3911_v8 }
 0x3c5   :  { %v3914_v50 = vpop.f32.mrf.mxu0 }
 0x3c6   :  { %v3838_v0 = vpop.f32.mrf.mxu1 }
 0x3c7   :  { %v3915_v45 = vpop.f32.mrf.mxu0  ;;  %v3839_v42 = vadd.f32 %v3838_v0, %v3837_v3  ;;  %v6444_v3 = vld [vmem:[#allocation31_spill] sm:$0xff] }
 0x3c8   :  { %v3840_v15 = vpop.f32.mrf.mxu1 }
 0x3c9   :  { %v3917_v35 = vpop.f32.mrf.mxu0 }
 0x3ca   :  { %v3841_v26 = vpop.f32.mrf.mxu1 }
 0x3cb   :  { %v3918_v16 = vpop.f32.mrf.mxu0  ;;  %v3842_v11 = vadd.f32 %v3841_v26, %v3840_v15  ;;  %v3827_v15 = vadd.f32 %v3826_v61, %v3825_v52  ;;  %v3910_v26 = vadd.f32 %v3909_v34, %v3908_v39  ;;  %v3895_v52 = vadd.f32 %v6079_v36, %v6077_v62  ;;  %v6438_v61 = vld [vmem:[#allocation24_spill] sm:$0xff]  ;;  %v6440_v62 = vld [vmem:[#allocation22_spill] sm:$0xff]  ;;  %v6443_v34 = vld [vmem:[#allocation29_spill] sm:$0xff] }
 0x3cc   :  { %v6103_v56 = vpop.f32.mrf.mxu1  ;;  %v3919_v25 = vadd.f32 %v3918_v16, %v3917_v35  ;;  %v6449_v16 = vld [vmem:[#allocation34_spill] sm:$0xff] }
 0x3cd   :  { %6429 = vst [vmem:[#allocation30_spill] sm:$0xff] %v6103_v56  ;;  %v3920_v23 = vpop.f32.mrf.mxu0 }
 0x3ce   :  { %v6105_v27 = vpop.f32.mrf.mxu1 }
 0x3cf   :  { %6430 = vst [vmem:[#allocation21_spill] sm:$0xff] %v6105_v27  ;;  %v3762_v27 = vadd.f32 %v6050_v7, %v6046_v5  ;;  %v3921_v17 = vpop.f32.mrf.mxu0  ;;  %v2656_v5 = vadd.f32 %v3839_v42, %v6048_v20 }
 0x3d0   :  { %v6107_v29 = vpop.f32.mrf.mxu1 }
 0x3d1   :  { %6431 = vst [vmem:[#allocation27_spill] sm:$0xff] %v6107_v29  ;;  %v2516_v57 = vadd.f32 %v3762_v27, %v6044_v54  ;;  %v3836_v29 = vadd.f32 %v3835_v48, %v3834_v47  ;;  %v2761_v48 = vadd.f32 %v3895_v52, %v6443_v34  ;;  %v3114_v52 = vld [vmem:[%s6344_s5] sm:$0x1] }
 0x3d2   :  { %v6109_v37 = vpop.f32.mrf.mxu1 }
 0x3d3   :  { %6432 = vst [vmem:[#allocation20_spill] sm:$0xff] %v6109_v37  ;;  %v2661_v22 = vadd.f32 %v3842_v11, %v2516_v57  ;;  %v3824_v11 = vadd.f32 %v6095_v31, %v6088_v49  ;;  %v3898_v31 = vadd.f32 %v6086_v30, %v6084_v18 }
 0x3d4   :  { %v6111_v4 = vpop.f32.mrf.mxu1 }
 0x3d5   :  { %6433 = vst [vmem:[#allocation28_spill] sm:$0xff] %v6111_v4  ;;  %v3833_v4 = vadd.f32 %v3832_v13, %v3831_v10  ;;  %v2801_v10 = vadd.f32 %v3919_v25, %v2656_v5  ;;  %v3901_v25 = vadd.f32 %v6097_v44, %v6093_v58  ;;  %v2766_v36 = vadd.f32 %v3898_v31, %v6440_v62  ;;  %v6451_v5 = vld [vmem:[#allocation25_spill] sm:$0xff] }
 0x3d6   :  { %v6113_v46 = vpop.f32.mrf.mxu1 }
 0x3d7   :  { %6434 = vst [vmem:[#allocation36_spill] sm:$0xff] %v6113_v46  ;;  %v3922_v46 = vadd.f32 %v3921_v17, %v3920_v23  ;;  %v2646_v54 = vadd.f32 %v3833_v4, %v6040_v38  ;;  %v3904_v38 = vadd.f32 %v6101_v40, %v6099_v43  ;;  %v2771_v30 = vadd.f32 %v3901_v25, %v6091_v28  ;;  %v6439_v40 = vld [vmem:[#allocation23_spill] sm:$0xff] }
 0x3d8   :  { %v6115_v33 = vpop.f32.mrf.mxu1 }
 0x3d9   :  { %6435 = vst [vmem:[#allocation37_spill] sm:$0xff] %v6115_v33  ;;  %v3830_v33 = vadd.f32 %v3829_v32, %v3828_v51  ;;  %v2806_v7 = vadd.f32 %v3922_v46, %v2661_v22  ;;  %v3907_v51 = vadd.f32 %v3906_v12, %v3905_v59  ;;  %v2791_v20 = vadd.f32 %v3913_v24, %v2646_v54  ;;  %v6453_v54 = vld [vmem:[#allocation26_spill] sm:$0xff] }
 0x3da   :  { %v6117_v55 = vpop.f32.mrf.mxu1  ;;  %v2631_v24 = vadd.f32 %v3824_v11, %v6034_v21  ;;  %v3892_v59 = vadd.f32 %v6439_v40, %v6438_v61  ;;  %v6458_v40 = vld [vmem:[#allocation35_spill] sm:$0xff] }
 0x3db   :  { %6436 = vst [vmem:[#allocation38_spill] sm:$0xff] %v6117_v55  ;;  %v3916_v55 = vadd.f32 %v3915_v45, %v3914_v50  ;;  %v2641_v57 = vadd.f32 %v3830_v33, %v6038_v63  ;;  %v6450_v33 = vld [vmem:[#allocation27_spill] sm:$0xff] }
 0x3dc   :  { %v6119_v60 = vpop.f32.mrf.mxu1  ;;  %v2776_v21 = vadd.f32 %v3904_v38, %v2631_v24  ;;  %v2756_v0 = vadd.f32 %v3892_v59, %v6444_v3  ;;  %v6446_v27 = vld [vmem:[#allocation28_spill] sm:$0xff]  ;;  %v6457_v38 = vmov 1.0  }
 0x3dd   :  { %v2786_v63 = vadd.f32 %v3910_v26, %v2641_v57  ;;  %v6455_v57 = vld [vmem:[#allocation33_spill] sm:$0xff] }
 0x3de   :  { %v6121_v2 = vpop.f32.mrf.mxu1  ;;  %v6174_v18 = vadd.f32 %v6119_v60, %v2776_v21  ;;  %v6212_v45 = vadd.f32 %v6446_v27, %v2756_v0  ;;  %v6448_v35 = vld [vmem:[#allocation36_spill] sm:$0xff] }
 0x3df   :  { %6437 = vst [vmem:[#allocation39_spill] sm:$0xff] %v6121_v2  ;;  %v2651_v2 = vadd.f32 %v3836_v29, %v6042_v1 }
 0x3e0   :  { %v4164_v56 = vpop.f32.mrf.mxu1  ;;  %v6442_v39 = vld [vmem:[#allocation37_spill] sm:$0xff]  ;;  %v3033_v8 = vmul.f32 %v6174_v18, %v6174_v18  ;;  %v3029_v23 = vmul.f32 %v6212_v45, %v6212_v45 }
 0x3e1   :  { %v2796_v47 = vadd.f32 %v3916_v55, %v2651_v2  ;;  %v2636_v2 = vadd.f32 %v3827_v15, %v6036_v14  ;;  %v6155_v14 = vadd.f32 %v4164_v56, %v2786_v63  ;;  %v6194_v13 = vadd.f32 %v6442_v39, %v2766_v36 }
 0x3e2   :  { %v2925_v37 = vpop.f32.mrf.mxu1  ;;  %v6445_v53 = vld [vmem:[#allocation38_spill] sm:$0xff]  ;;  %v2891_v55 = vadd.f32 %v6450_v33, %v6449_v16 }
 0x3e3   :  { %v2781_v49 = vadd.f32 %v3907_v51, %v2636_v2  ;;  %v3035_v43 = vmul.f32 %v6155_v14, %v6155_v14  ;;  %v6204_v50 = vadd.f32 %v6445_v53, %v2761_v48  ;;  %v3031_v29 = vmul.f32 %v6194_v13, %v6194_v13  ;;  %v6456_v51 = vld [vmem:[#allocation21_spill] sm:$0xff] }
 0x3e4   :  { %v4167_v41 = vpop.f32.mrf.mxu1  ;;  %v3027_v11 = vmul.f32 %v2891_v55, %v2891_v55 }
 0x3e5   :  { %v6134_v32 = vadd.f32 %v4167_v41, %v2796_v47  ;;  %v6164_v58 = vadd.f32 %v2925_v37, %v2781_v49  ;;  %v6447_v37 = vld [vmem:[#allocation32_spill] sm:$0xff]  ;;  %v3030_v46 = vmul.f32 %v6204_v50, %v6204_v50  ;;  %v6454_v47 = vld [vmem:[#allocation30_spill] sm:$0xff] }
 0x3e6   :  { %v2935_v6 = vpop.f32.mrf.mxu1  ;;  %v6441_v12 = vld [vmem:[#allocation39_spill] sm:$0xff]  ;;  %v6221_v4 = vadd.f32 %v6448_v35, %v6447_v37 }
 0x3e7   :  { %v6186_v60 = vadd.f32 %v6441_v12, %v2771_v30  ;;  %v3034_v28 = vmul.f32 %v6164_v58, %v6164_v58 }
 0x3e8   :  { %v4170_v9 = vpop.f32.mrf.mxu1  ;;  %v3028_v26 = vmul.f32 %v6221_v4, %v6221_v4 }
 0x3e9   :  { %v6129_v17 = vadd.f32 %v4170_v9, %v2806_v7  ;;  %v6145_v9 = vadd.f32 %v2935_v6, %v2791_v20  ;;  %v3037_v6 = vmul.f32 %v6134_v32, %v6134_v32  ;;  %v3032_v56 = vmul.f32 %v6186_v60, %v6186_v60  ;;  %v6452_v7 = vld [vmem:[#allocation20_spill] sm:$0xff] }
 0x3ea   :  { %v2945_v1 = vpop.f32.mrf.mxu1  ;;  %v2886_v15 = vadd.f32 %v6452_v7, %v6451_v5 }
 0x3eb   :  { %v3039_v42 = vmul.f32 %v6129_v17, %v6129_v17  ;;  %v6138_v22 = vadd.f32 %v2945_v1, %v2801_v10  ;;  %4172 = vmatpush3.msra.mxu0 %v6129_v17  ;;  %v3036_v44 = vmul.f32 %v6145_v9, %v6145_v9  ;;  %v2881_v10 = vadd.f32 %v6454_v47, %v6453_v54  ;;  %v6460_v54 = vld [vmem:[#allocation5_spill] sm:$0xff]  ;;  %v6461_v47 = vld [vmem:[#allocation6_spill] sm:$0xff] }
 0x3ec   :  { %4173 = vmatprep.subr.mxu0 %v6401_v19  ;;  %v2876_v1 = vadd.f32 %v6456_v51, %v6455_v57  ;;  %v3026_v20 = vmul.f32 %v2886_v15, %v2886_v15  ;;  %v6463_v51 = vld [vmem:[#allocation8_spill] sm:$0xff] }
 0x3ed   :  { %v3038_v41 = vmul.f32 %v6138_v22, %v6138_v22  ;;  %4174 = vmatpush3.msra.mxu0 %v6138_v22  ;;  %4207 = vmatpush3.msra.mxu1 %v3039_v42  ;;  %v3025_v42 = vmul.f32 %v2881_v10, %v2881_v10 }
 0x3ee   :  { %4175 = vmatprep.subr.mxu0 %v6401_v19  ;;  %4208 = vmatprep.subr.mxu1 %v6401_v19  ;;  %v3024_v2 = vmul.f32 %v2876_v1, %v2876_v1 }
 0x3ef   :  { %4176 = vmatpush3.msra.mxu0 %v6134_v32  ;;  %4209 = vmatpush3.msra.mxu1 %v3038_v41 }
 0x3f0   :  { %4177 = vmatprep.subr.mxu0 %v6401_v19  ;;  %4210 = vmatprep.subr.mxu1 %v6401_v19 }
 0x3f1   :  { %4178 = vmatpush3.msra.mxu0 %v6145_v9  ;;  %4211 = vmatpush3.msra.mxu1 %v3037_v6 }
 0x3f2   :  { %4179 = vmatprep.subr.mxu0 %v6401_v19  ;;  %4212 = vmatprep.subr.mxu1 %v6401_v19 }
 0x3f3   :  { %4180 = vmatpush3.msra.mxu0 %v6155_v14  ;;  %4213 = vmatpush3.msra.mxu1 %v3036_v44 }
 0x3f4   :  { %4181 = vmatprep.subr.mxu0 %v6401_v19  ;;  %4214 = vmatprep.subr.mxu1 %v6401_v19 }
 0x3f5   :  { %4182 = vmatpush3.msra.mxu0 %v6164_v58  ;;  %4215 = vmatpush3.msra.mxu1 %v3035_v43 }
 0x3f6   :  { %4183 = vmatprep.subr.mxu0 %v6401_v19  ;;  %4216 = vmatprep.subr.mxu1 %v6401_v19 }
 0x3f7   :  { %4184 = vmatpush3.msra.mxu0 %v6174_v18  ;;  %4217 = vmatpush3.msra.mxu1 %v3034_v28 }
 0x3f8   :  { %4185 = vmatprep.subr.mxu0 %v6401_v19  ;;  %4218 = vmatprep.subr.mxu1 %v6401_v19 }
 0x3f9   :  { %4186 = vmatpush3.msra.mxu0 %v6186_v60  ;;  %4219 = vmatpush3.msra.mxu1 %v3033_v8 }
 0x3fa   :  { %4187 = vmatprep.subr.mxu0 %v6401_v19  ;;  %4220 = vmatprep.subr.mxu1 %v6401_v19 }
 0x3fb   :  { %4188 = vmatpush3.msra.mxu0 %v6194_v13  ;;  %4221 = vmatpush3.msra.mxu1 %v3032_v56 }
 0x3fc   :  { %4189 = vmatprep.subr.mxu0 %v6401_v19  ;;  %4222 = vmatprep.subr.mxu1 %v6401_v19 }
 0x3fd   :  { %4190 = vmatpush3.msra.mxu0 %v6204_v50  ;;  %4223 = vmatpush3.msra.mxu1 %v3031_v29 }
 0x3fe   :  { %4191 = vmatprep.subr.mxu0 %v6401_v19  ;;  %4224 = vmatprep.subr.mxu1 %v6401_v19 }
 0x3ff   :  { %4192 = vmatpush3.msra.mxu0 %v6212_v45  ;;  %4225 = vmatpush3.msra.mxu1 %v3030_v46 }
 0x400   :  { %4193 = vmatprep.subr.mxu0 %v6401_v19  ;;  %4226 = vmatprep.subr.mxu1 %v6401_v19 }
 0x401   :  { %4194 = vmatpush3.msra.mxu0 %v6221_v4  ;;  %4227 = vmatpush3.msra.mxu1 %v3029_v23 }
 0x402   :  { %4195 = vmatprep.subr.mxu0 %v6401_v19  ;;  %4228 = vmatprep.subr.mxu1 %v6401_v19 }
 0x403   :  { %4196 = vmatpush3.msra.mxu0 %v2891_v55  ;;  %4229 = vmatpush3.msra.mxu1 %v3028_v26  ;;  %v6459_v26 = vld [vmem:[#allocation4_spill] sm:$0xff] }
 0x404   :  { %4197 = vmatprep.subr.mxu0 %v6401_v19  ;;  %4230 = vmatprep.subr.mxu1 %v6401_v19 }
 0x405   :  { %4198 = vmatpush3.msra.mxu0 %v2886_v15  ;;  %4231 = vmatpush3.msra.mxu1 %v3027_v11  ;;  %v6462_v11 = vld [vmem:[#allocation7_spill] sm:$0xff] }
 0x406   :  { %4199 = vmatprep.subr.mxu0 %v6401_v19  ;;  %4232 = vmatprep.subr.mxu1 %v6401_v19 }
 0x407   :  { %4200 = vmatpush3.msra.mxu0 %v2881_v10  ;;  %4233 = vmatpush3.msra.mxu1 %v3026_v20  ;;  %v6464_v20 = vld [vmem:[#allocation9_spill] sm:$0xff] }
 0x408   :  { %4201 = vmatprep.subr.mxu0 %v6401_v19  ;;  %4234 = vmatprep.subr.mxu1 %v6401_v19 }
 0x409   :  { %4202 = vmatpush3.msra.mxu0 %v2876_v1  ;;  %4235 = vmatpush3.msra.mxu1 %v3025_v42 }
 0x40a   :  { %4204 = vmatmul.mubr.f32.vlgmr.msra.gmra.mxu0 %v6457_v38  ;;  %4236 = vmatprep.subr.mxu1 %v6401_v19  ;;  %v3118_v19 = vld [vmem:[%s6345_s6] sm:$0x1] }
 0x40b   :  { %4237 = vmatpush3.msra.mxu1 %v3024_v2  ;;  %v6465_v2 = vld [vmem:[#allocation10_spill] sm:$0xff] }
 0x40c   :  { %4239 = vmatmul.mubr.f32.vlgmr.msra.gmra.mxu1 %v6457_v38 }
 0x4ca   :  { %v3020_v63 = vpop.f32.mrf.mxu0 }
 0x4cb   :  { %v3110_v41 = vmul.f32 0.0078125, %v3020_v63  ;;  %v6466_v63 = vld [vmem:[#allocation11_spill] sm:$0xff] }
 0x4cc   :  { %v3106_v24 = vpop.f32.mrf.mxu1  ;;  %v4205_v25 = vpop.f32.mrf.mxu0 }
 0x4cd   :  { %v3112_v49 = vmul.f32 %v3110_v41, %v3110_v41  ;;  %v3111_v6 = vmul.f32 0.0078125, %v3106_v24  ;;  %v6467_v24 = vld [vmem:[#allocation12_spill] sm:$0xff] }
 0x4ce   :  { %v4240_v31 = vpop.f32.mrf.mxu1 }
 0x4cf   :  { %v3113_v21 = vsub.f32 %v3111_v6, %v3112_v49  ;;  %v6468_v49 = vld [vmem:[#allocation13_spill] sm:$0xff]  ;;  %v6469_v31 = vld [vmem:[#allocation14_spill] sm:$0xff] }
 0x4d1   :  { %v3115_v44 = vadd.f32 1e-05, %v3113_v21 }
 0x4d3   :  { %4246 = vrsqrt.f32 %v3115_v44  ;;  %v6470_v44 = vld [vmem:[#allocation15_spill] sm:$0xff] }
 0x4e0   :  { %v4247_v30 = vpop.eup %4246 }
 0x4e1   :  { %v3117_v43 = vmul.f32 %v4247_v30, %v3114_v52  ;;  %v6471_v30 = vld [vmem:[#allocation16_spill] sm:$0xff] }
 0x4e3   :  { %v3119_v61 = vmul.f32 %v3117_v43, %v3110_v41  ;;  %v3125_v59 = vrot.slane %v3117_v43, %v6458_v40 }
 0x4e5   :  { %v3120_v62 = vsub.f32 %v3118_v19, %v3119_v61  ;;  %v3127_v36 = vmul.f32 %v3125_v59, %v2876_v1  ;;  %v3128_v12 = vmul.f32 %v3125_v59, %v2881_v10  ;;  %v3129_v28 = vmul.f32 %v3125_v59, %v2886_v15  ;;  %v6472_v19 = vld [vmem:[#allocation17_spill] sm:$0xff] }
 0x4e6   :  { %v3130_v39 = vmul.f32 %v3125_v59, %v2891_v55  ;;  %v3131_v34 = vmul.f32 %v3125_v59, %v6221_v4  ;;  %v3132_v48 = vmul.f32 %v3125_v59, %v6212_v45  ;;  %v3133_v8 = vmul.f32 %v3125_v59, %v6204_v50 }
 0x4e7   :  { %v3134_v3 = vmul.f32 %v3125_v59, %v6194_v13  ;;  %v3135_v0 = vmul.f32 %v3125_v59, %v6186_v60  ;;  %v3136_v53 = vmul.f32 %v3125_v59, %v6174_v18  ;;  %v3137_v56 = vmul.f32 %v3125_v59, %v6164_v58 }
 0x4e8   :  { %v3138_v27 = vmul.f32 %v3125_v59, %v6155_v14  ;;  %v3147_v29 = vrot.slane %v3120_v62, %v6458_v40  ;;  %v3139_v37 = vmul.f32 %v3125_v59, %v6145_v9  ;;  %v3140_v35 = vmul.f32 %v3125_v59, %v6134_v32  ;;  %v6473_v40 = vld [vmem:[#allocation18_spill] sm:$0xff]  ;;  %v6474_v62 = vld [vmem:[#allocation19_spill] sm:$0xff] }
 0x4e9   :  { %v3141_v45 = vmul.f32 %v3125_v59, %v6138_v22  ;;  %v3142_v50 = vmul.f32 %v3125_v59, %v6129_v17 }
 0x4ea   :  { %v3149_v4 = vadd.f32 %v3147_v29, %v3127_v36  ;;  %v3150_v13 = vadd.f32 %v3147_v29, %v3128_v12  ;;  %v3151_v46 = vadd.f32 %v3147_v29, %v3129_v28  ;;  %v3152_v60 = vadd.f32 %v3147_v29, %v3130_v39 }
 0x4eb   :  { %v3153_v16 = vadd.f32 %v3147_v29, %v3131_v34  ;;  %v3154_v18 = vadd.f32 %v3147_v29, %v3132_v48  ;;  %v3155_v33 = vadd.f32 %v3147_v29, %v3133_v8  ;;  %v3156_v58 = vadd.f32 %v3147_v29, %v3134_v3 }
 0x4ec   :  { %v3157_v55 = vadd.f32 %v3147_v29, %v3135_v0  ;;  %v3158_v14 = vadd.f32 %v3147_v29, %v3136_v53  ;;  %v3159_v23 = vadd.f32 %v3147_v29, %v3137_v56  ;;  %v3160_v5 = vadd.f32 %v3147_v29, %v3138_v27 }
 0x4ed   :  { %v3161_v7 = vadd.f32 %v3147_v29, %v3139_v37  ;;  %v3162_v9 = vadd.f32 %v3147_v29, %v3140_v35  ;;  %v3163_v15 = vadd.f32 %v3147_v29, %v3141_v45  ;;  %v3164_v32 = vadd.f32 %v3147_v29, %v3142_v50 }
 0x4ee   :  { %v3165_v22 = vadd.f32 %v3149_v4, %v6459_v26  ;;  %v3166_v17 = vadd.f32 %v3150_v13, %v6460_v54  ;;  %v3167_v10 = vadd.f32 %v3151_v46, %v6461_v47  ;;  %v3168_v57 = vadd.f32 %v3152_v60, %v6462_v11 }
 0x4ef   :  { %v3169_v1 = vadd.f32 %v3153_v16, %v6463_v51  ;;  %v3170_v42 = vadd.f32 %v3154_v18, %v6464_v20  ;;  %v3171_v38 = vadd.f32 %v3155_v33, %v6465_v2  ;;  %v3172_v41 = vadd.f32 %v3156_v58, %v6466_v63 }
 0x4f0   :  { %v3173_v25 = vadd.f32 %v3157_v55, %v6467_v24  ;;  %v3174_v6 = vadd.f32 %v3158_v14, %v6468_v49  ;;  %v3175_v21 = vadd.f32 %v3159_v23, %v6469_v31  ;;  %v3176_v52 = vadd.f32 %v3160_v5, %v6470_v44 }
 0x4f1   :  { %v3177_v43 = vadd.f32 %v3161_v7, %v6471_v30  ;;  %v3178_v61 = vadd.f32 %v3162_v9, %v6472_v19  ;;  %v3179_v59 = vadd.f32 %v3163_v15, %v6473_v40  ;;  %v3180_v36 = vadd.f32 %v3164_v32, %v6474_v62 }
 0x4f2   :  { %v3181_v12 = vmax.f32 %v3165_v22, 0.0  ;;  %v3182_v28 = vmax.f32 %v3166_v17, 0.0  ;;  %v3183_v39 = vmax.f32 %v3167_v10, 0.0  ;;  %v3184_v34 = vmax.f32 %v3168_v57, 0.0 }
 0x4f3   :  { %v3185_v48 = vmax.f32 %v3169_v1, 0.0  ;;  %v3186_v8 = vmax.f32 %v3170_v42, 0.0  ;;  %v3187_v3 = vmax.f32 %v3171_v38, 0.0  ;;  %v3188_v0 = vmax.f32 %v3172_v41, 0.0 }
 0x4f4   :  { %v3189_v53 = vmax.f32 %v3173_v25, 0.0  ;;  %v3190_v56 = vmax.f32 %v3174_v6, 0.0  ;;  %v3191_v27 = vmax.f32 %v3175_v21, 0.0  ;;  %v3192_v29 = vmax.f32 %v3176_v52, 0.0  ;;  %3197 = vst [vmem:[%s6346_s7] sm:$0xff] %v3181_v12  ;;  %3198 = vst [vmem:[%s6346_s7 + $0x8] sm:$0xff] %v3182_v28 }
 0x4f5   :  { %3199 = vst [vmem:[%s6346_s7 + $0x10] sm:$0xff] %v3183_v39  ;;  %3200 = vst [vmem:[%s6346_s7 + $0x18] sm:$0xff] %v3184_v34  ;;  %v3193_v37 = vmax.f32 %v3177_v43, 0.0  ;;  %v3194_v35 = vmax.f32 %v3178_v61, 0.0  ;;  %v3195_v45 = vmax.f32 %v3179_v59, 0.0  ;;  %v3196_v50 = vmax.f32 %v3180_v36, 0.0 }
 0x4f6   :  { %3201 = vst [vmem:[%s6346_s7 + $0x20] sm:$0xff] %v3185_v48  ;;  %3202 = vst [vmem:[%s6346_s7 + $0x28] sm:$0xff] %v3186_v8 }
 0x4f7   :  { %3203 = vst [vmem:[%s6346_s7 + $0x30] sm:$0xff] %v3187_v3  ;;  %3204 = vst [vmem:[%s6346_s7 + $0x38] sm:$0xff] %v3188_v0 }
 0x4f8   :  { %3205 = vst [vmem:[%s6346_s7 + $0x40] sm:$0xff] %v3189_v53  ;;  %3206 = vst [vmem:[%s6346_s7 + $0x48] sm:$0xff] %v3190_v56 }
 0x4f9   :  { %3207 = vst [vmem:[%s6346_s7 + $0x50] sm:$0xff] %v3191_v27  ;;  %3208 = vst [vmem:[%s6346_s7 + $0x58] sm:$0xff] %v3192_v29 }
 0x4fa   :  { %3209 = vst [vmem:[%s6346_s7 + $0x60] sm:$0xff] %v3193_v37  ;;  %3210 = vst [vmem:[%s6346_s7 + $0x68] sm:$0xff] %v3194_v35 }
 0x4fb   :  { %3211 = vst [vmem:[%s6346_s7 + $0x70] sm:$0xff] %v3195_v45  ;;  %3212 = vst [vmem:[%s6346_s7 + $0x78] sm:$0xff] %v3196_v50 }

</bundles_post_ra>
